<compile_context>
chip_gen: v7x
topology: tpu7x:2x2x1
jax: 0.10.0
libtpu: 0.0.40
codegen_flags: <defaults>
</compile_context>

<pallas_src>
import functools

import jax
import jax.numpy as jnp
from jax.experimental import pallas as pl
from jax.experimental.pallas import tpu as pltpu

N_EMBD = 384
HIDDEN = 4 * N_EMBD          # 1536


def ffn_kernel(x_ref, w1_ref, b1_ref, w2_ref, b2_ref, o_ref, *, h_chunk):
    # x_ref: (TM, C)           w1_ref: (C, 4C) bf16   b1_ref: (1, 4C) f32
    # w2_ref: (4C, C) bf16     b2_ref: (1, C)  f32    o_ref: (TM, C)
    x = x_ref[...].astype(jnp.bfloat16)                        # bf16 MXU operand
    tm = x.shape[0]
    acc = jnp.zeros((tm, N_EMBD), jnp.float32)
    # Static (unrolled) loop over hidden-dim chunks.  h_chunk == HIDDEN gives
    # the single-pass unchunked form (v5e/v6e); h_chunk == 512 bounds the live
    # ReLU intermediate to (TM, 512) f32 (v7x).
    for c in range(0, HIDDEN, h_chunk):
        h = jnp.dot(x, w1_ref[:, c:c + h_chunk],
                    preferred_element_type=jnp.float32)         # (TM, chunk) f32
        h = jnp.maximum(h + b1_ref[:, c:c + h_chunk], 0.0)      # bias + ReLU, f32
        acc = acc + jnp.dot(h.astype(jnp.bfloat16), w2_ref[c:c + h_chunk, :],
                            preferred_element_type=jnp.float32)
    # TODO(synk): nn.Dropout(0.2) is identity in eval mode; training-mode
    # stochastic dropout (pltpu.prng_seed + pltpu.prng_random_bits) is not
    # implemented here.
    o_ref[...] = (acc + b2_ref[...]).astype(o_ref.dtype)


def _choose_tm(rows):
    """Largest row tile in {512, 384, 256, 128} that still leaves >= 2 grid
    steps (so both v7x TensorCores get work).  If the row count is too small
    for that, one step covering all rows beats two tiny ones."""
    for tm in (512, 384, 256, 128):
        if rows >= 2 * tm:
            return tm
    return min(512, max(128, pl.cdiv(rows, 128) * 128))


def _chip_tuning():
    """Generation-aware (hidden_chunk, vmem_limit_bytes)."""
    try:
        vmem_cap = int(pltpu.get_tpu_info().vmem_capacity_bytes)
    except Exception:
        return 512, 32 << 20                 # conservative default, fits v7x
    if vmem_cap <= (64 << 20):               # v7x-class: 64 MiB VMEM per TC
        return 512, 32 << 20
    return HIDDEN, 64 << 20                  # v5e / v6e: 128 MiB physical


def feedforward(x, params):
    """x: (..., N_EMBD), float32 or bfloat16.  Returns same shape/dtype."""
    orig_shape = x.shape
    C = orig_shape[-1]
    assert C == N_EMBD

    x2 = x.reshape(-1, C)                    # no pad: ragged last block masked
    rows = x2.shape[0]
    tm = _choose_tm(rows)
    grid = (pl.cdiv(rows, tm),)
    h_chunk, vmem_limit = _chip_tuning()

    # bf16 weights: halves resident weight VMEM and the one-time weight DMA,
    # and enables the bf16 x bf16 -> f32 MXU path.  Biases stay f32 and are
    # added to the f32 accumulator.
    w1 = params["w1"].astype(jnp.bfloat16)                     # (C, 4C)
    w2 = params["w2"].astype(jnp.bfloat16)                     # (4C, C)
    b1 = params["b1"].astype(jnp.float32).reshape(1, HIDDEN)
    b2 = params["b2"].astype(jnp.float32).reshape(1, C)

    act_bytes = x2.dtype.itemsize
    flops = 4 * rows * C * HIDDEN                              # two matmuls
    bytes_accessed = (w1.size * 2 + w2.size * 2 + b1.size * 4 + b2.size * 4
                      + rows * C * act_bytes * 2)              # x in + y out

    out = pl.pallas_call(
        functools.partial(ffn_kernel, h_chunk=h_chunk),
        out_shape=jax.ShapeDtypeStruct((rows, C), x.dtype),
        grid_spec=pltpu.PrefetchScalarGridSpec(
            num_scalar_prefetch=0,
            grid=grid,
            in_specs=[
                pl.BlockSpec((tm, C), lambda i: (i, 0)),        # x slab
                pl.BlockSpec((C, HIDDEN), lambda i: (0, 0)),    # w1 (resident)
                pl.BlockSpec((1, HIDDEN), lambda i: (0, 0)),    # b1
                pl.BlockSpec((HIDDEN, C), lambda i: (0, 0)),    # w2 (resident)
                pl.BlockSpec((1, C), lambda i: (0, 0)),         # b2
            ],
            out_specs=pl.BlockSpec((tm, C), lambda i: (i, 0)),
        ),
        compiler_params=pltpu.CompilerParams(
            dimension_semantics=("parallel",),
            vmem_limit_bytes=vmem_limit,
        ),
        cost_estimate=pl.CostEstimate(
            flops=flops, transcendentals=0, bytes_accessed=bytes_accessed),
    )(x2, w1, b1, w2, b2)

    return out.reshape(orig_shape)


def init_params(key):
    k1, k2 = jax.random.split(key)
    s = 0.02
    return {
        "w1": s * jax.random.normal(k1, (N_EMBD, HIDDEN), jnp.float32),
        "b1": jnp.zeros((HIDDEN,), jnp.float32),
        "w2": s * jax.random.normal(k2, (HIDDEN, N_EMBD), jnp.float32),
        "b2": jnp.zeros((N_EMBD,), jnp.float32),
    }


def _reference(x, params):
    return (jnp.maximum(x @ params["w1"] + params["b1"], 0.0)
            @ params["w2"] + params["b2"])


if __name__ == "__main__":
    key = jax.random.PRNGKey(0)
    k_x, k_x2, k_p = jax.random.split(key, 3)
    params = init_params(k_p)

    # Case 1: (2, 64, 384) -> 128 rows (TM-aligned).
    B, T, C = 2, 64, N_EMBD
    x = jax.random.normal(k_x, (B, T, C), jnp.float32)
    out = jax.block_until_ready(feedforward(x, params))
    assert out.shape == (B, T, C)
    assert bool(jnp.all(jnp.isfinite(out)))
    ref = _reference(x, params)
    rel_err = jnp.max(jnp.abs(out - ref)) / (jnp.max(jnp.abs(ref)) + 1e-6)
    assert rel_err < 5e-2, rel_err            # bf16 weights -> ~1e-3 drift

    # Case 2: ragged row count (3 * 100 = 300 rows), exercises the no-pad
    # path with a masked partial last block.
    x_r = jax.random.normal(k_x2, (3, 100, C), jnp.float32)
    out_r = jax.block_until_ready(feedforward(x_r, params))
    assert out_r.shape == (3, 100, C)
    assert bool(jnp.all(jnp.isfinite(out_r)))
    ref_r = _reference(x_r, params)
    rel_err_r = jnp.max(jnp.abs(out_r - ref_r)) / (jnp.max(jnp.abs(ref_r)) + 1e-6)
    assert rel_err_r < 5e-2, rel_err_r

    print("KERNEL_OK")
</pallas_src>

<mosaic_0001>
module attributes {stable_mosaic.version = 11 : i64} {
  func.func @ffn_kernel(%arg0: i32, %arg1: memref<128x384xf32, #tpu.memory_space<vmem>>, %arg2: memref<384x1536xbf16, #tpu.memory_space<vmem>>, %arg3: memref<1x1536xf32, #tpu.memory_space<vmem>>, %arg4: memref<1536x384xbf16, #tpu.memory_space<vmem>>, %arg5: memref<1x384xf32, #tpu.memory_space<vmem>>, %arg6: memref<128x384xf32, #tpu.memory_space<vmem>>) attributes {dimension_semantics = [#tpu.dimension_semantics<parallel>], iteration_bounds = array<i64: 1>, scalar_prefetch = 0 : i64, scratch_operands = 0 : i64, tpu.core_type = #tpu.core_type<tc>, window_params = [{transform_indices = @transform_0, window_bounds = array<i64: 128, 384>}, {pipeline_mode = #tpu.pipeline_mode<synchronous>, transform_indices = @transform_1, window_bounds = array<i64: 384, 1536>}, {pipeline_mode = #tpu.pipeline_mode<synchronous>, transform_indices = @transform_2, window_bounds = array<i64: 1, 1536>}, {pipeline_mode = #tpu.pipeline_mode<synchronous>, transform_indices = @transform_3, window_bounds = array<i64: 1536, 384>}, {pipeline_mode = #tpu.pipeline_mode<synchronous>, transform_indices = @transform_4, window_bounds = array<i64: 1, 384>}, {transform_indices = @transform_5, window_bounds = array<i64: 128, 384>}]} {
    %c0 = arith.constant 0 : index
    %c0_0 = arith.constant 0 : index
    %0 = vector.load %arg1[%c0, %c0_0] : memref<128x384xf32, #tpu.memory_space<vmem>>, vector<128x384xf32>
    %1 = arith.truncf %0 : vector<128x384xf32> to vector<128x384xbf16>
    %cst = arith.constant 0.000000e+00 : f32
    %2 = vector.broadcast %cst : f32 to vector<128x384xf32>
    %c0_1 = arith.constant 0 : index
    %c0_2 = arith.constant 0 : index
    %3 = vector.load %arg2[%c0_1, %c0_2] : memref<384x1536xbf16, #tpu.memory_space<vmem>>, vector<384x512xbf16>
    %cst_3 = arith.constant dense<0.000000e+00> : vector<128x512xf32>
    %4 = tpu.matmul %1, %3, %cst_3 {dimension_numbers = #tpu.dot_dimension_numbers<[1], [0], [0], [1], [0, 0, 1, 1], [], []>} : vector<128x384xbf16>, vector<384x512xbf16>, vector<128x512xf32> -> vector<128x512xf32>
    %c0_4 = arith.constant 0 : index
    %c0_5 = arith.constant 0 : index
    %5 = vector.load %arg3[%c0_4, %c0_5] : memref<1x1536xf32, #tpu.memory_space<vmem>>, vector<1x512xf32>
    %6 = vector.broadcast %5 : vector<1x512xf32> to vector<128x512xf32>
    %7 = arith.addf %4, %6 : vector<128x512xf32>
    %cst_6 = arith.constant 0.000000e+00 : f32
    %8 = vector.broadcast %cst_6 : f32 to vector<128x512xf32>
    %9 = arith.maximumf %7, %8 : vector<128x512xf32>
    %10 = arith.truncf %9 : vector<128x512xf32> to vector<128x512xbf16>
    %c0_7 = arith.constant 0 : index
    %c0_8 = arith.constant 0 : index
    %11 = vector.load %arg4[%c0_7, %c0_8] : memref<1536x384xbf16, #tpu.memory_space<vmem>>, vector<512x384xbf16>
    %cst_9 = arith.constant dense<0.000000e+00> : vector<128x384xf32>
    %12 = tpu.matmul %10, %11, %cst_9 {dimension_numbers = #tpu.dot_dimension_numbers<[1], [0], [0], [1], [0, 0, 1, 1], [], []>} : vector<128x512xbf16>, vector<512x384xbf16>, vector<128x384xf32> -> vector<128x384xf32>
    %13 = arith.addf %2, %12 : vector<128x384xf32>
    %c0_10 = arith.constant 0 : index
    %c512 = arith.constant 512 : index
    %14 = vector.load %arg2[%c0_10, %c512] : memref<384x1536xbf16, #tpu.memory_space<vmem>>, vector<384x512xbf16>
    %cst_11 = arith.constant dense<0.000000e+00> : vector<128x512xf32>
    %15 = tpu.matmul %1, %14, %cst_11 {dimension_numbers = #tpu.dot_dimension_numbers<[1], [0], [0], [1], [0, 0, 1, 1], [], []>} : vector<128x384xbf16>, vector<384x512xbf16>, vector<128x512xf32> -> vector<128x512xf32>
    %c0_12 = arith.constant 0 : index
    %c512_13 = arith.constant 512 : index
    %16 = vector.load %arg3[%c0_12, %c512_13] : memref<1x1536xf32, #tpu.memory_space<vmem>>, vector<1x512xf32>
    %17 = vector.broadcast %16 : vector<1x512xf32> to vector<128x512xf32>
    %18 = arith.addf %15, %17 : vector<128x512xf32>
    %cst_14 = arith.constant 0.000000e+00 : f32
    %19 = vector.broadcast %cst_14 : f32 to vector<128x512xf32>
    %20 = arith.maximumf %18, %19 : vector<128x512xf32>
    %21 = arith.truncf %20 : vector<128x512xf32> to vector<128x512xbf16>
    %c512_15 = arith.constant 512 : index
    %c0_16 = arith.constant 0 : index
    %22 = vector.load %arg4[%c512_15, %c0_16] : memref<1536x384xbf16, #tpu.memory_space<vmem>>, vector<512x384xbf16>
    %cst_17 = arith.constant dense<0.000000e+00> : vector<128x384xf32>
    %23 = tpu.matmul %21, %22, %cst_17 {dimension_numbers = #tpu.dot_dimension_numbers<[1], [0], [0], [1], [0, 0, 1, 1], [], []>} : vector<128x512xbf16>, vector<512x384xbf16>, vector<128x384xf32> -> vector<128x384xf32>
    %24 = arith.addf %13, %23 : vector<128x384xf32>
    %c0_18 = arith.constant 0 : index
    %c1024 = arith.constant 1024 : index
    %25 = vector.load %arg2[%c0_18, %c1024] : memref<384x1536xbf16, #tpu.memory_space<vmem>>, vector<384x512xbf16>
    %cst_19 = arith.constant dense<0.000000e+00> : vector<128x512xf32>
    %26 = tpu.matmul %1, %25, %cst_19 {dimension_numbers = #tpu.dot_dimension_numbers<[1], [0], [0], [1], [0, 0, 1, 1], [], []>} : vector<128x384xbf16>, vector<384x512xbf16>, vector<128x512xf32> -> vector<128x512xf32>
    %c0_20 = arith.constant 0 : index
    %c1024_21 = arith.constant 1024 : index
    %27 = vector.load %arg3[%c0_20, %c1024_21] : memref<1x1536xf32, #tpu.memory_space<vmem>>, vector<1x512xf32>
    %28 = vector.broadcast %27 : vector<1x512xf32> to vector<128x512xf32>
    %29 = arith.addf %26, %28 : vector<128x512xf32>
    %cst_22 = arith.constant 0.000000e+00 : f32
    %30 = vector.broadcast %cst_22 : f32 to vector<128x512xf32>
    %31 = arith.maximumf %29, %30 : vector<128x512xf32>
    %32 = arith.truncf %31 : vector<128x512xf32> to vector<128x512xbf16>
    %c1024_23 = arith.constant 1024 : index
    %c0_24 = arith.constant 0 : index
    %33 = vector.load %arg4[%c1024_23, %c0_24] : memref<1536x384xbf16, #tpu.memory_space<vmem>>, vector<512x384xbf16>
    %cst_25 = arith.constant dense<0.000000e+00> : vector<128x384xf32>
    %34 = tpu.matmul %32, %33, %cst_25 {dimension_numbers = #tpu.dot_dimension_numbers<[1], [0], [0], [1], [0, 0, 1, 1], [], []>} : vector<128x512xbf16>, vector<512x384xbf16>, vector<128x384xf32> -> vector<128x384xf32>
    %35 = arith.addf %24, %34 : vector<128x384xf32>
    %c0_26 = arith.constant 0 : index
    %c0_27 = arith.constant 0 : index
    %36 = vector.load %arg5[%c0_26, %c0_27] : memref<1x384xf32, #tpu.memory_space<vmem>>, vector<1x384xf32>
    %37 = vector.broadcast %36 : vector<1x384xf32> to vector<128x384xf32>
    %38 = arith.addf %35, %37 : vector<128x384xf32>
    %c0_28 = arith.constant 0 : index
    %c0_29 = arith.constant 0 : index
    %39 = vector.load %arg6[%c0_28, %c0_29] : memref<128x384xf32, #tpu.memory_space<vmem>>, vector<128x384xf32>
    tpu.vector_store %arg6[%c0_28, %c0_29], %38 {strides = array<i32>} : memref<128x384xf32, #tpu.memory_space<vmem>>, vector<128x384xf32>,
    return
  }
  func.func @transform_0(%arg0: i32) -> (i32, i32) {
    %c0_i32 = arith.constant 0 : i32
    %c0_i32_0 = arith.constant 0 : i32
    return %arg0, %c0_i32 : i32, i32
  }
  func.func @transform_1(%arg0: i32) -> (i32, i32) {
    %c0_i32 = arith.constant 0 : i32
    %c0_i32_0 = arith.constant 0 : i32
    %c0_i32_1 = arith.constant 0 : i32
    return %c0_i32, %c0_i32_0 : i32, i32
  }
  func.func @transform_2(%arg0: i32) -> (i32, i32) {
    %c0_i32 = arith.constant 0 : i32
    %c0_i32_0 = arith.constant 0 : i32
    %c0_i32_1 = arith.constant 0 : i32
    return %c0_i32, %c0_i32_0 : i32, i32
  }
  func.func @transform_3(%arg0: i32) -> (i32, i32) {
    %c0_i32 = arith.constant 0 : i32
    %c0_i32_0 = arith.constant 0 : i32
    %c0_i32_1 = arith.constant 0 : i32
    return %c0_i32, %c0_i32_0 : i32, i32
  }
  func.func @transform_4(%arg0: i32) -> (i32, i32) {
    %c0_i32 = arith.constant 0 : i32
    %c0_i32_0 = arith.constant 0 : i32
    %c0_i32_1 = arith.constant 0 : i32
    return %c0_i32, %c0_i32_0 : i32, i32
  }
  func.func @transform_5(%arg0: i32) -> (i32, i32) {
    %c0_i32 = arith.constant 0 : i32
    %c0_i32_0 = arith.constant 0 : i32
    return %arg0, %c0_i32 : i32, i32
  }
}

</mosaic_0001>

<bundles_post_ra>
// kernel: tpu_custom_call.1
= control target key start
LH: loop header
LB: loop body
LE: loop exit
PB: predicated region body
PF: predicated region fallthrough
CT: control target
= control target key end

     0   :  { %10 = vsyncpa [#allocation3], 0  ;;  %s10571_s0 = inlined_call_operand.hbm [shape: f32[128,384], index: 0, kind: input, shape index: {}]   ;;  %s10572_s1 = inlined_call_operand.hbm [shape: bf16[384,1536], index: 1, kind: input, shape index: {}]   ;;  %s10573_s2 = inlined_call_operand.hbm [shape: f32[1,1536], index: 2, kind: input, shape index: {}]   ;;  %s10574_s3 = inlined_call_operand.hbm [shape: bf16[1536,384], index: 3, kind: input, shape index: {}]   ;;  %s10575_s4 = inlined_call_operand.hbm [shape: f32[1,384], index: 4, kind: input, shape index: {}]   ;;  %s10576_s5 = inlined_call_operand.hbm [shape: f32[128,384], index: 5, kind: output, shape index: {}]  }
   0x1   :  { %11 = vsyncpa [#allocation6], 0 }
   0x2   :  { %12 = vsyncpa [#allocation9], 0 }
   0x3   :  { %13 = vsyncpa [#allocation4], 0  ;;  %s9429_s18 = smov [#allocation5]   ;;  %s9289_s22 = scalar_lea.hbm %s10572_s1, 36864 }
   0x4   :  { %s31_s19 = sshll.u32 %s9429_s18, 4  ;;  %p9290_p0 = scmp.ne.s32.totalorder %s10572_s1, %s9289_s22  ;;  %s32_s19 = int_to_ptr.vmem [resolvable:$true] %s31_s19 }
   0x5   :  { %p9293_p1 = scmp.lt.u32.totalorder %s9289_s22, %s10572_s1 }
   0x7   :  { %p9295_p2 = pnand %p9293_p1, %p9290_p0 }
   0x9   :  { %9298 = shalt.err (!%p9295_p2)
}
   0xa   :  { %s9299_s27 = scalar_lea.vmem %s32_s19, 36864  ;;  %p9304_p4 = scmp.lt.s32.totalorder %s32_s19, %s32_s19 }
   0xb   :  { %p9300_p3 = scmp.ne.s32.totalorder %s32_s19, %s9299_s27  ;;  %p9305_p5 = scmp.lt.s32.totalorder %s9299_s27, %s9299_s27 }
   0xd   :  { %p9306_p6 = por %p9305_p5, %p9304_p4 }
   0xf   :  { %p9307_p7 = pnand %p9306_p6, %p9300_p3 }
  0x11   :  { %9310 = shalt.err (!%p9307_p7)
}
  0x12   :  { %s9430_s28 = smov 768   ;;  %s9431_s29 = smov 48  }
  0x13   :  { %37 = dma.hbm_to_vmem [thread:$0]  %s10572_s1, 36864, %s32_s19, [#allocation6], %s9430_s28, %s9430_s28, %s9431_s29  }
  0x14   :  { %s9432_s7 = smov [#allocation8]   ;;  %s9311_s11 = scalar_lea.hbm %s10574_s3, 36864 }
  0x15   :  { %s53_s8 = sshll.u32 %s9432_s7, 4  ;;  %p9312_p8 = scmp.ne.s32.totalorder %s10574_s3, %s9311_s11  ;;  %s54_s8 = int_to_ptr.vmem [resolvable:$true] %s53_s8 }
  0x16   :  { %p9315_p9 = scmp.lt.u32.totalorder %s9311_s11, %s10574_s3 }
  0x18   :  { %p9317_p10 = pnand %p9315_p9, %p9312_p8 }
  0x1a   :  { %9320 = shalt.err (!%p9317_p10)
}
  0x1b   :  { %s9321_s16 = scalar_lea.vmem %s54_s8, 36864  ;;  %p9326_p12 = scmp.lt.s32.totalorder %s54_s8, %s54_s8 }
  0x1c   :  { %p9322_p11 = scmp.ne.s32.totalorder %s54_s8, %s9321_s16  ;;  %p9327_p13 = scmp.lt.s32.totalorder %s9321_s16, %s9321_s16 }
  0x1e   :  { %p9328_p0 = por %p9327_p13, %p9326_p12 }
  0x20   :  { %p9329_p1 = pnand %p9328_p0, %p9322_p11 }
  0x22   :  { %9332 = shalt.err (!%p9329_p1)
}
  0x23   :  { %s9433_s1 = smov 192   ;;  %s9434_s17 = smov 12  }
  0x24   :  { %59 = dma.hbm_to_vmem [thread:$0]  %s10574_s3, 36864, %s54_s8, [#allocation9], %s9433_s1, %s9433_s1, %s9434_s17  }
  0x25   :  { %s9435_s20 = smov [#allocation2]   ;;  %s9333_s24 = scalar_lea.hbm %s10571_s0, 6144 }
  0x26   :  { %s19_s21 = sshll.u32 %s9435_s20, 4  ;;  %p9334_p2 = scmp.ne.s32.totalorder %s10571_s0, %s9333_s24  ;;  %s20_s21 = int_to_ptr.vmem [resolvable:$true] %s19_s21 }
  0x27   :  { %p9337_p3 = scmp.lt.u32.totalorder %s9333_s24, %s10571_s0 }
  0x29   :  { %p9339_p4 = pnand %p9337_p3, %p9334_p2 }
  0x2b   :  { %9342 = shalt.err (!%p9339_p4)
}
  0x2c   :  { %s9343_s29 = scalar_lea.vmem %s20_s21, 6144  ;;  %p9348_p6 = scmp.lt.s32.totalorder %s20_s21, %s20_s21 }
  0x2d   :  { %p9344_p5 = scmp.ne.s32.totalorder %s20_s21, %s9343_s29  ;;  %p9349_p7 = scmp.lt.s32.totalorder %s9343_s29, %s9343_s29 }
  0x2f   :  { %p9350_p8 = por %p9349_p7, %p9348_p6 }
  0x31   :  { %p9351_p9 = pnand %p9350_p8, %p9344_p5 }
  0x33   :  { %9354 = shalt.err (!%p9351_p9)
}
  0x34   :  { %s9436_s3 = smov 384   ;;  %s9437_s30 = smov 24  }
  0x35   :  { %25 = dma.hbm_to_vmem [thread:$0]  %s10571_s0, 6144, %s20_s21, [#allocation3], %s9436_s3, %s9436_s3, %s9437_s30  }
  0x36   :  { %s9438_s8 = smov [#allocation7]   ;;  %s9439_s10 = smov [#allocation10]  }
  0x37   :  { %s44_s9 = sshll.u32 %s9438_s8, 4  ;;  %s66_s11 = sshll.u32 %s9439_s10, 4  ;;  %s45_s9 = int_to_ptr.vmem [resolvable:$true] %s44_s9  ;;  %s67_s11 = int_to_ptr.vmem [resolvable:$true] %s66_s11 }
  0x38   :  { %s9355_s14 = scalar_lea.hbm %s10573_s2, 192 }
  0x39   :  { %p9356_p10 = scmp.ne.s32.totalorder %s10573_s2, %s9355_s14  ;;  %p9359_p11 = scmp.lt.u32.totalorder %s9355_s14, %s10573_s2 }
  0x3b   :  { %p9361_p12 = pnand %p9359_p11, %p9356_p10 }
  0x3d   :  { %9364 = shalt.err (!%p9361_p12)
}
  0x3e   :  { %s9365_s0 = scalar_lea.vmem %s45_s9, 192  ;;  %p9370_p0 = scmp.lt.s32.totalorder %s45_s9, %s45_s9 }
  0x3f   :  { %p9366_p13 = scmp.ne.s32.totalorder %s45_s9, %s9365_s0  ;;  %p9371_p1 = scmp.lt.s32.totalorder %s9365_s0, %s9365_s0 }
  0x41   :  { %p9372_p2 = por %p9371_p1, %p9370_p0 }
  0x43   :  { %p9373_p3 = pnand %p9372_p2, %p9366_p13 }
  0x45   :  { %9376 = shalt.err (!%p9373_p3)
}
  0x46   :  { %47 = dma.hbm_to_vmem [thread:$0]  %s10573_s2, 192, %s45_s9, [#allocation6]  }
  0x47   :  { %s9377_s22 = scalar_lea.hbm %s10575_s4, 48 }
  0x48   :  { %p9378_p4 = scmp.ne.s32.totalorder %s10575_s4, %s9377_s22  ;;  %p9381_p5 = scmp.lt.u32.totalorder %s9377_s22, %s10575_s4 }
  0x4a   :  { %p9383_p6 = pnand %p9381_p5, %p9378_p4 }
  0x4c   :  { %9386 = shalt.err (!%p9383_p6)
}
  0x4d   :  { %s9387_s27 = scalar_lea.vmem %s67_s11, 48  ;;  %s9391_s28 = scalar_lea.vmem %s67_s11, 64 }
  0x4e   :  { %p9388_p7 = scmp.ne.s32.totalorder %s67_s11, %s9387_s27  ;;  %p9392_p8 = scmp.lt.s32.totalorder %s67_s11, %s67_s11 }
  0x4f   :  { %p9393_p9 = scmp.lt.s32.totalorder %s9391_s28, %s9387_s27 }
  0x51   :  { %p9394_p10 = por %p9393_p9, %p9392_p8 }
  0x53   :  { %p9395_p11 = pnand %p9394_p10, %p9388_p7 }
  0x55   :  { %9398 = shalt.err (!%p9395_p11)
}
  0x56   :  { %69 = dma.hbm_to_vmem [thread:$0]  %s10575_s4, 48, %s67_s11, [#allocation9]  }
  0x57   :  { %9421 = dma.done.wait [#allocation3], 6144  }
  0x58   :  { %9422 = vsyncadd [#allocation3], 4294961152 }
  0x59   :  { %9423 = dma.done.wait [#allocation6], 37056  }
  0x5a   :  { %9424 = vsyncadd [#allocation6], 4294930240 }
  0x5b   :  { %9425 = dma.done.wait [#allocation9], 36912  }
  0x5c   :  { %9426 = vsyncadd [#allocation9], 4294930384  ;;  %v8473_v0 = vld [vmem:[#allocation5 + $0x4] ss:$48 sps:$4 sm:$0xff]   ;;  %v8475_v1 = vld [vmem:[#allocation5 + $0xc] ss:$48 sps:$4 sm:$0xff]  }
  0x5d   :  { %756 = vmatprep.subr.bf16.mxu0 %v8473_v0  ;;  %v8477_v2 = vld [vmem:[#allocation5] ss:$48 sps:$4 sm:$0xff]   ;;  %v8478_v3 = vld [vmem:[#allocation5 + $0x8] ss:$48 sps:$4 sm:$0xff]   ;;  %982 = vmatprep.subr.bf16.mxu1 %v8475_v1  ;;  %v8479_v4 = vld [vmem:[#allocation5 + $0x64] ss:$48 sps:$4 sm:$0xff]  }
  0x5e   :  { %757 = vmatpush1.bf16.msra.mxu0 %v8477_v2  ;;  %983 = vmatpush1.bf16.msra.mxu1 %v8478_v3  ;;  %v8481_v5 = vld [vmem:[#allocation5 + $0x6c] ss:$48 sps:$4 sm:$0xff]   ;;  %v8483_v6 = vld [vmem:[#allocation5 + $0x60] ss:$48 sps:$4 sm:$0xff]   ;;  %v8484_v7 = vld [vmem:[#allocation5 + $0x68] ss:$48 sps:$4 sm:$0xff]  }
  0x5f   :  { %758 = vmatprep.subr.bf16.mxu0 %v8479_v4  ;;  %984 = vmatprep.subr.bf16.mxu1 %v8481_v5  ;;  %v8485_v8 = vld [vmem:[#allocation5 + $0xc4] ss:$48 sps:$4 sm:$0xff]   ;;  %v8487_v9 = vld [vmem:[#allocation5 + $0xcc] ss:$48 sps:$4 sm:$0xff]   ;;  %v8489_v10 = vld [vmem:[#allocation5 + $0xc0] ss:$48 sps:$4 sm:$0xff]  }
  0x60   :  { %v8490_v11 = vld [vmem:[#allocation5 + $0xc8] ss:$48 sps:$4 sm:$0xff]   ;;  %v8491_v12 = vld [vmem:[#allocation5 + $0x124] ss:$48 sps:$4 sm:$0xff]   ;;  %v8493_v13 = vld [vmem:[#allocation5 + $0x12c] ss:$48 sps:$4 sm:$0xff]  }
  0x61   :  { %v8495_v14 = vld [vmem:[#allocation5 + $0x120] ss:$48 sps:$4 sm:$0xff]   ;;  %v8496_v15 = vld [vmem:[#allocation5 + $0x128] ss:$48 sps:$4 sm:$0xff]   ;;  %v8497_v16 = vld [vmem:[#allocation5 + $0x184] ss:$48 sps:$4 sm:$0xff]  }
  0x62   :  { %759 = vmatpush1.bf16.msra.mxu0 %v8483_v6  ;;  %985 = vmatpush1.bf16.msra.mxu1 %v8484_v7  ;;  %v8499_v17 = vld [vmem:[#allocation5 + $0x18c] ss:$48 sps:$4 sm:$0xff]   ;;  %v8501_v18 = vld [vmem:[#allocation5 + $0x180] ss:$48 sps:$4 sm:$0xff]   ;;  %v8502_v19 = vld [vmem:[#allocation5 + $0x188] ss:$48 sps:$4 sm:$0xff]  }
  0x63   :  { %760 = vmatprep.subr.bf16.mxu0 %v8485_v8  ;;  %986 = vmatprep.subr.bf16.mxu1 %v8487_v9  ;;  %v8503_v20 = vld [vmem:[#allocation5 + $0x1e4] ss:$48 sps:$4 sm:$0xff]   ;;  %v8505_v21 = vld [vmem:[#allocation5 + $0x1ec] ss:$48 sps:$4 sm:$0xff]   ;;  %v8507_v22 = vld [vmem:[#allocation5 + $0x1e0] ss:$48 sps:$4 sm:$0xff]  }
  0x64   :  { %v8508_v23 = vld [vmem:[#allocation5 + $0x1e8] ss:$48 sps:$4 sm:$0xff]   ;;  %v8509_v24 = vld [vmem:[#allocation5 + $0x244] ss:$48 sps:$4 sm:$0xff]   ;;  %v8511_v25 = vld [vmem:[#allocation5 + $0x24c] ss:$48 sps:$4 sm:$0xff]  }
  0x65   :  { %v8513_v26 = vld [vmem:[#allocation5 + $0x240] ss:$48 sps:$4 sm:$0xff]   ;;  %v8514_v27 = vld [vmem:[#allocation5 + $0x248] ss:$48 sps:$4 sm:$0xff]   ;;  %v8515_v28 = vld [vmem:[#allocation5 + $0x2a4] ss:$48 sps:$4 sm:$0xff]  }
  0x66   :  { %761 = vmatpush1.bf16.msra.mxu0 %v8489_v10  ;;  %987 = vmatpush1.bf16.msra.mxu1 %v8490_v11  ;;  %v8517_v29 = vld [vmem:[#allocation5 + $0x2ac] ss:$48 sps:$4 sm:$0xff]   ;;  %v8519_v30 = vld [vmem:[#allocation5 + $0x2a0] ss:$48 sps:$4 sm:$0xff]   ;;  %v8520_v31 = vld [vmem:[#allocation5 + $0x2a8] ss:$48 sps:$4 sm:$0xff]  }
  0x67   :  { %762 = vmatprep.subr.bf16.mxu0 %v8491_v12  ;;  %988 = vmatprep.subr.bf16.mxu1 %v8493_v13  ;;  %v8521_v32 = vld [vmem:[#allocation5 + $0x304] ss:$48 sps:$4 sm:$0xff]   ;;  %v8523_v33 = vld [vmem:[#allocation5 + $0x30c] ss:$48 sps:$4 sm:$0xff]   ;;  %v8525_v34 = vld [vmem:[#allocation5 + $0x300] ss:$48 sps:$4 sm:$0xff]  }
  0x68   :  { %v8526_v35 = vld [vmem:[#allocation5 + $0x308] ss:$48 sps:$4 sm:$0xff]   ;;  %v8527_v36 = vld [vmem:[#allocation5 + $0x364] ss:$48 sps:$4 sm:$0xff]   ;;  %v8529_v37 = vld [vmem:[#allocation5 + $0x36c] ss:$48 sps:$4 sm:$0xff]  }
  0x69   :  { %v8531_v38 = vld [vmem:[#allocation5 + $0x360] ss:$48 sps:$4 sm:$0xff]   ;;  %v8532_v39 = vld [vmem:[#allocation5 + $0x368] ss:$48 sps:$4 sm:$0xff]   ;;  %v8533_v40 = vld [vmem:[#allocation5 + $0x3c4] ss:$48 sps:$4 sm:$0xff]  }
  0x6a   :  { %763 = vmatpush1.bf16.msra.mxu0 %v8495_v14  ;;  %989 = vmatpush1.bf16.msra.mxu1 %v8496_v15  ;;  %v8535_v41 = vld [vmem:[#allocation5 + $0x3cc] ss:$48 sps:$4 sm:$0xff]   ;;  %v8537_v42 = vld [vmem:[#allocation5 + $0x3c0] ss:$48 sps:$4 sm:$0xff]   ;;  %v8538_v43 = vld [vmem:[#allocation5 + $0x3c8] ss:$48 sps:$4 sm:$0xff]  }
  0x6b   :  { %764 = vmatprep.subr.bf16.mxu0 %v8497_v16  ;;  %990 = vmatprep.subr.bf16.mxu1 %v8499_v17  ;;  %v8539_v44 = vld [vmem:[#allocation5 + $0x424] ss:$48 sps:$4 sm:$0xff]   ;;  %v8541_v45 = vld [vmem:[#allocation5 + $0x42c] ss:$48 sps:$4 sm:$0xff]   ;;  %v8543_v47 = vld [vmem:[#allocation5 + $0x420] ss:$48 sps:$4 sm:$0xff]  }
  0x6c   :  { %v87_v46 = vld [vmem:[#allocation2 + $0x8] sm:$0xff]  ;;  %v90_v48 = vld [vmem:[#allocation2 + $0x20] sm:$0xff]  ;;  %v89_v4 = vld [vmem:[#allocation2 + $0x18] sm:$0xff]  ;;  %s9441_s4 = smov [#allocation11]  }
  0x6d   :  { %v8544_v49 = vld [vmem:[#allocation5 + $0x428] ss:$48 sps:$4 sm:$0xff]   ;;  %v9535_v50 = vpack.c.bf16 %v90_v48, %v87_v46  ;;  %v8545_v51 = vld [vmem:[#allocation5 + $0x484] ss:$48 sps:$4 sm:$0xff]   ;;  %v8547_v52 = vld [vmem:[#allocation5 + $0x48c] ss:$48 sps:$4 sm:$0xff]  }
  0x6e   :  { %765 = vmatpush1.bf16.msra.mxu0 %v8501_v18  ;;  %991 = vmatpush1.bf16.msra.mxu1 %v8502_v19  ;;  %v8549_v53 = vld [vmem:[#allocation5 + $0x480] ss:$48 sps:$4 sm:$0xff]   ;;  %v8550_v54 = vld [vmem:[#allocation5 + $0x488] ss:$48 sps:$4 sm:$0xff]   ;;  %v8551_v55 = vld [vmem:[#allocation5 + $0x4e4] ss:$48 sps:$4 sm:$0xff]  }
  0x6f   :  { %766 = vmatprep.subr.bf16.mxu0 %v8503_v20  ;;  %992 = vmatprep.subr.bf16.mxu1 %v8505_v21  ;;  %10644 = vst [vmem:[#allocation16_spill] sm:$0xff] %v9535_v50  ;;  %v8553_v56 = vld [vmem:[#allocation5 + $0x4ec] ss:$48 sps:$4 sm:$0xff]   ;;  %v8555_v57 = vld [vmem:[#allocation5 + $0x4e0] ss:$48 sps:$4 sm:$0xff]   ;;  %s6942_s6 = sshll.u32 %s9441_s4, 4  ;;  %s6943_s6 = int_to_ptr.vmem [resolvable:$true] %s6942_s6 }
  0x70   :  { %788 = vmatprep.mubr.bf16.mxu0 %v9535_v50  ;;  %1014 = vmatprep.mubr.bf16.mxu1 %v9535_v50  ;;  %v8556_v58 = vld [vmem:[#allocation5 + $0x4e8] ss:$48 sps:$4 sm:$0xff]   ;;  %v8557_v59 = vld [vmem:[#allocation5 + $0x544] ss:$48 sps:$4 sm:$0xff]   ;;  %v8559_v60 = vld [vmem:[#allocation5 + $0x54c] ss:$48 sps:$4 sm:$0xff]   ;;  %p9404_p13 = scmp.lt.s32.totalorder %s6943_s6, %s6943_s6 }
  0x71   :  { %v8561_v61 = vld [vmem:[#allocation5 + $0x540] ss:$48 sps:$4 sm:$0xff]   ;;  %v8562_v62 = vld [vmem:[#allocation5 + $0x548] ss:$48 sps:$4 sm:$0xff]   ;;  %v8563_v63 = vld [vmem:[#allocation5 + $0x5a4] ss:$48 sps:$4 sm:$0xff]  }
  0x72   :  { %767 = vmatpush1.bf16.msra.mxu0 %v8507_v22  ;;  %993 = vmatpush1.bf16.msra.mxu1 %v8508_v23  ;;  %v8565_v0 = vld [vmem:[#allocation5 + $0x5ac] ss:$48 sps:$4 sm:$0xff]   ;;  %v8567_v1 = vld [vmem:[#allocation5 + $0x5a0] ss:$48 sps:$4 sm:$0xff]   ;;  %v8568_v2 = vld [vmem:[#allocation5 + $0x5a8] ss:$48 sps:$4 sm:$0xff]  }
  0x73   :  { %768 = vmatprep.subr.bf16.mxu0 %v8509_v24  ;;  %994 = vmatprep.subr.bf16.mxu1 %v8511_v25  ;;  %v86_v3 = vld [vmem:[#allocation2] sm:$0xff]  ;;  %v93_v6 = vld [vmem:[#allocation2 + $0x38] sm:$0xff]  ;;  %v96_v7 = vld [vmem:[#allocation2 + $0x50] sm:$0xff]  ;;  %s9399_s7 = scalar_lea.vmem %s6943_s6, 6144 }
  0x74   :  { %v8571_v5 = vld [vmem:[#allocation5 + $0x604] ss:$48 sps:$4 sm:$0xff]   ;;  %v8586_v8 = vld [vmem:[#allocation5 + $0x60c] ss:$48 sps:$4 sm:$0xff]   ;;  %v9539_v9 = vpack.c.bf16 %v89_v4, %v86_v3  ;;  %v8569_v10 = vld [vmem:[#allocation5 + $0x600] ss:$48 sps:$4 sm:$0xff]   ;;  %v9541_v11 = vpack.c.bf16 %v96_v7, %v93_v6  ;;  %p9400_p12 = scmp.ne.s32.totalorder %s6943_s6, %s9399_s7  ;;  %p9405_p0 = scmp.lt.s32.totalorder %s9399_s7, %s9399_s7 }
  0x75   :  { %v8574_v12 = vld [vmem:[#allocation5 + $0x664] ss:$48 sps:$4 sm:$0xff]   ;;  %v8584_v14 = vld [vmem:[#allocation5 + $0x608] ss:$48 sps:$4 sm:$0xff]   ;;  %v8589_v16 = vld [vmem:[#allocation5 + $0x66c] ss:$48 sps:$4 sm:$0xff]  }
  0x76   :  { %769 = vmatpush1.bf16.msra.mxu0 %v8513_v26  ;;  %995 = vmatpush1.bf16.msra.mxu1 %v8514_v27  ;;  %10645 = vst [vmem:[#allocation17_spill] sm:$0xff] %v9539_v9  ;;  %10646 = vst [vmem:[#allocation18_spill] sm:$0xff] %v9541_v11  ;;  %v92_v13 = vld [vmem:[#allocation2 + $0x30] sm:$0xff]  ;;  %v95_v15 = vld [vmem:[#allocation2 + $0x48] sm:$0xff]  ;;  %p9406_p1 = por %p9405_p0, %p9404_p13 }
  0x77   :  { %770 = vmatprep.subr.bf16.mxu0 %v8515_v28  ;;  %996 = vmatprep.subr.bf16.mxu1 %v8517_v29  ;;  %v8572_v17 = vld [vmem:[#allocation5 + $0x660] ss:$48 sps:$4 sm:$0xff]   ;;  %v99_v18 = vld [vmem:[#allocation2 + $0x68] sm:$0xff]  ;;  %v8577_v20 = vld [vmem:[#allocation5 + $0x6c4] ss:$48 sps:$4 sm:$0xff]   ;;  %v9547_v22 = vpack.c.bf16 %v95_v15, %v92_v13 }
  0x78   :  { %v102_v19 = vld [vmem:[#allocation2 + $0x80] sm:$0xff]  ;;  %v8587_v21 = vld [vmem:[#allocation5 + $0x668] ss:$48 sps:$4 sm:$0xff]   ;;  %v8595_v25 = vld [vmem:[#allocation5 + $0x6cc] ss:$48 sps:$4 sm:$0xff]   ;;  %p9407_p2 = pnand %p9406_p1, %p9400_p12 }
  0x79   :  { %10647 = vst [vmem:[#allocation19_spill] sm:$0xff] %v9547_v22  ;;  %v9549_v23 = vpack.c.bf16 %v102_v19, %v99_v18  ;;  %v8575_v24 = vld [vmem:[#allocation5 + $0x6c0] ss:$48 sps:$4 sm:$0xff]   ;;  %v101_v27 = vld [vmem:[#allocation2 + $0x78] sm:$0xff]  ;;  %v8580_v28 = vld [vmem:[#allocation5 + $0x724] ss:$48 sps:$4 sm:$0xff]  }
  0x7a   :  { %771 = vmatpush1.bf16.msra.mxu0 %v8519_v30  ;;  %997 = vmatpush1.bf16.msra.mxu1 %v8520_v31  ;;  %v98_v26 = vld [vmem:[#allocation2 + $0x60] sm:$0xff]  ;;  %v8593_v29 = vld [vmem:[#allocation5 + $0x6c8] ss:$48 sps:$4 sm:$0xff]   ;;  %v8598_v30 = vld [vmem:[#allocation5 + $0x72c] ss:$48 sps:$4 sm:$0xff]  }
  0x7b   :  { %772 = vmatprep.subr.bf16.mxu0 %v8521_v32  ;;  %998 = vmatprep.subr.bf16.mxu1 %v8523_v33  ;;  %10648 = vst [vmem:[#allocation20_spill] sm:$0xff] %v9549_v23  ;;  %v105_v31 = vld [vmem:[#allocation2 + $0x98] sm:$0xff]  ;;  %v108_v32 = vld [vmem:[#allocation2 + $0xb0] sm:$0xff]  ;;  %v114_v46 = vld [vmem:[#allocation2 + $0xe0] sm:$0xff] }
  0x7c   :  { %v8578_v33 = vld [vmem:[#allocation5 + $0x720] ss:$48 sps:$4 sm:$0xff]   ;;  %v8601_v48 = vld [vmem:[#allocation5 + $0x844] ss:$48 sps:$4 sm:$0xff]   ;;  %v8622_v3 = vld [vmem:[#allocation5 + $0x1c] ss:$48 sps:$4 sm:$0xff]  }
  0x7d   :  { %v116_v4 = vld [vmem:[#allocation2 + $0xf0] sm:$0xff]  ;;  %v123_v6 = vld [vmem:[#allocation2 + $0x128] sm:$0xff]  ;;  %v126_v7 = vld [vmem:[#allocation2 + $0x140] sm:$0xff] }
  0x7e   :  { %773 = vmatpush1.bf16.msra.mxu0 %v8525_v34  ;;  %999 = vmatpush1.bf16.msra.mxu1 %v8526_v35  ;;  %v8583_v34 = vld [vmem:[#allocation5 + $0x784] ss:$48 sps:$4 sm:$0xff]   ;;  %v8596_v35 = vld [vmem:[#allocation5 + $0x728] ss:$48 sps:$4 sm:$0xff]  }
  0x7f   :  { %774 = vmatprep.subr.bf16.mxu0 %v8527_v36  ;;  %1000 = vmatprep.subr.bf16.mxu1 %v8529_v37  ;;  %v9555_v36 = vpack.c.bf16 %v101_v27, %v98_v26  ;;  %v9557_v37 = vpack.c.bf16 %v108_v32, %v105_v31  ;;  %v125_v13 = vld [vmem:[#allocation2 + $0x138] sm:$0xff]  ;;  %v132_v15 = vld [vmem:[#allocation2 + $0x170] sm:$0xff]  ;;  %v131_v19 = vld [vmem:[#allocation2 + $0x168] sm:$0xff] }
  0x80   :  { %v128_v18 = vld [vmem:[#allocation2 + $0x150] sm:$0xff]  ;;  %v8626_v32 = vld [vmem:[#allocation5 + $0x78] ss:$48 sps:$4 sm:$0xff]  }
  0x81   :  { %10649 = vst [vmem:[#allocation21_spill] sm:$0xff] %v9555_v36  ;;  %10650 = vst [vmem:[#allocation22_spill] sm:$0xff] %v9557_v37  ;;  %v8617_v27 = vld [vmem:[#allocation5 + $0x10] ss:$48 sps:$4 sm:$0xff]  }
  0x82   :  { %775 = vmatpush1.bf16.msra.mxu0 %v8531_v38  ;;  %1001 = vmatpush1.bf16.msra.mxu1 %v8532_v39  ;;  %v8581_v38 = vld [vmem:[#allocation5 + $0x780] ss:$48 sps:$4 sm:$0xff]   ;;  %v8604_v39 = vld [vmem:[#allocation5 + $0x78c] ss:$48 sps:$4 sm:$0xff]  }
  0x83   :  { %776 = vmatprep.subr.bf16.mxu0 %v8533_v40  ;;  %1002 = vmatprep.subr.bf16.mxu1 %v8535_v41  ;;  %v104_v40 = vld [vmem:[#allocation2 + $0x90] sm:$0xff]  ;;  %v107_v41 = vld [vmem:[#allocation2 + $0xa8] sm:$0xff] }
  0x84   :  { %v8623_v31 = vld [vmem:[#allocation5 + $0x70] ss:$48 sps:$4 sm:$0xff]  }
  0x86   :  { %777 = vmatpush1.bf16.msra.mxu0 %v8537_v42  ;;  %1003 = vmatpush1.bf16.msra.mxu1 %v8538_v43  ;;  %v8592_v42 = vld [vmem:[#allocation5 + $0x7e4] ss:$48 sps:$4 sm:$0xff]   ;;  %v8602_v43 = vld [vmem:[#allocation5 + $0x788] ss:$48 sps:$4 sm:$0xff]  }
  0x87   :  { %778 = vmatprep.subr.bf16.mxu0 %v8539_v44  ;;  %1004 = vmatprep.subr.bf16.mxu1 %v8541_v45  ;;  %v111_v44 = vld [vmem:[#allocation2 + $0xc8] sm:$0xff] }
  0x88   :  { %v8607_v45 = vld [vmem:[#allocation5 + $0x7ec] ss:$48 sps:$4 sm:$0xff]  }
  0x8a   :  { %779 = vmatpush1.bf16.msra.mxu0 %v8543_v47  ;;  %1005 = vmatpush1.bf16.msra.mxu1 %v8544_v49  ;;  %v8590_v47 = vld [vmem:[#allocation5 + $0x7e0] ss:$48 sps:$4 sm:$0xff]   ;;  %v8605_v49 = vld [vmem:[#allocation5 + $0x7e8] ss:$48 sps:$4 sm:$0xff]  }
  0x8b   :  { %780 = vmatprep.subr.bf16.mxu0 %v8545_v51  ;;  %1006 = vmatprep.subr.bf16.mxu1 %v8547_v52  ;;  %v9563_v51 = vpack.c.bf16 %v107_v41, %v104_v40  ;;  %v9565_v52 = vpack.c.bf16 %v114_v46, %v111_v44  ;;  %v8629_v40 = vld [vmem:[#allocation5 + $0xd0] ss:$48 sps:$4 sm:$0xff]   ;;  %v8632_v41 = vld [vmem:[#allocation5 + $0xd8] ss:$48 sps:$4 sm:$0xff]  }
  0x8c   :  { %v8635_v44 = vld [vmem:[#allocation5 + $0x130] ss:$48 sps:$4 sm:$0xff]  }
  0x8d   :  { %10651 = vst [vmem:[#allocation23_spill] sm:$0xff] %v9563_v51  ;;  %10652 = vst [vmem:[#allocation24_spill] sm:$0xff] %v9565_v52  ;;  %v100_v46 = vld [vmem:[#allocation2 + $0x70] sm:$0xff] }
  0x8e   :  { %781 = vmatpush1.bf16.msra.mxu0 %v8549_v53  ;;  %1007 = vmatpush1.bf16.msra.mxu1 %v8550_v54  ;;  %v8599_v53 = vld [vmem:[#allocation5 + $0x840] ss:$48 sps:$4 sm:$0xff]   ;;  %v8610_v54 = vld [vmem:[#allocation5 + $0x8a4] ss:$48 sps:$4 sm:$0xff]  }
  0x8f   :  { %782 = vmatprep.subr.bf16.mxu0 %v8551_v55  ;;  %1008 = vmatprep.subr.bf16.mxu1 %v8553_v56  ;;  %v8613_v55 = vld [vmem:[#allocation5 + $0x84c] ss:$48 sps:$4 sm:$0xff]   ;;  %v110_v56 = vld [vmem:[#allocation2 + $0xc0] sm:$0xff] }
  0x92   :  { %783 = vmatpush1.bf16.msra.mxu0 %v8555_v57  ;;  %1009 = vmatpush1.bf16.msra.mxu1 %v8556_v58  ;;  %v8611_v57 = vld [vmem:[#allocation5 + $0x848] ss:$48 sps:$4 sm:$0xff]   ;;  %v8616_v58 = vld [vmem:[#allocation5 + $0x8ac] ss:$48 sps:$4 sm:$0xff]  }
  0x93   :  { %784 = vmatprep.subr.bf16.mxu0 %v8557_v59  ;;  %1010 = vmatprep.subr.bf16.mxu1 %v8559_v60  ;;  %v113_v59 = vld [vmem:[#allocation2 + $0xd8] sm:$0xff] }
  0x94   :  { %v117_v60 = vld [vmem:[#allocation2 + $0xf8] sm:$0xff] }
  0x96   :  { %785 = vmatpush1.bf16.msra.mxu0 %v8561_v61  ;;  %1011 = vmatpush1.bf16.msra.mxu1 %v8562_v62  ;;  %v120_v61 = vld [vmem:[#allocation2 + $0x110] sm:$0xff] }
  0x97   :  { %786 = vmatprep.subr.bf16.mxu0 %v8563_v63  ;;  %1012 = vmatprep.subr.bf16.mxu1 %v8565_v0  ;;  %v8608_v62 = vld [vmem:[#allocation5 + $0x8a0] ss:$48 sps:$4 sm:$0xff]   ;;  %v8614_v63 = vld [vmem:[#allocation5 + $0x8a8] ss:$48 sps:$4 sm:$0xff]   ;;  %v8619_v0 = vld [vmem:[#allocation5 + $0x14] ss:$48 sps:$4 sm:$0xff]  }
  0x9a   :  { %787 = vmatpush1.bf16.msra.mxu0 %v8567_v1  ;;  %1013 = vmatpush1.bf16.msra.mxu1 %v8568_v2  ;;  %v9571_v1 = vpack.c.bf16 %v113_v59, %v110_v56  ;;  %v9573_v2 = vpack.c.bf16 %v120_v61, %v117_v60  ;;  %v8649_v56 = vld [vmem:[#allocation5 + $0x1f4] ss:$48 sps:$4 sm:$0xff]   ;;  %v8650_v59 = vld [vmem:[#allocation5 + $0x1f8] ss:$48 sps:$4 sm:$0xff]  }
  0x9b   :  { %869 = vmatprep.subr.bf16.mxu0 %v8571_v5  ;;  %1095 = vmatprep.subr.bf16.mxu1 %v8586_v8  ;;  %v119_v5 = vld [vmem:[#allocation2 + $0x108] sm:$0xff]  ;;  %v106_v60 = vld [vmem:[#allocation2 + $0xa0] sm:$0xff]  ;;  %v109_v61 = vld [vmem:[#allocation2 + $0xb8] sm:$0xff] }
  0x9c   :  { %10653 = vst [vmem:[#allocation25_spill] sm:$0xff] %v9571_v1  ;;  %10654 = vst [vmem:[#allocation26_spill] sm:$0xff] %v9573_v2  ;;  %v9579_v8 = vpack.c.bf16 %v119_v5, %v116_v4  ;;  %v9619_v4 = vpack.c.bf16 %v109_v61, %v106_v60  ;;  %v8661_v5 = vld [vmem:[#allocation5 + $0x2b4] ss:$48 sps:$4 sm:$0xff]   ;;  %v133_v61 = vld [vmem:[#allocation2 + $0x178] sm:$0xff] }
  0x9d   :  { %789 = vmatmul.mubr.bf16.vlgmr.msra.gmra.mrb[0].mxu0 %v9539_v9  ;;  %1015 = vmatmul.mubr.bf16.vlgmr.msra.gmra.mrb[0].mxu1 %v9539_v9  ;;  %v130_v60 = vld [vmem:[#allocation2 + $0x160] sm:$0xff] }
  0x9e   :  { %870 = vmatpush1.bf16.msra.mxu0 %v8569_v10  ;;  %798 = vmatprep.mubr.bf16.mxu0 %v9541_v11  ;;  %10655 = vst [vmem:[#allocation27_spill] sm:$0xff] %v9579_v8  ;;  %v9581_v10 = vpack.c.bf16 %v126_v7, %v123_v6  ;;  %10663 = vst [vmem:[#allocation35_spill] sm:$0xff] %v9619_v4  ;;  %v8664_v6 = vld [vmem:[#allocation5 + $0x2bc] ss:$48 sps:$4 sm:$0xff]   ;;  %v8659_v7 = vld [vmem:[#allocation5 + $0x2b0] ss:$48 sps:$4 sm:$0xff]  }
  0x9f   :  { %1024 = vmatprep.mubr.bf16.mxu1 %v9541_v11  ;;  %871 = vmatprep.subr.bf16.mxu0 %v8574_v12  ;;  %v122_v12 = vld [vmem:[#allocation2 + $0x120] sm:$0xff] }
  0xa0   :  { %1096 = vmatpush1.bf16.msra.mxu1 %v8584_v14  ;;  %10656 = vst [vmem:[#allocation28_spill] sm:$0xff] %v9581_v10  ;;  %v129_v14 = vld [vmem:[#allocation2 + $0x158] sm:$0xff] }
  0xa1   :  { %1097 = vmatprep.subr.bf16.mxu1 %v8589_v16  ;;  %v9587_v16 = vpack.c.bf16 %v125_v13, %v122_v12  ;;  %v8662_v12 = vld [vmem:[#allocation5 + $0x2b8] ss:$48 sps:$4 sm:$0xff]   ;;  %v112_v13 = vld [vmem:[#allocation2 + $0xd0] sm:$0xff] }
  0xa2   :  { %872 = vmatpush1.bf16.msra.mxu0 %v8572_v17  ;;  %v9589_v17 = vpack.c.bf16 %v132_v15, %v129_v14  ;;  %v115_v14 = vld [vmem:[#allocation2 + $0xe8] sm:$0xff]  ;;  %v8667_v15 = vld [vmem:[#allocation5 + $0x314] ss:$48 sps:$4 sm:$0xff]  }
  0xa3   :  { %873 = vmatprep.subr.bf16.mxu0 %v8577_v20  ;;  %10657 = vst [vmem:[#allocation29_spill] sm:$0xff] %v9587_v16  ;;  %v9595_v20 = vpack.c.bf16 %v131_v19, %v128_v18  ;;  %v8670_v18 = vld [vmem:[#allocation5 + $0x31c] ss:$48 sps:$4 sm:$0xff]   ;;  %v8665_v19 = vld [vmem:[#allocation5 + $0x310] ss:$48 sps:$4 sm:$0xff]  }
  0xa4   :  { %1098 = vmatpush1.bf16.msra.mxu1 %v8587_v21  ;;  %10658 = vst [vmem:[#allocation30_spill] sm:$0xff] %v9589_v17  ;;  %v88_v21 = vld [vmem:[#allocation2 + $0x10] sm:$0xff] }
  0xa5   :  { %799 = vmatmul.mubr.bf16.gmra.mrb[4].mxu0 %v9547_v22  ;;  %1025 = vmatmul.mubr.bf16.gmra.mrb[4].mxu1 %v9547_v22  ;;  %10659 = vst [vmem:[#allocation31_spill] sm:$0xff] %v9595_v20 }
  0xa6   :  { %808 = vmatprep.mubr.bf16.mxu0 %v9549_v23  ;;  %1034 = vmatprep.mubr.bf16.mxu1 %v9549_v23 }
  0xa7   :  { %874 = vmatpush1.bf16.msra.mxu0 %v8575_v24  ;;  %1099 = vmatprep.subr.bf16.mxu1 %v8595_v25  ;;  %v10577_v24 = vmov 0   ;;  %v91_v25 = vld [vmem:[#allocation2 + $0x28] sm:$0xff] }
  0xa8   :  { %875 = vmatprep.subr.bf16.mxu0 %v8580_v28  ;;  %1100 = vmatpush1.bf16.msra.mxu1 %v8593_v29  ;;  %v9601_v26 = vpack.c.bf16 %v91_v25, %v88_v21  ;;  %v8620_v28 = vld [vmem:[#allocation5 + $0x18] ss:$48 sps:$4 sm:$0xff]   ;;  %v8625_v29 = vld [vmem:[#allocation5 + $0x74] ss:$48 sps:$4 sm:$0xff]   ;;  %v9625_v25 = vpack.c.bf16 %v115_v14, %v112_v13 }
  0xa9   :  { %1101 = vmatprep.subr.bf16.mxu1 %v8598_v30  ;;  %v8628_v30 = vld [vmem:[#allocation5 + $0x7c] ss:$48 sps:$4 sm:$0xff]   ;;  %v8668_v21 = vld [vmem:[#allocation5 + $0x318] ss:$48 sps:$4 sm:$0xff]   ;;  %v8715_v14 = vld [vmem:[#allocation5 + $0x614] ss:$48 sps:$4 sm:$0xff]  }
  0xaa   :  { %10660 = vst [vmem:[#allocation32_spill] sm:$0xff] %v9601_v26  ;;  %10664 = vst [vmem:[#allocation36_spill] sm:$0xff] %v9625_v25  ;;  %v8710_v13 = vld [vmem:[#allocation5 + $0x5b8] ss:$48 sps:$4 sm:$0xff]  }
  0xab   :  { %876 = vmatpush1.bf16.msra.mxu0 %v8578_v33  ;;  %v94_v33 = vld [vmem:[#allocation2 + $0x40] sm:$0xff] }
  0xac   :  { %877 = vmatprep.subr.bf16.mxu0 %v8583_v34  ;;  %1102 = vmatpush1.bf16.msra.mxu1 %v8596_v35  ;;  %v97_v34 = vld [vmem:[#allocation2 + $0x58] sm:$0xff]  ;;  %v8631_v35 = vld [vmem:[#allocation5 + $0xd4] ss:$48 sps:$4 sm:$0xff]  }
  0xad   :  { %809 = vmatmul.mubr.bf16.gmra.mrb[8].mxu0 %v9555_v36  ;;  %1035 = vmatmul.mubr.bf16.gmra.mrb[8].mxu1 %v9555_v36 }
  0xae   :  { %818 = vmatprep.mubr.bf16.mxu0 %v9557_v37  ;;  %1044 = vmatprep.mubr.bf16.mxu1 %v9557_v37 }
  0xaf   :  { %878 = vmatpush1.bf16.msra.mxu0 %v8581_v38  ;;  %1103 = vmatprep.subr.bf16.mxu1 %v8604_v39  ;;  %v8634_v38 = vld [vmem:[#allocation5 + $0xdc] ss:$48 sps:$4 sm:$0xff]   ;;  %v9607_v39 = vpack.c.bf16 %v97_v34, %v94_v33  ;;  %v8679_v33 = vld [vmem:[#allocation5 + $0x3d4] ss:$48 sps:$4 sm:$0xff]  }
  0xb0   :  { %879 = vmatprep.subr.bf16.mxu0 %v8592_v42  ;;  %1104 = vmatpush1.bf16.msra.mxu1 %v8602_v43  ;;  %v8637_v42 = vld [vmem:[#allocation5 + $0x134] ss:$48 sps:$4 sm:$0xff]   ;;  %v8640_v43 = vld [vmem:[#allocation5 + $0x13c] ss:$48 sps:$4 sm:$0xff]  }
  0xb1   :  { %1105 = vmatprep.subr.bf16.mxu1 %v8607_v45  ;;  %10661 = vst [vmem:[#allocation33_spill] sm:$0xff] %v9607_v39  ;;  %v8638_v45 = vld [vmem:[#allocation5 + $0x138] ss:$48 sps:$4 sm:$0xff]   ;;  %v8682_v34 = vld [vmem:[#allocation5 + $0x3dc] ss:$48 sps:$4 sm:$0xff]  }
  0xb3   :  { %880 = vmatpush1.bf16.msra.mxu0 %v8590_v47  ;;  %v103_v47 = vld [vmem:[#allocation2 + $0x88] sm:$0xff] }
  0xb4   :  { %881 = vmatprep.subr.bf16.mxu0 %v8601_v48  ;;  %1106 = vmatpush1.bf16.msra.mxu1 %v8605_v49  ;;  %v8643_v48 = vld [vmem:[#allocation5 + $0x194] ss:$48 sps:$4 sm:$0xff]   ;;  %v8646_v49 = vld [vmem:[#allocation5 + $0x19c] ss:$48 sps:$4 sm:$0xff]  }
  0xb5   :  { %819 = vmatmul.mubr.bf16.gmra.mrb[12].mxu0 %v9563_v51  ;;  %1045 = vmatmul.mubr.bf16.gmra.mrb[12].mxu1 %v9563_v51 }
  0xb6   :  { %828 = vmatprep.mubr.bf16.mxu0 %v9565_v52  ;;  %1054 = vmatprep.mubr.bf16.mxu1 %v9565_v52 }
  0xb7   :  { %882 = vmatpush1.bf16.msra.mxu0 %v8599_v53  ;;  %1107 = vmatprep.subr.bf16.mxu1 %v8613_v55  ;;  %v8641_v53 = vld [vmem:[#allocation5 + $0x190] ss:$48 sps:$4 sm:$0xff]   ;;  %v9613_v55 = vpack.c.bf16 %v103_v47, %v100_v46  ;;  %v127_v46 = vld [vmem:[#allocation2 + $0x148] sm:$0xff]  ;;  %v8691_v47 = vld [vmem:[#allocation5 + $0x494] ss:$48 sps:$4 sm:$0xff]  }
  0xb8   :  { %883 = vmatprep.subr.bf16.mxu0 %v8610_v54  ;;  %1108 = vmatpush1.bf16.msra.mxu1 %v8611_v57  ;;  %v8644_v54 = vld [vmem:[#allocation5 + $0x198] ss:$48 sps:$4 sm:$0xff]   ;;  %v8652_v57 = vld [vmem:[#allocation5 + $0x1fc] ss:$48 sps:$4 sm:$0xff]  }
  0xb9   :  { %1109 = vmatprep.subr.bf16.mxu1 %v8616_v58  ;;  %10662 = vst [vmem:[#allocation34_spill] sm:$0xff] %v9613_v55  ;;  %v8647_v58 = vld [vmem:[#allocation5 + $0x1f0] ss:$48 sps:$4 sm:$0xff]  }
  0xbb   :  { %884 = vmatpush1.bf16.msra.mxu0 %v8608_v62  ;;  %v8655_v62 = vld [vmem:[#allocation5 + $0x254] ss:$48 sps:$4 sm:$0xff]  }
  0xbc   :  { %1110 = vmatpush1.bf16.msra.mxu1 %v8614_v63  ;;  %2030 = vmatprep.subr.bf16.mxu0 %v8619_v0  ;;  %v8658_v63 = vld [vmem:[#allocation5 + $0x25c] ss:$48 sps:$4 sm:$0xff]   ;;  %v8653_v0 = vld [vmem:[#allocation5 + $0x250] ss:$48 sps:$4 sm:$0xff]  }
  0xbd   :  { %829 = vmatmul.mubr.bf16.gmra.mrb[16].mxu0 %v9571_v1  ;;  %1055 = vmatmul.mubr.bf16.gmra.mrb[16].mxu1 %v9571_v1 }
  0xbe   :  { %838 = vmatprep.mubr.bf16.mxu0 %v9573_v2  ;;  %1064 = vmatprep.mubr.bf16.mxu1 %v9573_v2 }
  0xbf   :  { %2256 = vmatprep.subr.bf16.mxu1 %v8622_v3  ;;  %v8656_v3 = vld [vmem:[#allocation5 + $0x258] ss:$48 sps:$4 sm:$0xff]  }
  0xc5   :  { %839 = vmatmul.mubr.bf16.gmra.mrb[20].mxu0 %v9579_v8  ;;  %1065 = vmatmul.mubr.bf16.gmra.mrb[20].mxu1 %v9579_v8 }
  0xc6   :  { %848 = vmatprep.mubr.bf16.mxu0 %v9581_v10  ;;  %1074 = vmatprep.mubr.bf16.mxu1 %v9581_v10 }
  0xcd   :  { %849 = vmatmul.mubr.bf16.gmra.mrb[24].mxu0 %v9587_v16  ;;  %1075 = vmatmul.mubr.bf16.gmra.mrb[24].mxu1 %v9587_v16 }
  0xce   :  { %858 = vmatprep.mubr.bf16.mxu0 %v9589_v17  ;;  %1084 = vmatprep.mubr.bf16.mxu1 %v9589_v17 }
  0xd5   :  { %859 = vmatmul.mubr.bf16.gmra.mrb[28].mxu0 %v9595_v20  ;;  %1085 = vmatmul.mubr.bf16.gmra.mrb[28].mxu1 %v9595_v20 }
  0xd6   :  { %901 = vmatprep.mubr.bf16.mxu0 %v10577_v24  ;;  %1127 = vmatprep.mubr.bf16.mxu1 %v10577_v24 }
  0xdd   :  { %902 = vmatmul.mubr.bf16.vlgmr.msra.gmra.mrb[0].mxu0 %v9601_v26  ;;  %1128 = vmatmul.mubr.bf16.vlgmr.msra.gmra.mrb[0].mxu1 %v9601_v26 }
  0xde   :  { %2031 = vmatpush1.bf16.msra.mxu0 %v8617_v27  ;;  %2257 = vmatpush1.bf16.msra.mxu1 %v8620_v28  ;;  %v8673_v27 = vld [vmem:[#allocation5 + $0x374] ss:$48 sps:$4 sm:$0xff]   ;;  %v8676_v28 = vld [vmem:[#allocation5 + $0x37c] ss:$48 sps:$4 sm:$0xff]  }
  0xdf   :  { %2032 = vmatprep.subr.bf16.mxu0 %v8625_v29  ;;  %2258 = vmatprep.subr.bf16.mxu1 %v8628_v30  ;;  %v8671_v29 = vld [vmem:[#allocation5 + $0x370] ss:$48 sps:$4 sm:$0xff]   ;;  %v8674_v30 = vld [vmem:[#allocation5 + $0x378] ss:$48 sps:$4 sm:$0xff]  }
  0xe0   :  { %911 = vmatprep.mubr.bf16.mxu0 %v10577_v24  ;;  %1137 = vmatprep.mubr.bf16.mxu1 %v10577_v24 }
  0xe2   :  { %2033 = vmatpush1.bf16.msra.mxu0 %v8623_v31  ;;  %2259 = vmatpush1.bf16.msra.mxu1 %v8626_v32  ;;  %v118_v31 = vld [vmem:[#allocation2 + $0x100] sm:$0xff]  ;;  %v121_v32 = vld [vmem:[#allocation2 + $0x118] sm:$0xff] }
  0xe3   :  { %2034 = vmatprep.subr.bf16.mxu0 %v8631_v35  ;;  %2260 = vmatprep.subr.bf16.mxu1 %v8634_v38  ;;  %v8677_v35 = vld [vmem:[#allocation5 + $0x3d0] ss:$48 sps:$4 sm:$0xff]   ;;  %v8680_v38 = vld [vmem:[#allocation5 + $0x3d8] ss:$48 sps:$4 sm:$0xff]  }
  0xe5   :  { %912 = vmatmul.mubr.bf16.gmra.mrb[4].mxu0 %v9607_v39  ;;  %1138 = vmatmul.mubr.bf16.gmra.mrb[4].mxu1 %v9607_v39 }
  0xe6   :  { %2035 = vmatpush1.bf16.msra.mxu0 %v8629_v40  ;;  %2261 = vmatpush1.bf16.msra.mxu1 %v8632_v41  ;;  %v9631_v40 = vpack.c.bf16 %v121_v32, %v118_v31  ;;  %v8685_v41 = vld [vmem:[#allocation5 + $0x434] ss:$48 sps:$4 sm:$0xff]   ;;  %v8719_v31 = vld [vmem:[#allocation5 + $0x6d0] ss:$48 sps:$4 sm:$0xff]   ;;  %v8739_v32 = vld [vmem:[#allocation5 + $0x6dc] ss:$48 sps:$4 sm:$0xff]  }
  0xe7   :  { %2036 = vmatprep.subr.bf16.mxu0 %v8637_v42  ;;  %2262 = vmatprep.subr.bf16.mxu1 %v8640_v43  ;;  %v8688_v42 = vld [vmem:[#allocation5 + $0x43c] ss:$48 sps:$4 sm:$0xff]   ;;  %v8683_v43 = vld [vmem:[#allocation5 + $0x430] ss:$48 sps:$4 sm:$0xff]  }
  0xe8   :  { %921 = vmatprep.mubr.bf16.mxu0 %v10577_v24  ;;  %1147 = vmatprep.mubr.bf16.mxu1 %v10577_v24  ;;  %10665 = vst [vmem:[#allocation37_spill] sm:$0xff] %v9631_v40 }
  0xea   :  { %2037 = vmatpush1.bf16.msra.mxu0 %v8635_v44  ;;  %2263 = vmatpush1.bf16.msra.mxu1 %v8638_v45  ;;  %v8686_v44 = vld [vmem:[#allocation5 + $0x438] ss:$48 sps:$4 sm:$0xff]   ;;  %v124_v45 = vld [vmem:[#allocation2 + $0x130] sm:$0xff] }
  0xeb   :  { %2038 = vmatprep.subr.bf16.mxu0 %v8643_v48  ;;  %2264 = vmatprep.subr.bf16.mxu1 %v8646_v49  ;;  %v8694_v48 = vld [vmem:[#allocation5 + $0x49c] ss:$48 sps:$4 sm:$0xff]   ;;  %v8689_v49 = vld [vmem:[#allocation5 + $0x490] ss:$48 sps:$4 sm:$0xff]  }
  0xed   :  { %922 = vmatmul.mubr.bf16.gmra.mrb[8].mxu0 %v9613_v55  ;;  %1148 = vmatmul.mubr.bf16.gmra.mrb[8].mxu1 %v9613_v55 }
  0xee   :  { %2039 = vmatpush1.bf16.msra.mxu0 %v8641_v53  ;;  %2265 = vmatpush1.bf16.msra.mxu1 %v8644_v54  ;;  %v8692_v53 = vld [vmem:[#allocation5 + $0x498] ss:$48 sps:$4 sm:$0xff]   ;;  %v9637_v54 = vpack.c.bf16 %v127_v46, %v124_v45  ;;  %v8736_v45 = vld [vmem:[#allocation5 + $0x7f4] ss:$48 sps:$4 sm:$0xff]  }
  0xef   :  { %2040 = vmatprep.subr.bf16.mxu0 %v8649_v56  ;;  %2266 = vmatprep.subr.bf16.mxu1 %v8652_v57  ;;  %v8697_v56 = vld [vmem:[#allocation5 + $0x4f4] ss:$48 sps:$4 sm:$0xff]   ;;  %v8700_v57 = vld [vmem:[#allocation5 + $0x4fc] ss:$48 sps:$4 sm:$0xff]   ;;  %v8746_v46 = vld [vmem:[#allocation5 + $0x798] ss:$48 sps:$4 sm:$0xff]  }
  0xf0   :  { %931 = vmatprep.mubr.bf16.mxu0 %v10577_v24  ;;  %1157 = vmatprep.mubr.bf16.mxu1 %v10577_v24  ;;  %10666 = vst [vmem:[#allocation38_spill] sm:$0xff] %v9637_v54 }
  0xf2   :  { %2041 = vmatpush1.bf16.msra.mxu0 %v8647_v58  ;;  %2267 = vmatpush1.bf16.msra.mxu1 %v8650_v59  ;;  %v8695_v58 = vld [vmem:[#allocation5 + $0x4f0] ss:$48 sps:$4 sm:$0xff]   ;;  %v8698_v59 = vld [vmem:[#allocation5 + $0x4f8] ss:$48 sps:$4 sm:$0xff]  }
  0xf3   :  { %2042 = vmatprep.subr.bf16.mxu0 %v8655_v62  ;;  %2268 = vmatprep.subr.bf16.mxu1 %v8658_v63  ;;  %v8703_v62 = vld [vmem:[#allocation5 + $0x554] ss:$48 sps:$4 sm:$0xff]   ;;  %v8706_v63 = vld [vmem:[#allocation5 + $0x55c] ss:$48 sps:$4 sm:$0xff]  }
  0xf5   :  { %932 = vmatmul.mubr.bf16.gmra.mrb[12].mxu0 %v9619_v4  ;;  %1158 = vmatmul.mubr.bf16.gmra.mrb[12].mxu1 %v9619_v4 }
  0xf6   :  { %2043 = vmatpush1.bf16.msra.mxu0 %v8653_v0  ;;  %2269 = vmatpush1.bf16.msra.mxu1 %v8656_v3  ;;  %v8701_v0 = vld [vmem:[#allocation5 + $0x550] ss:$48 sps:$4 sm:$0xff]   ;;  %v8704_v3 = vld [vmem:[#allocation5 + $0x558] ss:$48 sps:$4 sm:$0xff]  }
  0xf7   :  { %2044 = vmatprep.subr.bf16.mxu0 %v8661_v5  ;;  %2270 = vmatprep.subr.bf16.mxu1 %v8664_v6  ;;  %v9643_v5 = vpack.c.bf16 %v133_v61, %v130_v60  ;;  %v8709_v6 = vld [vmem:[#allocation5 + $0x5b4] ss:$48 sps:$4 sm:$0xff]   ;;  %v8760_v60 = vld [vmem:[#allocation5 + $0x8bc] ss:$48 sps:$4 sm:$0xff]   ;;  %v8752_v61 = vld [vmem:[#allocation5 + $0x8b0] ss:$48 sps:$4 sm:$0xff]  }
  0xf8   :  { %941 = vmatprep.mubr.bf16.mxu0 %v10577_v24  ;;  %1167 = vmatprep.mubr.bf16.mxu1 %v10577_v24 }
  0xf9   :  { %10667 = vst [vmem:[#allocation39_spill] sm:$0xff] %v9643_v5 }
  0xfa   :  { %2045 = vmatpush1.bf16.msra.mxu0 %v8659_v7  ;;  %2271 = vmatpush1.bf16.msra.mxu1 %v8662_v12  ;;  %v8712_v7 = vld [vmem:[#allocation5 + $0x5bc] ss:$48 sps:$4 sm:$0xff]   ;;  %v8707_v12 = vld [vmem:[#allocation5 + $0x5b0] ss:$48 sps:$4 sm:$0xff]  }
  0xfb   :  { %2046 = vmatprep.subr.bf16.mxu0 %v8667_v15  ;;  %2272 = vmatprep.subr.bf16.mxu1 %v8670_v18  ;;  %v8730_v15 = vld [vmem:[#allocation5 + $0x61c] ss:$48 sps:$4 sm:$0xff]   ;;  %v8713_v18 = vld [vmem:[#allocation5 + $0x610] ss:$48 sps:$4 sm:$0xff]  }
  0xfd   :  { %942 = vmatmul.mubr.bf16.gmra.mrb[16].mxu0 %v9625_v25  ;;  %1168 = vmatmul.mubr.bf16.gmra.mrb[16].mxu1 %v9625_v25 }
  0xfe   :  { %2047 = vmatpush1.bf16.msra.mxu0 %v8665_v19  ;;  %2273 = vmatpush1.bf16.msra.mxu1 %v8668_v21  ;;  %v8718_v19 = vld [vmem:[#allocation5 + $0x674] ss:$48 sps:$4 sm:$0xff]   ;;  %v8728_v21 = vld [vmem:[#allocation5 + $0x618] ss:$48 sps:$4 sm:$0xff]  }
  0xff   :  { %2048 = vmatprep.subr.bf16.mxu0 %v8673_v27  ;;  %2274 = vmatprep.subr.bf16.mxu1 %v8676_v28  ;;  %v8733_v27 = vld [vmem:[#allocation5 + $0x67c] ss:$48 sps:$4 sm:$0xff]   ;;  %v8716_v28 = vld [vmem:[#allocation5 + $0x670] ss:$48 sps:$4 sm:$0xff]  }
 0x100   :  { %951 = vmatprep.mubr.bf16.mxu0 %v10577_v24  ;;  %1177 = vmatprep.mubr.bf16.mxu1 %v10577_v24 }
 0x102   :  { %2049 = vmatpush1.bf16.msra.mxu0 %v8671_v29  ;;  %2275 = vmatpush1.bf16.msra.mxu1 %v8674_v30  ;;  %v8721_v29 = vld [vmem:[#allocation5 + $0x6d4] ss:$48 sps:$4 sm:$0xff]   ;;  %v8731_v30 = vld [vmem:[#allocation5 + $0x678] ss:$48 sps:$4 sm:$0xff]  }
 0x103   :  { %2050 = vmatprep.subr.bf16.mxu0 %v8679_v33  ;;  %2276 = vmatprep.subr.bf16.mxu1 %v8682_v34  ;;  %v8724_v33 = vld [vmem:[#allocation5 + $0x734] ss:$48 sps:$4 sm:$0xff]   ;;  %v8737_v34 = vld [vmem:[#allocation5 + $0x6d8] ss:$48 sps:$4 sm:$0xff]  }
 0x105   :  { %952 = vmatmul.mubr.bf16.gmra.mrb[20].mxu0 %v9631_v40  ;;  %1178 = vmatmul.mubr.bf16.gmra.mrb[20].mxu1 %v9631_v40 }
 0x106   :  { %2051 = vmatpush1.bf16.msra.mxu0 %v8677_v35  ;;  %2277 = vmatpush1.bf16.msra.mxu1 %v8680_v38  ;;  %v8742_v35 = vld [vmem:[#allocation5 + $0x73c] ss:$48 sps:$4 sm:$0xff]   ;;  %v8722_v38 = vld [vmem:[#allocation5 + $0x730] ss:$48 sps:$4 sm:$0xff]  }
 0x107   :  { %2052 = vmatprep.subr.bf16.mxu0 %v8685_v41  ;;  %2278 = vmatprep.subr.bf16.mxu1 %v8688_v42  ;;  %v8727_v41 = vld [vmem:[#allocation5 + $0x794] ss:$48 sps:$4 sm:$0xff]   ;;  %v8740_v42 = vld [vmem:[#allocation5 + $0x738] ss:$48 sps:$4 sm:$0xff]  }
 0x108   :  { %961 = vmatprep.mubr.bf16.mxu0 %v10577_v24  ;;  %1187 = vmatprep.mubr.bf16.mxu1 %v10577_v24 }
 0x10a   :  { %2053 = vmatpush1.bf16.msra.mxu0 %v8683_v43  ;;  %2279 = vmatpush1.bf16.msra.mxu1 %v8686_v44  ;;  %v8725_v43 = vld [vmem:[#allocation5 + $0x790] ss:$48 sps:$4 sm:$0xff]   ;;  %v8748_v44 = vld [vmem:[#allocation5 + $0x79c] ss:$48 sps:$4 sm:$0xff]  }
 0x10b   :  { %2054 = vmatprep.subr.bf16.mxu0 %v8691_v47  ;;  %2280 = vmatprep.subr.bf16.mxu1 %v8694_v48  ;;  %v8751_v47 = vld [vmem:[#allocation5 + $0x7fc] ss:$48 sps:$4 sm:$0xff]   ;;  %v8734_v48 = vld [vmem:[#allocation5 + $0x7f0] ss:$48 sps:$4 sm:$0xff]  }
 0x10d   :  { %962 = vmatmul.mubr.bf16.gmra.mrb[24].mxu0 %v9637_v54  ;;  %1188 = vmatmul.mubr.bf16.gmra.mrb[24].mxu1 %v9637_v54 }
 0x10e   :  { %2055 = vmatpush1.bf16.msra.mxu0 %v8689_v49  ;;  %2281 = vmatpush1.bf16.msra.mxu1 %v8692_v53  ;;  %v8745_v49 = vld [vmem:[#allocation5 + $0x854] ss:$48 sps:$4 sm:$0xff]   ;;  %v8749_v53 = vld [vmem:[#allocation5 + $0x7f8] ss:$48 sps:$4 sm:$0xff]  }
 0x10f   :  { %2056 = vmatprep.subr.bf16.mxu0 %v8697_v56  ;;  %2282 = vmatprep.subr.bf16.mxu1 %v8700_v57  ;;  %v8743_v56 = vld [vmem:[#allocation5 + $0x850] ss:$48 sps:$4 sm:$0xff]   ;;  %v8757_v57 = vld [vmem:[#allocation5 + $0x85c] ss:$48 sps:$4 sm:$0xff]  }
 0x110   :  { %971 = vmatprep.mubr.bf16.mxu0 %v10577_v24  ;;  %1197 = vmatprep.mubr.bf16.mxu1 %v10577_v24 }
 0x112   :  { %2057 = vmatpush1.bf16.msra.mxu0 %v8695_v58  ;;  %2283 = vmatpush1.bf16.msra.mxu1 %v8698_v59  ;;  %v8754_v58 = vld [vmem:[#allocation5 + $0x8b4] ss:$48 sps:$4 sm:$0xff]   ;;  %v8755_v59 = vld [vmem:[#allocation5 + $0x858] ss:$48 sps:$4 sm:$0xff]  }
 0x113   :  { %2058 = vmatprep.subr.bf16.mxu0 %v8703_v62  ;;  %2284 = vmatprep.subr.bf16.mxu1 %v8706_v63  ;;  %v8758_v62 = vld [vmem:[#allocation5 + $0x8b8] ss:$48 sps:$4 sm:$0xff]  }
 0x114   :  { %v8761_v63 = vld [vmem:[#allocation8 + $0x300] ss:$12 sps:$4 sm:$0xff]  }
 0x115   :  { %972 = vmatmul.mubr.bf16.gmra.mrb[28].mxu0 %v9643_v5  ;;  %1198 = vmatmul.mubr.bf16.gmra.mrb[28].mxu1 %v9643_v5 }
 0x116   :  { %2059 = vmatpush1.bf16.msra.mxu0 %v8701_v0  ;;  %2285 = vmatpush1.bf16.msra.mxu1 %v8704_v3  ;;  %v8763_v0 = vld [vmem:[#allocation8 + $0x304] ss:$12 sps:$4 sm:$0xff]   ;;  %v8766_v3 = vld [vmem:[#allocation8 + $0x31c] ss:$12 sps:$4 sm:$0xff]  }
 0x117   :  { %2060 = vmatprep.subr.bf16.mxu0 %v8709_v6  ;;  %2286 = vmatprep.subr.bf16.mxu1 %v8712_v7  ;;  %v8764_v6 = vld [vmem:[#allocation8 + $0x318] ss:$12 sps:$4 sm:$0xff]   ;;  %v8769_v7 = vld [vmem:[#allocation8 + $0x334] ss:$12 sps:$4 sm:$0xff]  }
 0x118   :  { %2062 = vmatprep.mubr.bf16.mxu0 %v9535_v50  ;;  %2288 = vmatprep.mubr.bf16.mxu1 %v9535_v50 }
 0x11a   :  { %2061 = vmatpush1.bf16.msra.mxu0 %v8707_v12  ;;  %2287 = vmatpush1.bf16.msra.mxu1 %v8710_v13  ;;  %v8788_v12 = vld [vmem:[#allocation8 + $0x3c8] ss:$12 sps:$4 sm:$0xff]  }
 0x11b   :  { %2143 = vmatprep.subr.bf16.mxu0 %v8715_v14  ;;  %2369 = vmatprep.subr.bf16.mxu1 %v8730_v15  ;;  %v8789_v13 = vld [vmem:[#allocation8 + $0x308] ss:$12 sps:$4 sm:$0xff]   ;;  %v8767_v14 = vld [vmem:[#allocation8 + $0x330] ss:$12 sps:$4 sm:$0xff]   ;;  %v8793_v15 = vld [vmem:[#allocation8 + $0x3e0] ss:$12 sps:$4 sm:$0xff]  }
 0x11d   :  { %2063 = vmatmul.mubr.bf16.vlgmr.msra.gmra.mrb[32].mxu0 %v9539_v9  ;;  %2289 = vmatmul.mubr.bf16.vlgmr.msra.gmra.mrb[32].mxu1 %v9539_v9 }
 0x11e   :  { %2144 = vmatpush1.bf16.msra.mxu0 %v8713_v18  ;;  %2072 = vmatprep.mubr.bf16.mxu0 %v9541_v11  ;;  %v8772_v18 = vld [vmem:[#allocation8 + $0x34c] ss:$12 sps:$4 sm:$0xff]  }
 0x11f   :  { %2298 = vmatprep.mubr.bf16.mxu1 %v9541_v11  ;;  %2145 = vmatprep.subr.bf16.mxu0 %v8718_v19  ;;  %v8770_v19 = vld [vmem:[#allocation8 + $0x348] ss:$12 sps:$4 sm:$0xff]  }
 0x120   :  { %2370 = vmatpush1.bf16.msra.mxu1 %v8728_v21  ;;  %v8794_v21 = vld [vmem:[#allocation8 + $0x320] ss:$12 sps:$4 sm:$0xff]  }
 0x121   :  { %2371 = vmatprep.subr.bf16.mxu1 %v8733_v27  ;;  %v8775_v27 = vld [vmem:[#allocation8 + $0x364] ss:$12 sps:$4 sm:$0xff]  }
 0x122   :  { %2146 = vmatpush1.bf16.msra.mxu0 %v8716_v28  ;;  %v8798_v28 = vld [vmem:[#allocation8 + $0x3f8] ss:$12 sps:$4 sm:$0xff]  }
 0x123   :  { %2147 = vmatprep.subr.bf16.mxu0 %v8721_v29  ;;  %v8773_v29 = vld [vmem:[#allocation8 + $0x360] ss:$12 sps:$4 sm:$0xff]  }
 0x124   :  { %2372 = vmatpush1.bf16.msra.mxu1 %v8731_v30  ;;  %v8799_v30 = vld [vmem:[#allocation8 + $0x338] ss:$12 sps:$4 sm:$0xff]  }
 0x125   :  { %2073 = vmatmul.mubr.bf16.gmra.mrb[36].mxu0 %v9547_v22  ;;  %2299 = vmatmul.mubr.bf16.gmra.mrb[36].mxu1 %v9547_v22  ;;  %v8825_v22 = vld [vmem:[#allocation8 + $0x480] ss:$12 sps:$4 sm:$0xff]  }
 0x126   :  { %2082 = vmatprep.mubr.bf16.mxu0 %v9549_v23  ;;  %2308 = vmatprep.mubr.bf16.mxu1 %v9549_v23 }
 0x127   :  { %2148 = vmatpush1.bf16.msra.mxu0 %v8719_v31  ;;  %2373 = vmatprep.subr.bf16.mxu1 %v8739_v32  ;;  %v8778_v31 = vld [vmem:[#allocation8 + $0x37c] ss:$12 sps:$4 sm:$0xff]  }
 0x128   :  { %2149 = vmatprep.subr.bf16.mxu0 %v8724_v33  ;;  %2374 = vmatpush1.bf16.msra.mxu1 %v8737_v34  ;;  %v8803_v32 = vld [vmem:[#allocation8 + $0x410] ss:$12 sps:$4 sm:$0xff]   ;;  %v8776_v33 = vld [vmem:[#allocation8 + $0x378] ss:$12 sps:$4 sm:$0xff]  }
 0x129   :  { %2375 = vmatprep.subr.bf16.mxu1 %v8742_v35  ;;  %v8804_v34 = vld [vmem:[#allocation8 + $0x350] ss:$12 sps:$4 sm:$0xff]   ;;  %v8781_v35 = vld [vmem:[#allocation8 + $0x394] ss:$12 sps:$4 sm:$0xff]  }
 0x12b   :  { %2150 = vmatpush1.bf16.msra.mxu0 %v8722_v38  ;;  %v8808_v38 = vld [vmem:[#allocation8 + $0x428] ss:$12 sps:$4 sm:$0xff]  }
 0x12c   :  { %2151 = vmatprep.subr.bf16.mxu0 %v8727_v41  ;;  %2376 = vmatpush1.bf16.msra.mxu1 %v8740_v42  ;;  %v8779_v41 = vld [vmem:[#allocation8 + $0x390] ss:$12 sps:$4 sm:$0xff]   ;;  %v8809_v42 = vld [vmem:[#allocation8 + $0x368] ss:$12 sps:$4 sm:$0xff]  }
 0x12d   :  { %2083 = vmatmul.mubr.bf16.gmra.mrb[40].mxu0 %v9555_v36  ;;  %2309 = vmatmul.mubr.bf16.gmra.mrb[40].mxu1 %v9555_v36 }
 0x12e   :  { %2092 = vmatprep.mubr.bf16.mxu0 %v9557_v37  ;;  %2318 = vmatprep.mubr.bf16.mxu1 %v9557_v37 }
 0x12f   :  { %2152 = vmatpush1.bf16.msra.mxu0 %v8725_v43  ;;  %2377 = vmatprep.subr.bf16.mxu1 %v8748_v44  ;;  %v8784_v43 = vld [vmem:[#allocation8 + $0x3ac] ss:$12 sps:$4 sm:$0xff]  }
 0x130   :  { %2153 = vmatprep.subr.bf16.mxu0 %v8736_v45  ;;  %2378 = vmatpush1.bf16.msra.mxu1 %v8746_v46  ;;  %v8813_v44 = vld [vmem:[#allocation8 + $0x440] ss:$12 sps:$4 sm:$0xff]   ;;  %v8782_v45 = vld [vmem:[#allocation8 + $0x3a8] ss:$12 sps:$4 sm:$0xff]   ;;  %v8787_v46 = vld [vmem:[#allocation8 + $0x3c4] ss:$12 sps:$4 sm:$0xff]  }
 0x131   :  { %2379 = vmatprep.subr.bf16.mxu1 %v8751_v47  ;;  %v8785_v47 = vld [vmem:[#allocation8 + $0x3c0] ss:$12 sps:$4 sm:$0xff]  }
 0x133   :  { %2154 = vmatpush1.bf16.msra.mxu0 %v8734_v48  ;;  %v8792_v48 = vld [vmem:[#allocation8 + $0x3dc] ss:$12 sps:$4 sm:$0xff]  }
 0x134   :  { %2155 = vmatprep.subr.bf16.mxu0 %v8745_v49  ;;  %2380 = vmatpush1.bf16.msra.mxu1 %v8749_v53  ;;  %v8790_v49 = vld [vmem:[#allocation8 + $0x3d8] ss:$12 sps:$4 sm:$0xff]   ;;  %v8797_v53 = vld [vmem:[#allocation8 + $0x3f4] ss:$12 sps:$4 sm:$0xff]  }
 0x135   :  { %2093 = vmatmul.mubr.bf16.gmra.mrb[44].mxu0 %v9563_v51  ;;  %2319 = vmatmul.mubr.bf16.gmra.mrb[44].mxu1 %v9563_v51 }
 0x136   :  { %2102 = vmatprep.mubr.bf16.mxu0 %v9565_v52  ;;  %2328 = vmatprep.mubr.bf16.mxu1 %v9565_v52 }
 0x137   :  { %2156 = vmatpush1.bf16.msra.mxu0 %v8743_v56  ;;  %2381 = vmatprep.subr.bf16.mxu1 %v8757_v57  ;;  %v8795_v56 = vld [vmem:[#allocation8 + $0x3f0] ss:$12 sps:$4 sm:$0xff]   ;;  %v8802_v57 = vld [vmem:[#allocation8 + $0x40c] ss:$12 sps:$4 sm:$0xff]  }
 0x138   :  { %2157 = vmatprep.subr.bf16.mxu0 %v8754_v58  ;;  %2382 = vmatpush1.bf16.msra.mxu1 %v8755_v59  ;;  %v8800_v58 = vld [vmem:[#allocation8 + $0x408] ss:$12 sps:$4 sm:$0xff]   ;;  %v8807_v59 = vld [vmem:[#allocation8 + $0x424] ss:$12 sps:$4 sm:$0xff]  }
 0x139   :  { %2383 = vmatprep.subr.bf16.mxu1 %v8760_v60  ;;  %v8805_v60 = vld [vmem:[#allocation8 + $0x420] ss:$12 sps:$4 sm:$0xff]  }
 0x13b   :  { %2158 = vmatpush1.bf16.msra.mxu0 %v8752_v61  ;;  %v8812_v61 = vld [vmem:[#allocation8 + $0x43c] ss:$12 sps:$4 sm:$0xff]  }
 0x13c   :  { %2384 = vmatpush1.bf16.msra.mxu1 %v8758_v62  ;;  %3218 = vmatprep.subr.bf16.mxu0 %v8763_v0  ;;  %v256_v62 = vlaneseq }
 0x13d   :  { %2103 = vmatmul.mubr.bf16.gmra.mrb[48].mxu0 %v9571_v1  ;;  %2329 = vmatmul.mubr.bf16.gmra.mrb[48].mxu1 %v9571_v1 }
 0x13e   :  { %2112 = vmatprep.mubr.bf16.mxu0 %v9573_v2  ;;  %2338 = vmatprep.mubr.bf16.mxu1 %v9573_v2  ;;  %v257_v0 = vshrl.u32 %v256_v62, 7  ;;  %v8822_v62 = vld [vmem:[#allocation8 + $0x46c] ss:$12 sps:$4 sm:$0xff]  }
 0x13f   :  { %7532 = vmatprep.subr.bf16.mxu1 %v8788_v12 }
 0x140   :  { %v9715_v12 = vsub.s32 1, %v257_v0 }
 0x142   :  { %10670 = vst [vmem:[#allocation42_spill] sm:$0xff] %v9715_v12 }
 0x145   :  { %2113 = vmatmul.mubr.bf16.gmra.mrb[52].mxu0 %v9579_v8  ;;  %2339 = vmatmul.mubr.bf16.gmra.mrb[52].mxu1 %v9579_v8 }
 0x146   :  { %2122 = vmatprep.mubr.bf16.mxu0 %v9581_v10  ;;  %2348 = vmatprep.mubr.bf16.mxu1 %v9581_v10 }
 0x14d   :  { %2123 = vmatmul.mubr.bf16.gmra.mrb[56].mxu0 %v9587_v16  ;;  %2349 = vmatmul.mubr.bf16.gmra.mrb[56].mxu1 %v9587_v16 }
 0x14e   :  { %2132 = vmatprep.mubr.bf16.mxu0 %v9589_v17  ;;  %2358 = vmatprep.mubr.bf16.mxu1 %v9589_v17 }
 0x155   :  { %2133 = vmatmul.mubr.bf16.gmra.mrb[60].mxu0 %v9595_v20  ;;  %2359 = vmatmul.mubr.bf16.gmra.mrb[60].mxu1 %v9595_v20 }
 0x156   :  { %2175 = vmatprep.mubr.bf16.mxu0 %v10577_v24  ;;  %2401 = vmatprep.mubr.bf16.mxu1 %v10577_v24 }
 0x15d   :  { %2176 = vmatmul.mubr.bf16.vlgmr.msra.gmra.mrb[32].mxu0 %v9601_v26  ;;  %2402 = vmatmul.mubr.bf16.vlgmr.msra.gmra.mrb[32].mxu1 %v9601_v26 }
 0x15e   :  { %2185 = vmatprep.mubr.bf16.mxu0 %v10577_v24  ;;  %2411 = vmatprep.mubr.bf16.mxu1 %v10577_v24 }
 0x15f   :  { %3219 = vmatpush1.bf16.msra.mxu0 %v8761_v63  ;;  %7533 = vmatpush3.bf16.msra.mxu1 %v8789_v13  ;;  %v8810_v63 = vld [vmem:[#allocation8 + $0x438] ss:$12 sps:$4 sm:$0xff]   ;;  %v9717_v13 = vsub.s32 3, %v257_v0 }
 0x160   :  { %3220 = vmatprep.subr.bf16.mxu0 %v8766_v3  ;;  %7534 = vmatprep.subr.bf16.mxu1 %v8793_v15  ;;  %v9711_v3 = vsub.s32 0, %v257_v0 }
 0x161   :  { %10671 = vst [vmem:[#allocation43_spill] sm:$0xff] %v9717_v13 }
 0x162   :  { %10668 = vst [vmem:[#allocation40_spill] sm:$0xff] %v9711_v3 }
 0x163   :  { %3221 = vmatpush1.bf16.msra.mxu0 %v8764_v6  ;;  %7535 = vmatpush3.bf16.msra.mxu1 %v8794_v21  ;;  %v9713_v6 = vsub.s32 2, %v257_v0  ;;  %v8814_v21 = vld [vmem:[#allocation8 + $0x380] ss:$12 sps:$4 sm:$0xff]  }
 0x164   :  { %3222 = vmatprep.subr.bf16.mxu0 %v8769_v7  ;;  %7536 = vmatprep.subr.bf16.mxu1 %v8798_v28  ;;  %v254_v7 = vld [vmem:[#allocation7] sm:$0xf] }
 0x165   :  { %2186 = vmatmul.mubr.bf16.gmra.mrb[36].mxu0 %v9607_v39  ;;  %2412 = vmatmul.mubr.bf16.gmra.mrb[36].mxu1 %v9607_v39  ;;  %10669 = vst [vmem:[#allocation41_spill] sm:$0xff] %v9713_v6  ;;  %v9723_v15 = vrot.slane %v254_v7, %v9713_v6 }
 0x166   :  { %2195 = vmatprep.mubr.bf16.mxu0 %v10577_v24  ;;  %2421 = vmatprep.mubr.bf16.mxu1 %v10577_v24 }
 0x167   :  { %3223 = vmatpush1.bf16.msra.mxu0 %v8767_v14  ;;  %7537 = vmatpush3.bf16.msra.mxu1 %v8799_v30  ;;  %v9720_v14 = vrot.slane %v254_v7, %v9711_v3 }
 0x168   :  { %3224 = vmatprep.subr.bf16.mxu0 %v8772_v18  ;;  %7538 = vmatprep.subr.bf16.mxu1 %v8803_v32  ;;  %v9726_v18 = vrot.slane %v254_v7, %v9715_v12 }
 0x16b   :  { %3225 = vmatpush1.bf16.msra.mxu0 %v8770_v19  ;;  %7539 = vmatpush3.bf16.msra.mxu1 %v8804_v34  ;;  %v9729_v19 = vrot.slane %v254_v7, %v9717_v13  ;;  %v8818_v34 = vld [vmem:[#allocation8 + $0x458] ss:$12 sps:$4 sm:$0xff]  }
 0x16c   :  { %3226 = vmatprep.subr.bf16.mxu0 %v8775_v27  ;;  %7540 = vmatprep.subr.bf16.mxu1 %v8808_v38 }
 0x16d   :  { %2196 = vmatmul.mubr.bf16.gmra.mrb[40].mxu0 %v9613_v55  ;;  %2422 = vmatmul.mubr.bf16.gmra.mrb[40].mxu1 %v9613_v55 }
 0x16e   :  { %2205 = vmatprep.mubr.bf16.mxu0 %v10577_v24  ;;  %2431 = vmatprep.mubr.bf16.mxu1 %v10577_v24 }
 0x16f   :  { %3227 = vmatpush1.bf16.msra.mxu0 %v8773_v29  ;;  %7541 = vmatpush3.bf16.msra.mxu1 %v8809_v42 }
 0x170   :  { %3228 = vmatprep.subr.bf16.mxu0 %v8778_v31  ;;  %7542 = vmatprep.subr.bf16.mxu1 %v8813_v44  ;;  %v8819_v44 = vld [vmem:[#allocation8 + $0x398] ss:$12 sps:$4 sm:$0xff]  }
 0x173   :  { %3229 = vmatpush1.bf16.msra.mxu0 %v8776_v33  ;;  %7543 = vmatpush3.bf16.msra.mxu1 %v8814_v21  ;;  %v8817_v33 = vld [vmem:[#allocation8 + $0x454] ss:$12 sps:$4 sm:$0xff]  }
 0x174   :  { %3230 = vmatprep.subr.bf16.mxu0 %v8781_v35  ;;  %7544 = vmatprep.subr.bf16.mxu1 %v8818_v34  ;;  %v8820_v21 = vld [vmem:[#allocation8 + $0x468] ss:$12 sps:$4 sm:$0xff]  }
 0x175   :  { %2206 = vmatmul.mubr.bf16.gmra.mrb[44].mxu0 %v9619_v4  ;;  %2432 = vmatmul.mubr.bf16.gmra.mrb[44].mxu1 %v9619_v4 }
 0x176   :  { %2215 = vmatprep.mubr.bf16.mxu0 %v10577_v24  ;;  %2441 = vmatprep.mubr.bf16.mxu1 %v10577_v24 }
 0x177   :  { %3231 = vmatpush1.bf16.msra.mxu0 %v8779_v41  ;;  %7545 = vmatpush3.bf16.msra.mxu1 %v8819_v44 }
 0x178   :  { %3232 = vmatprep.subr.bf16.mxu0 %v8784_v43  ;;  %v8815_v43 = vld [vmem:[#allocation8 + $0x450] ss:$12 sps:$4 sm:$0xff]  }
 0x17b   :  { %3233 = vmatpush1.bf16.msra.mxu0 %v8782_v45 }
 0x17c   :  { %3234 = vmatprep.subr.bf16.mxu0 %v8787_v46 }
 0x17d   :  { %2216 = vmatmul.mubr.bf16.gmra.mrb[48].mxu0 %v9625_v25  ;;  %2442 = vmatmul.mubr.bf16.gmra.mrb[48].mxu1 %v9625_v25 }
 0x17e   :  { %2225 = vmatprep.mubr.bf16.mxu0 %v10577_v24  ;;  %2451 = vmatprep.mubr.bf16.mxu1 %v10577_v24 }
 0x17f   :  { %3235 = vmatpush1.bf16.msra.mxu0 %v8785_v47 }
 0x180   :  { %3236 = vmatprep.subr.bf16.mxu0 %v8792_v48 }
 0x183   :  { %3237 = vmatpush1.bf16.msra.mxu0 %v8790_v49 }
 0x184   :  { %3238 = vmatprep.subr.bf16.mxu0 %v8797_v53 }
 0x185   :  { %2226 = vmatmul.mubr.bf16.gmra.mrb[52].mxu0 %v9631_v40  ;;  %2452 = vmatmul.mubr.bf16.gmra.mrb[52].mxu1 %v9631_v40 }
 0x186   :  { %2235 = vmatprep.mubr.bf16.mxu0 %v10577_v24  ;;  %2461 = vmatprep.mubr.bf16.mxu1 %v10577_v24 }
 0x187   :  { %3239 = vmatpush1.bf16.msra.mxu0 %v8795_v56 }
 0x188   :  { %3240 = vmatprep.subr.bf16.mxu0 %v8802_v57 }
 0x18b   :  { %3241 = vmatpush1.bf16.msra.mxu0 %v8800_v58 }
 0x18c   :  { %3242 = vmatprep.subr.bf16.mxu0 %v8807_v59 }
 0x18d   :  { %2236 = vmatmul.mubr.bf16.gmra.mrb[56].mxu0 %v9637_v54  ;;  %2462 = vmatmul.mubr.bf16.gmra.mrb[56].mxu1 %v9637_v54 }
 0x18e   :  { %2245 = vmatprep.mubr.bf16.mxu0 %v10577_v24  ;;  %2471 = vmatprep.mubr.bf16.mxu1 %v10577_v24 }
 0x18f   :  { %3243 = vmatpush1.bf16.msra.mxu0 %v8805_v60 }
 0x190   :  { %3244 = vmatprep.subr.bf16.mxu0 %v8812_v61 }
 0x193   :  { %3245 = vmatpush1.bf16.msra.mxu0 %v8810_v63  ;;  %v8823_v63 = vld [vmem:[#allocation8 + $0x470] ss:$12 sps:$4 sm:$0xff]  }
 0x194   :  { %3246 = vmatprep.subr.bf16.mxu0 %v8817_v33  ;;  %7546 = vmatprep.subr.bf16.mxu1 %v8823_v63 }
 0x195   :  { %2246 = vmatmul.mubr.bf16.gmra.mrb[60].mxu0 %v9643_v5  ;;  %2472 = vmatmul.mubr.bf16.gmra.mrb[60].mxu1 %v9643_v5 }
 0x197   :  { %3247 = vmatpush1.bf16.msra.mxu0 %v8815_v43 }
 0x198   :  { %3248 = vmatprep.subr.bf16.mxu0 %v8822_v62 }
 0x19b   :  { %3249 = vmatpush1.bf16.msra.mxu0 %v8820_v21 }
 0x1b0   :  { %v903_v27 = vpop.f32.mrb[0].mxu0  ;;  %v1129_v28 = vpop.f32.mrb[0].mxu1 }
 0x1b1   :  { %v7916_v29 = vadd.f32 %v903_v27, %v9720_v14  ;;  %v7948_v30 = vadd.f32 %v1129_v28, %v9723_v15  ;;  %v905_v31 = vpop.f32.mrb[1].mxu0  ;;  %v1131_v32 = vpop.f32.mrb[1].mxu1  ;;  %v8824_v27 = vld [vmem:[#allocation8 + $0x3b0] ss:$12 sps:$4 sm:$0xff]  }
 0x1b2   :  { %v7917_v35 = vadd.f32 %v905_v31, %v9726_v18  ;;  %v7949_v38 = vadd.f32 %v1131_v32, %v9729_v19  ;;  %v907_v41 = vpop.f32.mrb[2].mxu0  ;;  %v1133_v42 = vpop.f32.mrb[2].mxu1  ;;  %7547 = vmatpush3.bf16.msra.mxu1 %v8824_v27 }
 0x1b3   :  { %v1208_v45 = vmax.f32 %v7916_v29, 0.0  ;;  %v1210_v46 = vmax.f32 %v7948_v30, 0.0  ;;  %v7918_v47 = vadd.f32 %v907_v41, %v9720_v14  ;;  %v7950_v48 = vadd.f32 %v1133_v42, %v9723_v15  ;;  %v909_v49 = vpop.f32.mrb[3].mxu0  ;;  %v1135_v53 = vpop.f32.mrb[3].mxu1  ;;  %v8827_v42 = vld [vmem:[#allocation8 + $0x484] ss:$12 sps:$4 sm:$0xff]  }
 0x1b4   :  { %v1209_v56 = vmax.f32 %v7917_v35, 0.0  ;;  %v1211_v57 = vmax.f32 %v7949_v38, 0.0  ;;  %v7919_v58 = vadd.f32 %v909_v49, %v9726_v18  ;;  %v7951_v59 = vadd.f32 %v1135_v53, %v9729_v19  ;;  %3331 = vmatprep.subr.bf16.mxu0 %v8827_v42 }
 0x1b5   :  { %v1212_v60 = vmax.f32 %v7918_v47, 0.0  ;;  %v1214_v61 = vmax.f32 %v7950_v48, 0.0 }
 0x1b6   :  { %v1213_v0 = vmax.f32 %v7919_v58, 0.0  ;;  %v1215_v7 = vmax.f32 %v7951_v59, 0.0 }
 0x1b7   :  { %v9739_v28 = vpack.c.bf16 %v1212_v60, %v1208_v45  ;;  %v9741_v29 = vpack.c.bf16 %v1214_v61, %v1210_v46 }
 0x1b8   :  { %v9743_v30 = vpack.c.bf16 %v1213_v0, %v1209_v56  ;;  %v913_v31 = vpop.f32.mrb[4].mxu0  ;;  %v1139_v32 = vpop.f32.mrb[4].mxu1  ;;  %v9745_v33 = vpack.c.bf16 %v1215_v7, %v1211_v57 }
 0x1b9   :  { %v7920_v34 = vadd.f32 %v913_v31, %v9720_v14  ;;  %v7952_v35 = vadd.f32 %v1139_v32, %v9723_v15  ;;  %v915_v38 = vpop.f32.mrb[5].mxu0  ;;  %v1141_v41 = vpop.f32.mrb[5].mxu1 }
 0x1ba   :  { %v7921_v43 = vadd.f32 %v915_v38, %v9726_v18  ;;  %v7953_v44 = vadd.f32 %v1141_v41, %v9729_v19  ;;  %v917_v45 = vpop.f32.mrb[6].mxu0  ;;  %v1143_v46 = vpop.f32.mrb[6].mxu1 }
 0x1bb   :  { %v7922_v47 = vadd.f32 %v917_v45, %v9720_v14  ;;  %v7954_v48 = vadd.f32 %v1143_v46, %v9723_v15  ;;  %v919_v49 = vpop.f32.mrb[7].mxu0  ;;  %v1145_v53 = vpop.f32.mrb[7].mxu1  ;;  %v1216_v58 = vmax.f32 %v7920_v34, 0.0  ;;  %v1218_v59 = vmax.f32 %v7952_v35, 0.0 }
 0x1bc   :  { %v7923_v56 = vadd.f32 %v919_v49, %v9726_v18  ;;  %v7955_v57 = vadd.f32 %v1145_v53, %v9729_v19  ;;  %v1217_v62 = vmax.f32 %v7921_v43, 0.0  ;;  %v1219_v63 = vmax.f32 %v7953_v44, 0.0 }
 0x1bd   :  { %v1220_v60 = vmax.f32 %v7922_v47, 0.0  ;;  %v1222_v61 = vmax.f32 %v7954_v48, 0.0 }
 0x1be   :  { %v1221_v0 = vmax.f32 %v7923_v56, 0.0  ;;  %v1223_v7 = vmax.f32 %v7955_v57, 0.0 }
 0x1bf   :  { %v9755_v21 = vpack.c.bf16 %v1220_v60, %v1216_v58  ;;  %v9757_v27 = vpack.c.bf16 %v1222_v61, %v1218_v59 }
 0x1c0   :  { %v9759_v31 = vpack.c.bf16 %v1221_v0, %v1217_v62  ;;  %v923_v32 = vpop.f32.mrb[8].mxu0  ;;  %v1149_v38 = vpop.f32.mrb[8].mxu1  ;;  %v9761_v41 = vpack.c.bf16 %v1223_v7, %v1219_v63 }
 0x1c1   :  { %v7924_v42 = vadd.f32 %v923_v32, %v9720_v14  ;;  %v7956_v34 = vadd.f32 %v1149_v38, %v9723_v15  ;;  %v925_v35 = vpop.f32.mrb[9].mxu0  ;;  %v1151_v45 = vpop.f32.mrb[9].mxu1 }
 0x1c2   :  { %v7925_v43 = vadd.f32 %v925_v35, %v9726_v18  ;;  %v7957_v44 = vadd.f32 %v1151_v45, %v9729_v19  ;;  %v927_v46 = vpop.f32.mrb[10].mxu0  ;;  %v1153_v47 = vpop.f32.mrb[10].mxu1 }
 0x1c3   :  { %v7926_v48 = vadd.f32 %v927_v46, %v9720_v14  ;;  %v7958_v49 = vadd.f32 %v1153_v47, %v9723_v15  ;;  %v929_v53 = vpop.f32.mrb[11].mxu0  ;;  %v1155_v56 = vpop.f32.mrb[11].mxu1  ;;  %v1224_v59 = vmax.f32 %v7924_v42, 0.0  ;;  %v1226_v60 = vmax.f32 %v7956_v34, 0.0 }
 0x1c4   :  { %v7927_v57 = vadd.f32 %v929_v53, %v9726_v18  ;;  %v7959_v58 = vadd.f32 %v1155_v56, %v9729_v19  ;;  %v1225_v63 = vmax.f32 %v7925_v43, 0.0  ;;  %v1227_v0 = vmax.f32 %v7957_v44, 0.0 }
 0x1c5   :  { %v1228_v61 = vmax.f32 %v7926_v48, 0.0  ;;  %v1230_v62 = vmax.f32 %v7958_v49, 0.0 }
 0x1c6   :  { %v1229_v7 = vmax.f32 %v7927_v57, 0.0  ;;  %v1231_v32 = vmax.f32 %v7959_v58, 0.0 }
 0x1c7   :  { %v9771_v38 = vpack.c.bf16 %v1228_v61, %v1224_v59  ;;  %v9773_v35 = vpack.c.bf16 %v1230_v62, %v1226_v60 }
 0x1c8   :  { %v9775_v45 = vpack.c.bf16 %v1229_v7, %v1225_v63  ;;  %v933_v46 = vpop.f32.mrb[12].mxu0  ;;  %v1159_v47 = vpop.f32.mrb[12].mxu1  ;;  %v9777_v24 = vpack.c.bf16 %v1231_v32, %v1227_v0 }
 0x1c9   :  { %v7928_v53 = vadd.f32 %v933_v46, %v9720_v14  ;;  %v7960_v42 = vadd.f32 %v1159_v47, %v9723_v15  ;;  %v935_v34 = vpop.f32.mrb[13].mxu0  ;;  %v1161_v48 = vpop.f32.mrb[13].mxu1 }
 0x1ca   :  { %v7929_v43 = vadd.f32 %v935_v34, %v9726_v18  ;;  %v7961_v44 = vadd.f32 %v1161_v48, %v9729_v19  ;;  %v937_v49 = vpop.f32.mrb[14].mxu0  ;;  %v1163_v56 = vpop.f32.mrb[14].mxu1 }
 0x1cb   :  { %v7930_v57 = vadd.f32 %v937_v49, %v9720_v14  ;;  %v7962_v58 = vadd.f32 %v1163_v56, %v9723_v15  ;;  %v939_v59 = vpop.f32.mrb[15].mxu0  ;;  %v1165_v60 = vpop.f32.mrb[15].mxu1  ;;  %v1232_v63 = vmax.f32 %v7928_v53, 0.0  ;;  %v1234_v0 = vmax.f32 %v7960_v42, 0.0 }
 0x1cc   :  { %v7931_v61 = vadd.f32 %v939_v59, %v9726_v18  ;;  %v7963_v62 = vadd.f32 %v1165_v60, %v9729_v19  ;;  %v1233_v46 = vmax.f32 %v7929_v43, 0.0  ;;  %v1235_v47 = vmax.f32 %v7961_v44, 0.0 }
 0x1cd   :  { %v1236_v7 = vmax.f32 %v7930_v57, 0.0  ;;  %v1238_v32 = vmax.f32 %v7962_v58, 0.0 }
 0x1ce   :  { %v1237_v34 = vmax.f32 %v7931_v61, 0.0  ;;  %v1239_v48 = vmax.f32 %v7963_v62, 0.0 }
 0x1cf   :  { %v9787_v5 = vpack.c.bf16 %v1236_v7, %v1232_v63  ;;  %v9789_v54 = vpack.c.bf16 %v1238_v32, %v1234_v0 }
 0x1d0   :  { %v9791_v49 = vpack.c.bf16 %v1237_v34, %v1233_v46  ;;  %v943_v56 = vpop.f32.mrb[16].mxu0  ;;  %v1169_v40 = vpop.f32.mrb[16].mxu1  ;;  %v9793_v25 = vpack.c.bf16 %v1239_v48, %v1235_v47 }
 0x1d1   :  { %10672 = vst [vmem:[#allocation44_spill] sm:$0xff] %v9789_v54  ;;  %v7932_v59 = vadd.f32 %v943_v56, %v9720_v14  ;;  %v7964_v53 = vadd.f32 %v1169_v40, %v9723_v15  ;;  %v945_v42 = vpop.f32.mrb[17].mxu0  ;;  %v1171_v57 = vpop.f32.mrb[17].mxu1 }
 0x1d2   :  { %10673 = vst [vmem:[#allocation45_spill] sm:$0xff] %v9793_v25  ;;  %v7933_v43 = vadd.f32 %v945_v42, %v9726_v18  ;;  %v7965_v44 = vadd.f32 %v1171_v57, %v9729_v19  ;;  %v947_v58 = vpop.f32.mrb[18].mxu0  ;;  %v1173_v60 = vpop.f32.mrb[18].mxu1 }
 0x1d3   :  { %v7934_v61 = vadd.f32 %v947_v58, %v9720_v14  ;;  %v7966_v62 = vadd.f32 %v1173_v60, %v9723_v15  ;;  %v949_v63 = vpop.f32.mrb[19].mxu0  ;;  %v1175_v0 = vpop.f32.mrb[19].mxu1  ;;  %v1240_v46 = vmax.f32 %v7932_v59, 0.0  ;;  %v1242_v40 = vmax.f32 %v7964_v53, 0.0 }
 0x1d4   :  { %v7935_v7 = vadd.f32 %v949_v63, %v9726_v18  ;;  %v7967_v32 = vadd.f32 %v1175_v0, %v9729_v19  ;;  %v1241_v48 = vmax.f32 %v7933_v43, 0.0  ;;  %v1243_v56 = vmax.f32 %v7965_v44, 0.0  ;;  %v8852_v43 = vld [vmem:[#allocation8 + $0x548] ss:$12 sps:$4 sm:$0xff]  }
 0x1d5   :  { %v1244_v47 = vmax.f32 %v7934_v61, 0.0  ;;  %v1246_v34 = vmax.f32 %v7966_v62, 0.0  ;;  %7596 = vmatprep.subr.bf16.mxu1 %v8852_v43 }
 0x1d6   :  { %v1245_v42 = vmax.f32 %v7935_v7, 0.0  ;;  %v1247_v57 = vmax.f32 %v7967_v32, 0.0 }
 0x1d7   :  { %v9803_v4 = vpack.c.bf16 %v1244_v47, %v1240_v46  ;;  %v9805_v55 = vpack.c.bf16 %v1246_v34, %v1242_v40 }
 0x1d8   :  { %v9807_v58 = vpack.c.bf16 %v1245_v42, %v1241_v48  ;;  %v953_v60 = vpop.f32.mrb[20].mxu0  ;;  %v1179_v39 = vpop.f32.mrb[20].mxu1  ;;  %v9809_v26 = vpack.c.bf16 %v1247_v57, %v1243_v56 }
 0x1d9   :  { %10674 = vst [vmem:[#allocation46_spill] sm:$0xff] %v9805_v55  ;;  %v7936_v63 = vadd.f32 %v953_v60, %v9720_v14  ;;  %v7968_v59 = vadd.f32 %v1179_v39, %v9723_v15  ;;  %v955_v53 = vpop.f32.mrb[21].mxu0  ;;  %v1181_v61 = vpop.f32.mrb[21].mxu1 }
 0x1da   :  { %10675 = vst [vmem:[#allocation47_spill] sm:$0xff] %v9809_v26  ;;  %v7937_v44 = vadd.f32 %v955_v53, %v9726_v18  ;;  %v7969_v62 = vadd.f32 %v1181_v61, %v9729_v19  ;;  %v957_v0 = vpop.f32.mrb[22].mxu0  ;;  %v1183_v7 = vpop.f32.mrb[22].mxu1 }
 0x1db   :  { %v7938_v32 = vadd.f32 %v957_v0, %v9720_v14  ;;  %v7970_v46 = vadd.f32 %v1183_v7, %v9723_v15  ;;  %v959_v40 = vpop.f32.mrb[23].mxu0  ;;  %v1185_v47 = vpop.f32.mrb[23].mxu1  ;;  %v1248_v48 = vmax.f32 %v7936_v63, 0.0  ;;  %v1250_v56 = vmax.f32 %v7968_v59, 0.0 }
 0x1dc   :  { %v7939_v34 = vadd.f32 %v959_v40, %v9726_v18  ;;  %v7971_v39 = vadd.f32 %v1185_v47, %v9729_v19  ;;  %v1249_v60 = vmax.f32 %v7937_v44, 0.0  ;;  %v1251_v53 = vmax.f32 %v7969_v62, 0.0 }
 0x1dd   :  { %v1252_v42 = vmax.f32 %v7938_v32, 0.0  ;;  %v1254_v57 = vmax.f32 %v7970_v46, 0.0 }
 0x1de   :  { %v1253_v61 = vmax.f32 %v7939_v34, 0.0  ;;  %v1255_v20 = vmax.f32 %v7971_v39, 0.0 }
 0x1df   :  { %v9819_v17 = vpack.c.bf16 %v1252_v42, %v1248_v48  ;;  %v9821_v0 = vpack.c.bf16 %v1254_v57, %v1250_v56 }
 0x1e0   :  { %v9823_v7 = vpack.c.bf16 %v1253_v61, %v1249_v60  ;;  %v963_v16 = vpop.f32.mrb[24].mxu0  ;;  %v1189_v43 = vpop.f32.mrb[24].mxu1  ;;  %v9825_v10 = vpack.c.bf16 %v1255_v20, %v1251_v53 }
 0x1e1   :  { %10676 = vst [vmem:[#allocation48_spill] sm:$0xff] %v9821_v0  ;;  %v7940_v40 = vadd.f32 %v963_v16, %v9720_v14  ;;  %v7972_v63 = vadd.f32 %v1189_v43, %v9723_v15  ;;  %v965_v59 = vpop.f32.mrb[25].mxu0  ;;  %v1191_v32 = vpop.f32.mrb[25].mxu1 }
 0x1e2   :  { %10677 = vst [vmem:[#allocation49_spill] sm:$0xff] %v9825_v10  ;;  %v7941_v44 = vadd.f32 %v965_v59, %v9726_v18  ;;  %v7973_v62 = vadd.f32 %v1191_v32, %v9729_v19  ;;  %v967_v46 = vpop.f32.mrb[26].mxu0  ;;  %v1193_v47 = vpop.f32.mrb[26].mxu1 }
 0x1e3   :  { %v7942_v34 = vadd.f32 %v967_v46, %v9720_v14  ;;  %v7974_v39 = vadd.f32 %v1193_v47, %v9723_v15  ;;  %v969_v48 = vpop.f32.mrb[27].mxu0  ;;  %v1195_v56 = vpop.f32.mrb[27].mxu1  ;;  %v1256_v42 = vmax.f32 %v7940_v40, 0.0  ;;  %v1258_v57 = vmax.f32 %v7972_v63, 0.0 }
 0x1e4   :  { %v7943_v20 = vadd.f32 %v969_v48, %v9726_v18  ;;  %v7975_v16 = vadd.f32 %v1195_v56, %v9729_v19  ;;  %v1257_v61 = vmax.f32 %v7941_v44, 0.0  ;;  %v1259_v43 = vmax.f32 %v7973_v62, 0.0 }
 0x1e5   :  { %v1260_v60 = vmax.f32 %v7942_v34, 0.0  ;;  %v1262_v53 = vmax.f32 %v7974_v39, 0.0 }
 0x1e6   :  { %v1261_v59 = vmax.f32 %v7943_v20, 0.0  ;;  %v1263_v32 = vmax.f32 %v7975_v16, 0.0 }
 0x1e7   :  { %v9835_v8 = vpack.c.bf16 %v1260_v60, %v1256_v42  ;;  %v9837_v2 = vpack.c.bf16 %v1262_v53, %v1258_v57 }
 0x1e8   :  { %v9839_v46 = vpack.c.bf16 %v1261_v59, %v1257_v61  ;;  %v973_v47 = vpop.f32.mrb[28].mxu0  ;;  %v1199_v1 = vpop.f32.mrb[28].mxu1  ;;  %v9841_v52 = vpack.c.bf16 %v1263_v32, %v1259_v43 }
 0x1e9   :  { %10678 = vst [vmem:[#allocation50_spill] sm:$0xff] %v9837_v2  ;;  %v7944_v48 = vadd.f32 %v973_v47, %v9720_v14  ;;  %v7976_v40 = vadd.f32 %v1199_v1, %v9723_v15  ;;  %v975_v63 = vpop.f32.mrb[29].mxu0  ;;  %v1201_v34 = vpop.f32.mrb[29].mxu1 }
 0x1ea   :  { %10679 = vst [vmem:[#allocation51_spill] sm:$0xff] %v9841_v52  ;;  %v7945_v44 = vadd.f32 %v975_v63, %v9726_v18  ;;  %v7977_v62 = vadd.f32 %v1201_v34, %v9729_v19  ;;  %v977_v39 = vpop.f32.mrb[30].mxu0  ;;  %v1203_v56 = vpop.f32.mrb[30].mxu1 }
 0x1eb   :  { %v7946_v20 = vadd.f32 %v977_v39, %v9720_v14  ;;  %v7978_v16 = vadd.f32 %v1203_v56, %v9723_v15  ;;  %v979_v42 = vpop.f32.mrb[31].mxu0  ;;  %v1205_v57 = vpop.f32.mrb[31].mxu1  ;;  %v1264_v61 = vmax.f32 %v7944_v48, 0.0  ;;  %v1266_v1 = vmax.f32 %v7976_v40, 0.0  ;;  %v1528_v39 = vld [vmem:[#allocation7 + $0x4] sm:$0xf] }
 0x1ec   :  { %v7947_v60 = vadd.f32 %v979_v42, %v9726_v18  ;;  %v7979_v53 = vadd.f32 %v1205_v57, %v9729_v19  ;;  %v1265_v32 = vmax.f32 %v7945_v44, 0.0  ;;  %v1267_v47 = vmax.f32 %v7977_v62, 0.0 }
 0x1ed   :  { %v1268_v43 = vmax.f32 %v7946_v20, 0.0  ;;  %v1270_v59 = vmax.f32 %v7978_v16, 0.0  ;;  %v9860_v18 = vrot.slane %v1528_v39, %v9711_v3  ;;  %v9863_v19 = vrot.slane %v1528_v39, %v9713_v6 }
 0x1ee   :  { %v1269_v63 = vmax.f32 %v7947_v60, 0.0  ;;  %v1271_v34 = vmax.f32 %v7979_v53, 0.0  ;;  %v9866_v48 = vrot.slane %v1528_v39, %v9715_v12  ;;  %v9869_v40 = vrot.slane %v1528_v39, %v9717_v13 }
 0x1ef   :  { %v9851_v51 = vpack.c.bf16 %v1268_v43, %v1264_v61  ;;  %v9853_v37 = vpack.c.bf16 %v1270_v59, %v1266_v1 }
 0x1f0   :  { %v9855_v14 = vpack.c.bf16 %v1269_v63, %v1265_v32  ;;  %v9857_v15 = vpack.c.bf16 %v1271_v34, %v1267_v47 }
 0x1f1   :  { %10680 = vst [vmem:[#allocation52_spill] sm:$0xff] %v9853_v37 }
 0x1f2   :  { %10681 = vst [vmem:[#allocation53_spill] sm:$0xff] %v9857_v15 }
 0x230   :  { %v2177_v44 = vpop.f32.mrb[32].mxu0  ;;  %v2403_v62 = vpop.f32.mrb[32].mxu1 }
 0x231   :  { %v7980_v56 = vadd.f32 %v2177_v44, %v9860_v18  ;;  %v8012_v20 = vadd.f32 %v2403_v62, %v9863_v19  ;;  %v2179_v16 = vpop.f32.mrb[33].mxu0  ;;  %v2405_v42 = vpop.f32.mrb[33].mxu1 }
 0x232   :  { %v7981_v57 = vadd.f32 %v2179_v16, %v9866_v48  ;;  %v8013_v60 = vadd.f32 %v2405_v42, %v9869_v40  ;;  %v2181_v53 = vpop.f32.mrb[34].mxu0  ;;  %v2407_v61 = vpop.f32.mrb[34].mxu1 }
 0x233   :  { %v7982_v1 = vadd.f32 %v2181_v53, %v9860_v18  ;;  %v8014_v43 = vadd.f32 %v2407_v61, %v9863_v19  ;;  %v2183_v59 = vpop.f32.mrb[35].mxu0  ;;  %v2409_v32 = vpop.f32.mrb[35].mxu1  ;;  %v2482_v34 = vmax.f32 %v7980_v56, 0.0  ;;  %v2484_v39 = vmax.f32 %v8012_v20, 0.0 }
 0x234   :  { %v7983_v47 = vadd.f32 %v2183_v59, %v9866_v48  ;;  %v8015_v63 = vadd.f32 %v2409_v32, %v9869_v40  ;;  %v2483_v13 = vmax.f32 %v7981_v57, 0.0  ;;  %v2485_v16 = vmax.f32 %v8013_v60, 0.0  ;;  %v8853_v59 = vld [vmem:[#allocation8 + $0x488] ss:$12 sps:$4 sm:$0xff]   ;;  %v8857_v60 = vld [vmem:[#allocation8 + $0x560] ss:$12 sps:$4 sm:$0xff]  }
 0x235   :  { %v2486_v44 = vmax.f32 %v7982_v1, 0.0  ;;  %v2488_v62 = vmax.f32 %v8014_v43, 0.0  ;;  %v8830_v57 = vld [vmem:[#allocation8 + $0x49c] ss:$12 sps:$4 sm:$0xff]  }
 0x236   :  { %v2487_v12 = vmax.f32 %v7983_v47, 0.0  ;;  %v2489_v42 = vmax.f32 %v8015_v63, 0.0 }
 0x237   :  { %v2546_v6 = vpack.c.bf16 %v2486_v44, %v2482_v34  ;;  %v9879_v3 = vpack.c.bf16 %v2488_v62, %v2484_v39 }
 0x238   :  { %v2547_v53 = vpack.c.bf16 %v2487_v12, %v2483_v13  ;;  %v9881_v36 = vpack.c.bf16 %v2489_v42, %v2485_v16  ;;  %v2187_v61 = vpop.f32.mrb[36].mxu0  ;;  %v2413_v23 = vpop.f32.mrb[36].mxu1  ;;  %v8828_v16 = vld [vmem:[#allocation8 + $0x498] ss:$12 sps:$4 sm:$0xff]   ;;  %v8833_v42 = vld [vmem:[#allocation8 + $0x4b4] ss:$12 sps:$4 sm:$0xff]  }
 0x239   :  { %v7984_v32 = vadd.f32 %v2187_v61, %v9860_v18  ;;  %v8016_v56 = vadd.f32 %v2413_v23, %v9863_v19  ;;  %v2189_v20 = vpop.f32.mrb[37].mxu0  ;;  %v2415_v1 = vpop.f32.mrb[37].mxu1  ;;  %v8858_v61 = vld [vmem:[#allocation8 + $0x4a0] ss:$12 sps:$4 sm:$0xff]  }
 0x23a   :  { %v7985_v43 = vadd.f32 %v2189_v20, %v9866_v48  ;;  %v8017_v47 = vadd.f32 %v2415_v1, %v9869_v40  ;;  %v2191_v63 = vpop.f32.mrb[38].mxu0  ;;  %v2417_v12 = vpop.f32.mrb[38].mxu1  ;;  %3250 = vmatprep.mubr.bf16.mxu0 %v2547_v53  ;;  %3476 = vmatprep.mubr.bf16.mxu1 %v2547_v53 }
 0x23b   :  { %v7986_v13 = vadd.f32 %v2191_v63, %v9860_v18  ;;  %v8018_v34 = vadd.f32 %v2417_v12, %v9863_v19  ;;  %v2193_v39 = vpop.f32.mrb[39].mxu0  ;;  %v2419_v44 = vpop.f32.mrb[39].mxu1  ;;  %3251 = vmatmul.mubr.bf16.vlgmr.msra.gmra.mrb[64].mxu0 %v2546_v6  ;;  %3477 = vmatmul.mubr.bf16.vlgmr.msra.gmra.mrb[64].mxu1 %v2546_v6  ;;  %v2490_v20 = vmax.f32 %v7984_v32, 0.0  ;;  %v2492_v1 = vmax.f32 %v8016_v56, 0.0  ;;  %v8862_v63 = vld [vmem:[#allocation8 + $0x578] ss:$12 sps:$4 sm:$0xff]  }
 0x23c   :  { %v7987_v23 = vadd.f32 %v2193_v39, %v9866_v48  ;;  %v8019_v62 = vadd.f32 %v2419_v44, %v9869_v40  ;;  %3332 = vmatpush1.bf16.msra.mxu0 %v8825_v22  ;;  %7597 = vmatpush3.bf16.msra.mxu1 %v8853_v59  ;;  %v2491_v12 = vmax.f32 %v7985_v43, 0.0  ;;  %v2493_v9 = vmax.f32 %v8017_v47, 0.0  ;;  %v8831_v32 = vld [vmem:[#allocation8 + $0x4b0] ss:$12 sps:$4 sm:$0xff]   ;;  %v8863_v56 = vld [vmem:[#allocation8 + $0x4b8] ss:$12 sps:$4 sm:$0xff]  }
 0x23d   :  { %v2494_v53 = vmax.f32 %v7986_v13, 0.0  ;;  %v2496_v11 = vmax.f32 %v8018_v34, 0.0  ;;  %3333 = vmatprep.subr.bf16.mxu0 %v8830_v57  ;;  %7598 = vmatprep.subr.bf16.mxu1 %v8857_v60  ;;  %v8836_v13 = vld [vmem:[#allocation8 + $0x4cc] ss:$12 sps:$4 sm:$0xff]  }
 0x23e   :  { %v2495_v50 = vmax.f32 %v7987_v23, 0.0  ;;  %v2497_v6 = vmax.f32 %v8019_v62, 0.0 }
 0x23f   :  { %v2550_v37 = vpack.c.bf16 %v2494_v53, %v2490_v20  ;;  %v9891_v39 = vpack.c.bf16 %v2496_v11, %v2492_v1  ;;  %v8867_v11 = vld [vmem:[#allocation8 + $0x590] ss:$12 sps:$4 sm:$0xff]   ;;  %v8834_v1 = vld [vmem:[#allocation8 + $0x4c8] ss:$12 sps:$4 sm:$0xff]  }
 0x240   :  { %v2551_v44 = vpack.c.bf16 %v2495_v50, %v2491_v12  ;;  %v9893_v22 = vpack.c.bf16 %v2497_v6, %v2493_v9  ;;  %v2197_v15 = vpop.f32.mrb[40].mxu0  ;;  %v2423_v59 = vpop.f32.mrb[40].mxu1  ;;  %3334 = vmatpush1.bf16.msra.mxu0 %v8828_v16  ;;  %7599 = vmatpush3.bf16.msra.mxu1 %v8858_v61  ;;  %v8839_v53 = vld [vmem:[#allocation8 + $0x4e4] ss:$12 sps:$4 sm:$0xff]  }
 0x241   :  { %v7988_v57 = vadd.f32 %v2197_v15, %v9860_v18  ;;  %v8020_v60 = vadd.f32 %v2423_v59, %v9863_v19  ;;  %v2199_v43 = vpop.f32.mrb[41].mxu0  ;;  %v2425_v47 = vpop.f32.mrb[41].mxu1  ;;  %3335 = vmatprep.subr.bf16.mxu0 %v8833_v42  ;;  %7600 = vmatprep.subr.bf16.mxu1 %v8862_v63  ;;  %v8868_v63 = vld [vmem:[#allocation8 + $0x4d0] ss:$12 sps:$4 sm:$0xff]  }
 0x242   :  { %v7989_v50 = vadd.f32 %v2199_v43, %v9866_v48  ;;  %v8021_v9 = vadd.f32 %v2425_v47, %v9869_v40  ;;  %v2201_v34 = vpop.f32.mrb[42].mxu0  ;;  %v2427_v23 = vpop.f32.mrb[42].mxu1  ;;  %3260 = vmatprep.mubr.bf16.mxu0 %v2551_v44  ;;  %3484 = vmatprep.mubr.bf16.mxu1 %v2551_v44  ;;  %v8872_v43 = vld [vmem:[#allocation8 + $0x5a8] ss:$12 sps:$4 sm:$0xff]  }
 0x243   :  { %v7990_v62 = vadd.f32 %v2201_v34, %v9860_v18  ;;  %v8022_v15 = vadd.f32 %v2427_v23, %v9863_v19  ;;  %v2203_v16 = vpop.f32.mrb[43].mxu0  ;;  %v2429_v61 = vpop.f32.mrb[43].mxu1  ;;  %3261 = vmatmul.mubr.bf16.gmra.mrb[68].mxu0 %v2550_v37  ;;  %3485 = vmatmul.mubr.bf16.gmra.mrb[68].mxu1 %v2550_v37  ;;  %v2498_v12 = vmax.f32 %v7988_v57, 0.0  ;;  %v2500_v6 = vmax.f32 %v8020_v60, 0.0  ;;  %v8837_v57 = vld [vmem:[#allocation8 + $0x4e0] ss:$12 sps:$4 sm:$0xff]  }
 0x244   :  { %v7991_v42 = vadd.f32 %v2203_v16, %v9866_v48  ;;  %v8023_v20 = vadd.f32 %v2429_v61, %v9869_v40  ;;  %3336 = vmatpush1.bf16.msra.mxu0 %v8831_v32  ;;  %7601 = vmatpush3.bf16.msra.mxu1 %v8863_v56  ;;  %v2499_v47 = vmax.f32 %v7989_v50, 0.0  ;;  %v2501_v34 = vmax.f32 %v8021_v9, 0.0  ;;  %v8873_v60 = vld [vmem:[#allocation8 + $0x4e8] ss:$12 sps:$4 sm:$0xff]  }
 0x245   :  { %v2502_v44 = vmax.f32 %v7990_v62, 0.0  ;;  %v2504_v59 = vmax.f32 %v8022_v15, 0.0  ;;  %3337 = vmatprep.subr.bf16.mxu0 %v8836_v13  ;;  %7602 = vmatprep.subr.bf16.mxu1 %v8867_v11  ;;  %v8842_v62 = vld [vmem:[#allocation8 + $0x4fc] ss:$12 sps:$4 sm:$0xff]   ;;  %v8877_v15 = vld [vmem:[#allocation8 + $0x5c0] ss:$12 sps:$4 sm:$0xff]  }
 0x246   :  { %v2503_v23 = vmax.f32 %v7991_v42, 0.0  ;;  %v2505_v37 = vmax.f32 %v8023_v20, 0.0 }
 0x247   :  { %v2554_v2 = vpack.c.bf16 %v2502_v44, %v2498_v12  ;;  %v9903_v16 = vpack.c.bf16 %v2504_v59, %v2500_v6 }
 0x248   :  { %v2555_v61 = vpack.c.bf16 %v2503_v23, %v2499_v47  ;;  %v9905_v32 = vpack.c.bf16 %v2505_v37, %v2501_v34  ;;  %v2207_v52 = vpop.f32.mrb[44].mxu0  ;;  %v2433_v56 = vpop.f32.mrb[44].mxu1  ;;  %3338 = vmatpush1.bf16.msra.mxu0 %v8834_v1  ;;  %7603 = vmatpush3.bf16.msra.mxu1 %v8868_v63  ;;  %v8845_v47 = vld [vmem:[#allocation8 + $0x514] ss:$12 sps:$4 sm:$0xff]  }
 0x249   :  { %v7992_v13 = vadd.f32 %v2207_v52, %v9860_v18  ;;  %v8024_v11 = vadd.f32 %v2433_v56, %v9863_v19  ;;  %v2209_v50 = vpop.f32.mrb[45].mxu0  ;;  %v2435_v9 = vpop.f32.mrb[45].mxu1  ;;  %3339 = vmatprep.subr.bf16.mxu0 %v8839_v53  ;;  %7604 = vmatprep.subr.bf16.mxu1 %v8872_v43  ;;  %v8840_v43 = vld [vmem:[#allocation8 + $0x4f8] ss:$12 sps:$4 sm:$0xff]   ;;  %v8878_v34 = vld [vmem:[#allocation8 + $0x500] ss:$12 sps:$4 sm:$0xff]  }
 0x24a   :  { %v7993_v42 = vadd.f32 %v2209_v50, %v9866_v48  ;;  %v8025_v20 = vadd.f32 %v2435_v9, %v9869_v40  ;;  %v2211_v12 = vpop.f32.mrb[46].mxu0  ;;  %v2437_v6 = vpop.f32.mrb[46].mxu1  ;;  %3270 = vmatprep.mubr.bf16.mxu0 %v2555_v61  ;;  %3492 = vmatprep.mubr.bf16.mxu1 %v2555_v61  ;;  %v8882_v50 = vld [vmem:[#allocation8 + $0x5d8] ss:$12 sps:$4 sm:$0xff]  }
 0x24b   :  { %v7994_v1 = vadd.f32 %v2211_v12, %v9860_v18  ;;  %v8026_v52 = vadd.f32 %v2437_v6, %v9863_v19  ;;  %v2213_v63 = vpop.f32.mrb[47].mxu0  ;;  %v2439_v44 = vpop.f32.mrb[47].mxu1  ;;  %3271 = vmatmul.mubr.bf16.gmra.mrb[72].mxu0 %v2554_v2  ;;  %3493 = vmatmul.mubr.bf16.gmra.mrb[72].mxu1 %v2554_v2  ;;  %v2506_v23 = vmax.f32 %v7992_v13, 0.0  ;;  %v2508_v37 = vmax.f32 %v8024_v11, 0.0  ;;  %v8843_v13 = vld [vmem:[#allocation8 + $0x510] ss:$12 sps:$4 sm:$0xff]  }
 0x24c   :  { %v7995_v53 = vadd.f32 %v2213_v63, %v9866_v48  ;;  %v8027_v59 = vadd.f32 %v2439_v44, %v9869_v40  ;;  %3340 = vmatpush1.bf16.msra.mxu0 %v8837_v57  ;;  %7605 = vmatpush3.bf16.msra.mxu1 %v8873_v60  ;;  %v2507_v9 = vmax.f32 %v7993_v42, 0.0  ;;  %v2509_v12 = vmax.f32 %v8025_v20, 0.0  ;;  %v8883_v11 = vld [vmem:[#allocation8 + $0x518] ss:$12 sps:$4 sm:$0xff]  }
 0x24d   :  { %v2510_v61 = vmax.f32 %v7994_v1, 0.0  ;;  %v2512_v56 = vmax.f32 %v8026_v52, 0.0  ;;  %3341 = vmatprep.subr.bf16.mxu0 %v8842_v62  ;;  %7606 = vmatprep.subr.bf16.mxu1 %v8877_v15  ;;  %v8848_v1 = vld [vmem:[#allocation8 + $0x52c] ss:$12 sps:$4 sm:$0xff]   ;;  %v8887_v52 = vld [vmem:[#allocation8 + $0x5f0] ss:$12 sps:$4 sm:$0xff]  }
 0x24e   :  { %v2511_v6 = vmax.f32 %v7995_v53, 0.0  ;;  %v2513_v2 = vmax.f32 %v8027_v59, 0.0 }
 0x24f   :  { %v2558_v0 = vpack.c.bf16 %v2510_v61, %v2506_v23  ;;  %v9915_v63 = vpack.c.bf16 %v2512_v56, %v2508_v37 }
 0x250   :  { %v2559_v44 = vpack.c.bf16 %v2511_v6, %v2507_v9  ;;  %v9917_v57 = vpack.c.bf16 %v2513_v2, %v2509_v12  ;;  %v2217_v10 = vpop.f32.mrb[48].mxu0  ;;  %v2443_v60 = vpop.f32.mrb[48].mxu1  ;;  %3342 = vmatpush1.bf16.msra.mxu0 %v8840_v43  ;;  %7607 = vmatpush3.bf16.msra.mxu1 %v8878_v34  ;;  %v8851_v9 = vld [vmem:[#allocation8 + $0x544] ss:$12 sps:$4 sm:$0xff]  }
 0x251   :  { %v7996_v62 = vadd.f32 %v2217_v10, %v9860_v18  ;;  %v8028_v15 = vadd.f32 %v2443_v60, %v9863_v19  ;;  %v2219_v42 = vpop.f32.mrb[49].mxu0  ;;  %v2445_v20 = vpop.f32.mrb[49].mxu1  ;;  %3343 = vmatprep.subr.bf16.mxu0 %v8845_v47  ;;  %7608 = vmatprep.subr.bf16.mxu1 %v8882_v50  ;;  %v8846_v50 = vld [vmem:[#allocation8 + $0x528] ss:$12 sps:$4 sm:$0xff]   ;;  %v8888_v12 = vld [vmem:[#allocation8 + $0x530] ss:$12 sps:$4 sm:$0xff]  }
 0x252   :  { %v7997_v53 = vadd.f32 %v2219_v42, %v9866_v48  ;;  %v8029_v59 = vadd.f32 %v2445_v20, %v9869_v40  ;;  %v2221_v23 = vpop.f32.mrb[50].mxu0  ;;  %v2447_v37 = vpop.f32.mrb[50].mxu1  ;;  %3280 = vmatprep.mubr.bf16.mxu0 %v2559_v44  ;;  %3500 = vmatprep.mubr.bf16.mxu1 %v2559_v44  ;;  %v8916_v42 = vld [vmem:[#allocation8 + $0xc8] ss:$12 sps:$4 sm:$0xff]  }
 0x253   :  { %v7998_v43 = vadd.f32 %v2221_v23, %v9860_v18  ;;  %v8030_v10 = vadd.f32 %v2447_v37, %v9863_v19  ;;  %v2223_v34 = vpop.f32.mrb[51].mxu0  ;;  %v2449_v61 = vpop.f32.mrb[51].mxu1  ;;  %3281 = vmatmul.mubr.bf16.gmra.mrb[76].mxu0 %v2558_v0  ;;  %3501 = vmatmul.mubr.bf16.gmra.mrb[76].mxu1 %v2558_v0  ;;  %v2514_v6 = vmax.f32 %v7996_v62, 0.0  ;;  %v2516_v2 = vmax.f32 %v8028_v15, 0.0  ;;  %v8849_v62 = vld [vmem:[#allocation8 + $0x540] ss:$12 sps:$4 sm:$0xff]  }
 0x254   :  { %v7999_v47 = vadd.f32 %v2223_v34, %v9866_v48  ;;  %v8031_v56 = vadd.f32 %v2449_v61, %v9869_v40  ;;  %3344 = vmatpush1.bf16.msra.mxu0 %v8843_v13  ;;  %7609 = vmatpush3.bf16.msra.mxu1 %v8883_v11  ;;  %v2515_v20 = vmax.f32 %v7997_v53, 0.0  ;;  %v2517_v23 = vmax.f32 %v8029_v59, 0.0  ;;  %v8856_v59 = vld [vmem:[#allocation8 + $0x55c] ss:$12 sps:$4 sm:$0xff]  }
 0x255   :  { %v2518_v44 = vmax.f32 %v7998_v43, 0.0  ;;  %v2520_v60 = vmax.f32 %v8030_v10, 0.0  ;;  %3345 = vmatprep.subr.bf16.mxu0 %v8848_v1  ;;  %7610 = vmatprep.subr.bf16.mxu1 %v8887_v52 }
 0x256   :  { %v2519_v37 = vmax.f32 %v7999_v47, 0.0  ;;  %v2521_v0 = vmax.f32 %v8031_v56, 0.0 }
 0x257   :  { %v2562_v55 = vpack.c.bf16 %v2518_v44, %v2514_v6  ;;  %v9927_v34 = vpack.c.bf16 %v2520_v60, %v2516_v2  ;;  %v8854_v44 = vld [vmem:[#allocation8 + $0x558] ss:$12 sps:$4 sm:$0xff]  }
 0x258   :  { %v2563_v61 = vpack.c.bf16 %v2519_v37, %v2515_v20  ;;  %v9929_v13 = vpack.c.bf16 %v2521_v0, %v2517_v23  ;;  %v2227_v26 = vpop.f32.mrb[52].mxu0  ;;  %v2453_v11 = vpop.f32.mrb[52].mxu1  ;;  %3346 = vmatpush1.bf16.msra.mxu0 %v8846_v50  ;;  %7611 = vmatpush3.bf16.msra.mxu1 %v8888_v12  ;;  %v8861_v37 = vld [vmem:[#allocation8 + $0x574] ss:$12 sps:$4 sm:$0xff]  }
 0x259   :  { %v8000_v15 = vadd.f32 %v2227_v26, %v9860_v18  ;;  %v8032_v1 = vadd.f32 %v2453_v11, %v9863_v19  ;;  %v2229_v52 = vpop.f32.mrb[53].mxu0  ;;  %v2455_v53 = vpop.f32.mrb[53].mxu1  ;;  %3347 = vmatprep.subr.bf16.mxu0 %v8851_v9  ;;  %7660 = vmatprep.subr.bf16.mxu1 %v8916_v42 }
 0x25a   :  { %v8001_v43 = vadd.f32 %v2229_v52, %v9866_v48  ;;  %v8033_v10 = vadd.f32 %v2455_v53, %v9869_v40  ;;  %v2231_v47 = vpop.f32.mrb[54].mxu0  ;;  %v2457_v56 = vpop.f32.mrb[54].mxu1  ;;  %3290 = vmatprep.mubr.bf16.mxu0 %v2563_v61  ;;  %3508 = vmatprep.mubr.bf16.mxu1 %v2563_v61 }
 0x25b   :  { %v8002_v50 = vadd.f32 %v2231_v47, %v9860_v18  ;;  %v8034_v12 = vadd.f32 %v2457_v56, %v9863_v19  ;;  %v2233_v26 = vpop.f32.mrb[55].mxu0  ;;  %v2459_v6 = vpop.f32.mrb[55].mxu1  ;;  %3291 = vmatmul.mubr.bf16.gmra.mrb[80].mxu0 %v2562_v55  ;;  %3509 = vmatmul.mubr.bf16.gmra.mrb[80].mxu1 %v2562_v55  ;;  %v2522_v60 = vmax.f32 %v8000_v15, 0.0  ;;  %v2524_v42 = vmax.f32 %v8032_v1, 0.0 }
 0x25c   :  { %v8003_v9 = vadd.f32 %v2233_v26, %v9866_v48  ;;  %v8035_v2 = vadd.f32 %v2459_v6, %v9869_v40  ;;  %3348 = vmatpush1.bf16.msra.mxu0 %v8849_v62  ;;  %v2523_v0 = vmax.f32 %v8001_v43, 0.0  ;;  %v2525_v61 = vmax.f32 %v8033_v10, 0.0  ;;  %v8859_v62 = vld [vmem:[#allocation8 + $0x570] ss:$12 sps:$4 sm:$0xff]   ;;  %v8866_v43 = vld [vmem:[#allocation8 + $0x58c] ss:$12 sps:$4 sm:$0xff]  }
 0x25d   :  { %v2526_v20 = vmax.f32 %v8002_v50, 0.0  ;;  %v2528_v23 = vmax.f32 %v8034_v12, 0.0  ;;  %3349 = vmatprep.subr.bf16.mxu0 %v8856_v59 }
 0x25e   :  { %v2527_v11 = vmax.f32 %v8003_v9, 0.0  ;;  %v2529_v52 = vmax.f32 %v8035_v2, 0.0 }
 0x25f   :  { %v2566_v53 = vpack.c.bf16 %v2526_v20, %v2522_v60  ;;  %v9939_v47 = vpack.c.bf16 %v2528_v23, %v2524_v42 }
 0x260   :  { %v2567_v55 = vpack.c.bf16 %v2527_v11, %v2523_v0  ;;  %v9941_v56 = vpack.c.bf16 %v2529_v52, %v2525_v61  ;;  %v2237_v26 = vpop.f32.mrb[56].mxu0  ;;  %v2463_v6 = vpop.f32.mrb[56].mxu1  ;;  %3350 = vmatpush1.bf16.msra.mxu0 %v8854_v44  ;;  %v8864_v0 = vld [vmem:[#allocation8 + $0x588] ss:$12 sps:$4 sm:$0xff]  }
 0x261   :  { %v8004_v15 = vadd.f32 %v2237_v26, %v9860_v18  ;;  %v8036_v1 = vadd.f32 %v2463_v6, %v9863_v19  ;;  %v2239_v59 = vpop.f32.mrb[57].mxu0  ;;  %v2465_v50 = vpop.f32.mrb[57].mxu1  ;;  %3351 = vmatprep.subr.bf16.mxu0 %v8861_v37 }
 0x262   :  { %v8005_v10 = vadd.f32 %v2239_v59, %v9866_v48  ;;  %v8037_v12 = vadd.f32 %v2465_v50, %v9869_v40  ;;  %v2241_v9 = vpop.f32.mrb[58].mxu0  ;;  %v2467_v2 = vpop.f32.mrb[58].mxu1  ;;  %3300 = vmatprep.mubr.bf16.mxu0 %v2567_v55  ;;  %3516 = vmatprep.mubr.bf16.mxu1 %v2567_v55  ;;  %v8871_v55 = vld [vmem:[#allocation8 + $0x5a4] ss:$12 sps:$4 sm:$0xff]  }
 0x263   :  { %v8006_v60 = vadd.f32 %v2241_v9, %v9860_v18  ;;  %v8038_v44 = vadd.f32 %v2467_v2, %v9863_v19  ;;  %v2243_v42 = vpop.f32.mrb[59].mxu0  ;;  %v2469_v20 = vpop.f32.mrb[59].mxu1  ;;  %3301 = vmatmul.mubr.bf16.gmra.mrb[84].mxu0 %v2566_v53  ;;  %3517 = vmatmul.mubr.bf16.gmra.mrb[84].mxu1 %v2566_v53  ;;  %v2530_v61 = vmax.f32 %v8004_v15, 0.0  ;;  %v2532_v11 = vmax.f32 %v8036_v1, 0.0 }
 0x264   :  { %v8007_v23 = vadd.f32 %v2243_v42, %v9866_v48  ;;  %v8039_v37 = vadd.f32 %v2469_v20, %v9869_v40  ;;  %3352 = vmatpush1.bf16.msra.mxu0 %v8859_v62  ;;  %v2531_v6 = vmax.f32 %v8005_v10, 0.0  ;;  %v2533_v59 = vmax.f32 %v8037_v12, 0.0  ;;  %v8869_v62 = vld [vmem:[#allocation8 + $0x5a0] ss:$12 sps:$4 sm:$0xff]   ;;  %v8876_v10 = vld [vmem:[#allocation8 + $0x5bc] ss:$12 sps:$4 sm:$0xff]  }
 0x265   :  { %v2534_v52 = vmax.f32 %v8006_v60, 0.0  ;;  %v2536_v26 = vmax.f32 %v8038_v44, 0.0  ;;  %3353 = vmatprep.subr.bf16.mxu0 %v8866_v43 }
 0x266   :  { %v2535_v50 = vmax.f32 %v8007_v23, 0.0  ;;  %v2537_v9 = vmax.f32 %v8039_v37, 0.0 }
 0x267   :  { %v2570_v2 = vpack.c.bf16 %v2534_v52, %v2530_v61  ;;  %v9951_v54 = vpack.c.bf16 %v2536_v26, %v2532_v11 }
 0x268   :  { %v2571_v53 = vpack.c.bf16 %v2535_v50, %v2531_v6  ;;  %v9953_v25 = vpack.c.bf16 %v2537_v9, %v2533_v59  ;;  %v2247_v42 = vpop.f32.mrb[60].mxu0  ;;  %v2473_v20 = vpop.f32.mrb[60].mxu1  ;;  %3354 = vmatpush1.bf16.msra.mxu0 %v8864_v0  ;;  %v8874_v6 = vld [vmem:[#allocation8 + $0x5b8] ss:$12 sps:$4 sm:$0xff]  }
 0x269   :  { %v8008_v15 = vadd.f32 %v2247_v42, %v9860_v18  ;;  %v8040_v1 = vadd.f32 %v2473_v20, %v9863_v19  ;;  %v2249_v43 = vpop.f32.mrb[61].mxu0  ;;  %v2475_v60 = vpop.f32.mrb[61].mxu1  ;;  %3355 = vmatprep.subr.bf16.mxu0 %v8871_v55 }
 0x26a   :  { %v8009_v12 = vadd.f32 %v2249_v43, %v9866_v48  ;;  %v8041_v44 = vadd.f32 %v2475_v60, %v9869_v40  ;;  %v2251_v23 = vpop.f32.mrb[62].mxu0  ;;  %v2477_v37 = vpop.f32.mrb[62].mxu1  ;;  %3310 = vmatprep.mubr.bf16.mxu0 %v2571_v53  ;;  %3524 = vmatprep.mubr.bf16.mxu1 %v2571_v53  ;;  %v8881_v53 = vld [vmem:[#allocation8 + $0x5d4] ss:$12 sps:$4 sm:$0xff]  }
 0x26b   :  { %v8010_v61 = vadd.f32 %v2251_v23, %v9860_v18  ;;  %v8042_v0 = vadd.f32 %v2477_v37, %v9863_v19  ;;  %v2253_v11 = vpop.f32.mrb[63].mxu0  ;;  %v2479_v52 = vpop.f32.mrb[63].mxu1  ;;  %3311 = vmatmul.mubr.bf16.gmra.mrb[88].mxu0 %v2570_v2  ;;  %3525 = vmatmul.mubr.bf16.gmra.mrb[88].mxu1 %v2570_v2  ;;  %v2538_v59 = vmax.f32 %v8008_v15, 0.0  ;;  %v2540_v50 = vmax.f32 %v8040_v1, 0.0  ;;  %v8891_v15 = vld [vmem:[#allocation8 + $0x4] ss:$12 sps:$4 sm:$0xff]  }
 0x26c   :  { %v8011_v26 = vadd.f32 %v2253_v11, %v9866_v48  ;;  %v8043_v55 = vadd.f32 %v2479_v52, %v9869_v40  ;;  %3356 = vmatpush1.bf16.msra.mxu0 %v8869_v62  ;;  %v2539_v20 = vmax.f32 %v8009_v12, 0.0  ;;  %v2541_v18 = vmax.f32 %v8041_v44, 0.0  ;;  %v8879_v48 = vld [vmem:[#allocation8 + $0x5d0] ss:$12 sps:$4 sm:$0xff]   ;;  %v8886_v40 = vld [vmem:[#allocation8 + $0x5ec] ss:$12 sps:$4 sm:$0xff]  }
 0x26d   :  { %v2542_v9 = vmax.f32 %v8010_v61, 0.0  ;;  %v2544_v42 = vmax.f32 %v8042_v0, 0.0  ;;  %3357 = vmatprep.subr.bf16.mxu0 %v8876_v10  ;;  %v8884_v62 = vld [vmem:[#allocation8 + $0x5e8] ss:$12 sps:$4 sm:$0xff]   ;;  %v8889_v1 = vld [vmem:[#allocation8] ss:$12 sps:$4 sm:$0xff]  }
 0x26e   :  { %v2543_v43 = vmax.f32 %v8011_v26, 0.0  ;;  %v2545_v19 = vmax.f32 %v8043_v55, 0.0  ;;  %v8917_v10 = vld [vmem:[#allocation8 + $0x8] ss:$12 sps:$4 sm:$0xff]   ;;  %v8921_v44 = vld [vmem:[#allocation8 + $0xe0] ss:$12 sps:$4 sm:$0xff]  }
 0x26f   :  { %v2574_v60 = vpack.c.bf16 %v2542_v9, %v2538_v59  ;;  %v9963_v23 = vpack.c.bf16 %v2544_v42, %v2540_v50  ;;  %v8894_v12 = vld [vmem:[#allocation8 + $0x1c] ss:$12 sps:$4 sm:$0xff]   ;;  %v8892_v61 = vld [vmem:[#allocation8 + $0x18] ss:$12 sps:$4 sm:$0xff]   ;;  %v8897_v0 = vld [vmem:[#allocation8 + $0x34] ss:$12 sps:$4 sm:$0xff]  }
 0x270   :  { %v2575_v2 = vpack.c.bf16 %v2543_v43, %v2539_v20  ;;  %v9965_v37 = vpack.c.bf16 %v2545_v19, %v2541_v18  ;;  %3358 = vmatpush1.bf16.msra.mxu0 %v8874_v6  ;;  %v8926_v11 = vld [vmem:[#allocation8 + $0xf8] ss:$12 sps:$4 sm:$0xff]   ;;  %v8895_v52 = vld [vmem:[#allocation8 + $0x30] ss:$12 sps:$4 sm:$0xff]   ;;  %v8936_v50 = vld [vmem:[#allocation8 + $0x128] ss:$12 sps:$4 sm:$0xff]  }
 0x271   :  { %3359 = vmatprep.subr.bf16.mxu0 %v8881_v53  ;;  %v8927_v26 = vld [vmem:[#allocation8 + $0x38] ss:$12 sps:$4 sm:$0xff]   ;;  %v8932_v6 = vld [vmem:[#allocation8 + $0x50] ss:$12 sps:$4 sm:$0xff]   ;;  %v8901_v9 = vld [vmem:[#allocation8 + $0x60] ss:$12 sps:$4 sm:$0xff]  }
 0x272   :  { %3320 = vmatprep.mubr.bf16.mxu0 %v2575_v2  ;;  %3532 = vmatprep.mubr.bf16.mxu1 %v2575_v2  ;;  %v8900_v55 = vld [vmem:[#allocation8 + $0x4c] ss:$12 sps:$4 sm:$0xff]   ;;  %v8903_v59 = vld [vmem:[#allocation8 + $0x64] ss:$12 sps:$4 sm:$0xff]   ;;  %v8937_v42 = vld [vmem:[#allocation8 + $0x68] ss:$12 sps:$4 sm:$0xff]  }
 0x273   :  { %3321 = vmatmul.mubr.bf16.gmra.mrb[92].mxu0 %v2574_v60  ;;  %3533 = vmatmul.mubr.bf16.gmra.mrb[92].mxu1 %v2574_v60  ;;  %v8906_v53 = vld [vmem:[#allocation8 + $0x7c] ss:$12 sps:$4 sm:$0xff]   ;;  %v8942_v20 = vld [vmem:[#allocation8 + $0x80] ss:$12 sps:$4 sm:$0xff]   ;;  %v8946_v43 = vld [vmem:[#allocation8 + $0x158] ss:$12 sps:$4 sm:$0xff]  }
 0x274   :  { %3360 = vmatpush1.bf16.msra.mxu0 %v8879_v48  ;;  %3363 = vmatprep.mubr.bf16.mxu0 %v9881_v36  ;;  %v8909_v18 = vld [vmem:[#allocation8 + $0x94] ss:$12 sps:$4 sm:$0xff]   ;;  %v8907_v19 = vld [vmem:[#allocation8 + $0x90] ss:$12 sps:$4 sm:$0xff]   ;;  %v8947_v60 = vld [vmem:[#allocation8 + $0x98] ss:$12 sps:$4 sm:$0xff]  }
 0x275   :  { %3573 = vmatprep.mubr.bf16.mxu1 %v9881_v36  ;;  %3361 = vmatprep.subr.bf16.mxu0 %v8886_v40  ;;  %v8922_v36 = vld [vmem:[#allocation8 + $0x20] ss:$12 sps:$4 sm:$0xff]   ;;  %v8952_v48 = vld [vmem:[#allocation8 + $0xb0] ss:$12 sps:$4 sm:$0xff]  }
 0x276   :  { %v8912_v2 = vld [vmem:[#allocation8 + $0xac] ss:$12 sps:$4 sm:$0xff]   ;;  %v8915_v40 = vld [vmem:[#allocation8 + $0xc4] ss:$12 sps:$4 sm:$0xff]  }
 0x278   :  { %3362 = vmatpush1.bf16.msra.mxu0 %v8884_v62  ;;  %v8980_v62 = vld [vmem:[#allocation8 + $0x248] ss:$12 sps:$4 sm:$0xff]  }
 0x279   :  { %4150 = vmatprep.subr.bf16.mxu0 %v8891_v15  ;;  %v8913_v15 = vld [vmem:[#allocation8 + $0xc0] ss:$12 sps:$4 sm:$0xff]  }
 0x27b   :  { %3364 = vmatmul.mubr.bf16.vlgmr.msra.gmra.mrb[64].mxu0 %v9879_v3  ;;  %3574 = vmatmul.mubr.bf16.vlgmr.msra.gmra.mrb[96].mxu1 %v9879_v3  ;;  %v8931_v3 = vld [vmem:[#allocation8 + $0x110] ss:$12 sps:$4 sm:$0xff]  }
 0x27c   :  { %3373 = vmatprep.mubr.bf16.mxu0 %v9893_v22  ;;  %3581 = vmatprep.mubr.bf16.mxu1 %v9893_v22  ;;  %v8898_v22 = vld [vmem:[#allocation8 + $0x48] ss:$12 sps:$4 sm:$0xff]  }
 0x27d   :  { %4151 = vmatpush1.bf16.msra.mxu0 %v8889_v1  ;;  %7661 = vmatpush3.bf16.msra.mxu1 %v8917_v10  ;;  %v8920_v1 = vld [vmem:[#allocation8 + $0xdc] ss:$12 sps:$4 sm:$0xff]  }
 0x27e   :  { %4152 = vmatprep.subr.bf16.mxu0 %v8894_v12  ;;  %7662 = vmatprep.subr.bf16.mxu1 %v8921_v44  ;;  %v8923_v10 = vld [vmem:[#allocation8 + $0xf0] ss:$12 sps:$4 sm:$0xff]   ;;  %v8930_v12 = vld [vmem:[#allocation8 + $0x10c] ss:$12 sps:$4 sm:$0xff]  }
 0x27f   :  { %v8933_v44 = vld [vmem:[#allocation8 + $0x120] ss:$12 sps:$4 sm:$0xff]  }
 0x281   :  { %4153 = vmatpush1.bf16.msra.mxu0 %v8892_v61  ;;  %7663 = vmatpush3.bf16.msra.mxu1 %v8922_v36  ;;  %v8940_v61 = vld [vmem:[#allocation8 + $0x13c] ss:$12 sps:$4 sm:$0xff]  }
 0x282   :  { %4154 = vmatprep.subr.bf16.mxu0 %v8897_v0  ;;  %7664 = vmatprep.subr.bf16.mxu1 %v8926_v11  ;;  %v8943_v36 = vld [vmem:[#allocation8 + $0x150] ss:$12 sps:$4 sm:$0xff]   ;;  %v8950_v0 = vld [vmem:[#allocation8 + $0x16c] ss:$12 sps:$4 sm:$0xff]  }
 0x283   :  { %3374 = vmatmul.mubr.bf16.gmra.mrb[68].mxu0 %v9891_v39  ;;  %3582 = vmatmul.mubr.bf16.gmra.mrb[100].mxu1 %v9891_v39  ;;  %v8941_v39 = vld [vmem:[#allocation8 + $0x140] ss:$12 sps:$4 sm:$0xff]  }
 0x284   :  { %3383 = vmatprep.mubr.bf16.mxu0 %v9905_v32  ;;  %3589 = vmatprep.mubr.bf16.mxu1 %v9905_v32  ;;  %v8904_v32 = vld [vmem:[#allocation8 + $0x78] ss:$12 sps:$4 sm:$0xff]   ;;  %v8953_v11 = vld [vmem:[#allocation8 + $0x180] ss:$12 sps:$4 sm:$0xff]  }
 0x285   :  { %4155 = vmatpush1.bf16.msra.mxu0 %v8895_v52  ;;  %7665 = vmatpush3.bf16.msra.mxu1 %v8927_v26  ;;  %v8958_v52 = vld [vmem:[#allocation8 + $0x19c] ss:$12 sps:$4 sm:$0xff]  }
 0x286   :  { %4156 = vmatprep.subr.bf16.mxu0 %v8900_v55  ;;  %7666 = vmatprep.subr.bf16.mxu1 %v8931_v3  ;;  %v8981_v26 = vld [vmem:[#allocation8 + $0x188] ss:$12 sps:$4 sm:$0xff]   ;;  %v8985_v55 = vld [vmem:[#allocation8 + $0x260] ss:$12 sps:$4 sm:$0xff]  }
 0x287   :  { %v8986_v3 = vld [vmem:[#allocation8 + $0x1a0] ss:$12 sps:$4 sm:$0xff]  }
 0x289   :  { %4157 = vmatpush1.bf16.msra.mxu0 %v8898_v22  ;;  %7667 = vmatpush3.bf16.msra.mxu1 %v8932_v6  ;;  %v8990_v22 = vld [vmem:[#allocation8 + $0x278] ss:$12 sps:$4 sm:$0xff]   ;;  %v8959_v6 = vld [vmem:[#allocation8 + $0x1b0] ss:$12 sps:$4 sm:$0xff]  }
 0x28a   :  { %4158 = vmatprep.subr.bf16.mxu0 %v8903_v59  ;;  %7668 = vmatprep.subr.bf16.mxu1 %v8936_v50  ;;  %v8964_v59 = vld [vmem:[#allocation8 + $0x1cc] ss:$12 sps:$4 sm:$0xff]  }
 0x28b   :  { %3384 = vmatmul.mubr.bf16.gmra.mrb[72].mxu0 %v9903_v16  ;;  %3590 = vmatmul.mubr.bf16.gmra.mrb[104].mxu1 %v9903_v16  ;;  %v8951_v16 = vld [vmem:[#allocation8 + $0x170] ss:$12 sps:$4 sm:$0xff]   ;;  %v8991_v50 = vld [vmem:[#allocation8 + $0x1b8] ss:$12 sps:$4 sm:$0xff]  }
 0x28c   :  { %3393 = vmatprep.mubr.bf16.mxu0 %v9917_v57  ;;  %3597 = vmatprep.mubr.bf16.mxu1 %v9917_v57  ;;  %v8910_v57 = vld [vmem:[#allocation8 + $0xa8] ss:$12 sps:$4 sm:$0xff]  }
 0x28d   :  { %4159 = vmatpush1.bf16.msra.mxu0 %v8901_v9  ;;  %7669 = vmatpush3.bf16.msra.mxu1 %v8937_v42  ;;  %v8967_v9 = vld [vmem:[#allocation8 + $0x1e4] ss:$12 sps:$4 sm:$0xff]  }
 0x28e   :  { %4160 = vmatprep.subr.bf16.mxu0 %v8906_v53  ;;  %7670 = vmatprep.subr.bf16.mxu1 %v8941_v39  ;;  %v8996_v42 = vld [vmem:[#allocation8 + $0x1d0] ss:$12 sps:$4 sm:$0xff]   ;;  %v9000_v53 = vld [vmem:[#allocation8 + $0x2a8] ss:$12 sps:$4 sm:$0xff]   ;;  %v8965_v39 = vld [vmem:[#allocation8 + $0x1e0] ss:$12 sps:$4 sm:$0xff]  }
 0x291   :  { %4161 = vmatpush1.bf16.msra.mxu0 %v8904_v32  ;;  %7671 = vmatpush3.bf16.msra.mxu1 %v8942_v20  ;;  %v8970_v32 = vld [vmem:[#allocation8 + $0x1fc] ss:$12 sps:$4 sm:$0xff]  }
 0x292   :  { %4162 = vmatprep.subr.bf16.mxu0 %v8909_v18  ;;  %7672 = vmatprep.subr.bf16.mxu1 %v8946_v43  ;;  %v9001_v20 = vld [vmem:[#allocation8 + $0x1e8] ss:$12 sps:$4 sm:$0xff]   ;;  %v9006_v43 = vld [vmem:[#allocation8 + $0x200] ss:$12 sps:$4 sm:$0xff]  }
 0x293   :  { %3394 = vmatmul.mubr.bf16.gmra.mrb[76].mxu0 %v9915_v63  ;;  %3598 = vmatmul.mubr.bf16.gmra.mrb[108].mxu1 %v9915_v63  ;;  %v8918_v63 = vld [vmem:[#allocation8 + $0xd8] ss:$12 sps:$4 sm:$0xff]   ;;  %v8973_v18 = vld [vmem:[#allocation8 + $0x214] ss:$12 sps:$4 sm:$0xff]  }
 0x294   :  { %3403 = vmatprep.mubr.bf16.mxu0 %v9929_v13  ;;  %3605 = vmatprep.mubr.bf16.mxu1 %v9929_v13  ;;  %v8925_v13 = vld [vmem:[#allocation8 + $0xf4] ss:$12 sps:$4 sm:$0xff]  }
 0x295   :  { %4163 = vmatpush1.bf16.msra.mxu0 %v8907_v19  ;;  %7673 = vmatpush3.bf16.msra.mxu1 %v8947_v60  ;;  %v9010_v19 = vld [vmem:[#allocation8 + $0x2d8] ss:$12 sps:$4 sm:$0xff]   ;;  %v8971_v60 = vld [vmem:[#allocation8 + $0x210] ss:$12 sps:$4 sm:$0xff]  }
 0x296   :  { %4164 = vmatprep.subr.bf16.mxu0 %v8912_v2  ;;  %7674 = vmatprep.subr.bf16.mxu1 %v8951_v16  ;;  %v8976_v2 = vld [vmem:[#allocation8 + $0x22c] ss:$12 sps:$4 sm:$0xff]  }
 0x297   :  { %v9011_v16 = vld [vmem:[#allocation8 + $0x218] ss:$12 sps:$4 sm:$0xff]  }
 0x299   :  { %4165 = vmatpush1.bf16.msra.mxu0 %v8910_v57  ;;  %7675 = vmatpush3.bf16.msra.mxu1 %v8952_v48  ;;  %v8979_v57 = vld [vmem:[#allocation8 + $0x244] ss:$12 sps:$4 sm:$0xff]  }
 0x29a   :  { %4166 = vmatprep.subr.bf16.mxu0 %v8915_v40  ;;  %7724 = vmatprep.subr.bf16.mxu1 %v8980_v62  ;;  %v9016_v48 = vld [vmem:[#allocation8 + $0x230] ss:$12 sps:$4 sm:$0xff]   ;;  %v8977_v62 = vld [vmem:[#allocation8 + $0x240] ss:$12 sps:$4 sm:$0xff]  }
 0x29b   :  { %3404 = vmatmul.mubr.bf16.gmra.mrb[80].mxu0 %v9927_v34  ;;  %3606 = vmatmul.mubr.bf16.gmra.mrb[112].mxu1 %v9927_v34  ;;  %v8928_v34 = vld [vmem:[#allocation8 + $0x108] ss:$12 sps:$4 sm:$0xff]   ;;  %v9022_v40 = vld [vmem:[#allocation5 + $0x2c] ss:$48 sps:$4 sm:$0xff]  }
 0x29c   :  { %3413 = vmatprep.mubr.bf16.mxu0 %v9941_v56  ;;  %3613 = vmatprep.mubr.bf16.mxu1 %v9941_v56  ;;  %v8935_v56 = vld [vmem:[#allocation8 + $0x124] ss:$12 sps:$4 sm:$0xff]  }
 0x29d   :  { %4167 = vmatpush1.bf16.msra.mxu0 %v8913_v15  ;;  %v8984_v15 = vld [vmem:[#allocation8 + $0x25c] ss:$12 sps:$4 sm:$0xff]  }
 0x29e   :  { %4168 = vmatprep.subr.bf16.mxu0 %v8920_v1  ;;  %v8987_v1 = vld [vmem:[#allocation8 + $0x270] ss:$12 sps:$4 sm:$0xff]  }
 0x2a1   :  { %4169 = vmatpush1.bf16.msra.mxu0 %v8918_v63  ;;  %v8994_v63 = vld [vmem:[#allocation8 + $0x28c] ss:$12 sps:$4 sm:$0xff]  }
 0x2a2   :  { %4170 = vmatprep.subr.bf16.mxu0 %v8925_v13  ;;  %v8997_v13 = vld [vmem:[#allocation8 + $0x2a0] ss:$12 sps:$4 sm:$0xff]  }
 0x2a3   :  { %3414 = vmatmul.mubr.bf16.gmra.mrb[84].mxu0 %v9939_v47  ;;  %3614 = vmatmul.mubr.bf16.gmra.mrb[116].mxu1 %v9939_v47  ;;  %v8938_v47 = vld [vmem:[#allocation8 + $0x138] ss:$12 sps:$4 sm:$0xff]  }
 0x2a4   :  { %3423 = vmatprep.mubr.bf16.mxu0 %v9953_v25  ;;  %3621 = vmatprep.mubr.bf16.mxu1 %v9953_v25  ;;  %v8945_v25 = vld [vmem:[#allocation8 + $0x154] ss:$12 sps:$4 sm:$0xff]  }
 0x2a5   :  { %4171 = vmatpush1.bf16.msra.mxu0 %v8923_v10  ;;  %v9004_v10 = vld [vmem:[#allocation8 + $0x2bc] ss:$12 sps:$4 sm:$0xff]  }
 0x2a6   :  { %4172 = vmatprep.subr.bf16.mxu0 %v8930_v12  ;;  %v9007_v12 = vld [vmem:[#allocation8 + $0x2d0] ss:$12 sps:$4 sm:$0xff]  }
 0x2a9   :  { %4173 = vmatpush1.bf16.msra.mxu0 %v8928_v34  ;;  %v9014_v34 = vld [vmem:[#allocation8 + $0x2ec] ss:$12 sps:$4 sm:$0xff]  }
 0x2aa   :  { %4174 = vmatprep.subr.bf16.mxu0 %v8935_v56  ;;  %v9017_v56 = vld [vmem:[#allocation5 + $0x20] ss:$48 sps:$4 sm:$0xff]  }
 0x2ab   :  { %3424 = vmatmul.mubr.bf16.gmra.mrb[88].mxu0 %v9951_v54  ;;  %3622 = vmatmul.mubr.bf16.gmra.mrb[120].mxu1 %v9951_v54  ;;  %v8948_v54 = vld [vmem:[#allocation8 + $0x168] ss:$12 sps:$4 sm:$0xff]  }
 0x2ac   :  { %3433 = vmatprep.mubr.bf16.mxu0 %v9965_v37  ;;  %3629 = vmatprep.mubr.bf16.mxu1 %v9965_v37  ;;  %v8955_v37 = vld [vmem:[#allocation8 + $0x184] ss:$12 sps:$4 sm:$0xff]  }
 0x2ad   :  { %4175 = vmatpush1.bf16.msra.mxu0 %v8933_v44  ;;  %v9020_v44 = vld [vmem:[#allocation5 + $0x28] ss:$48 sps:$4 sm:$0xff]  }
 0x2ae   :  { %4176 = vmatprep.subr.bf16.mxu0 %v8940_v61  ;;  %v9025_v61 = vld [vmem:[#allocation5 + $0x84] ss:$48 sps:$4 sm:$0xff]  }
 0x2b1   :  { %4177 = vmatpush1.bf16.msra.mxu0 %v8938_v47  ;;  %v9028_v47 = vld [vmem:[#allocation5 + $0x8c] ss:$48 sps:$4 sm:$0xff]  }
 0x2b2   :  { %4178 = vmatprep.subr.bf16.mxu0 %v8945_v25  ;;  %v9031_v25 = vld [vmem:[#allocation5 + $0xe4] ss:$48 sps:$4 sm:$0xff]  }
 0x2b3   :  { %3434 = vmatmul.mubr.bf16.gmra.mrb[92].mxu0 %v9963_v23  ;;  %3630 = vmatmul.mubr.bf16.gmra.mrb[124].mxu1 %v9963_v23  ;;  %v8961_v23 = vld [vmem:[#allocation8 + $0x1b4] ss:$12 sps:$4 sm:$0xff]  }
 0x2b4   :  { %4182 = vmatprep.mubr.bf16.mxu0 %v9743_v30  ;;  %4408 = vmatprep.mubr.bf16.mxu1 %v9743_v30  ;;  %v8956_v30 = vld [vmem:[#allocation8 + $0x198] ss:$12 sps:$4 sm:$0xff]  }
 0x2b5   :  { %4179 = vmatpush1.bf16.msra.mxu0 %v8943_v36  ;;  %v9034_v36 = vld [vmem:[#allocation5 + $0xec] ss:$48 sps:$4 sm:$0xff]  }
 0x2b6   :  { %4180 = vmatprep.subr.bf16.mxu0 %v8950_v0  ;;  %v9029_v0 = vld [vmem:[#allocation5 + $0xe0] ss:$48 sps:$4 sm:$0xff]  }
 0x2b9   :  { %4181 = vmatpush1.bf16.msra.mxu0 %v8948_v54  ;;  %v9032_v54 = vld [vmem:[#allocation5 + $0xe8] ss:$48 sps:$4 sm:$0xff]  }
 0x2ba   :  { %4263 = vmatprep.subr.bf16.mxu0 %v8955_v37  ;;  %v9037_v37 = vld [vmem:[#allocation5 + $0x144] ss:$48 sps:$4 sm:$0xff]  }
 0x2bb   :  { %4409 = vmatmul.mubr.bf16.vlgmr.msra.gmra.mrb[128].mxu1 %v9739_v28 }
 0x2bc   :  { %4183 = vmatmul.mubr.bf16.vlgmr.msra.gmra.mrb[64].mxu0 %v9739_v28  ;;  %4416 = vmatprep.mubr.bf16.mxu1 %v9759_v31  ;;  %v8995_v28 = vld [vmem:[#allocation8 + $0x290] ss:$12 sps:$4 sm:$0xff]  }
 0x2bd   :  { %4192 = vmatprep.mubr.bf16.mxu0 %v9759_v31  ;;  %4264 = vmatpush1.bf16.msra.mxu0 %v8953_v11  ;;  %v8962_v31 = vld [vmem:[#allocation8 + $0x1c8] ss:$12 sps:$4 sm:$0xff]   ;;  %v9038_v11 = vld [vmem:[#allocation5 + $0x148] ss:$48 sps:$4 sm:$0xff]  }
 0x2be   :  { %4265 = vmatprep.subr.bf16.mxu0 %v8958_v52  ;;  %7725 = vmatpush3.bf16.msra.mxu1 %v8981_v26  ;;  %v9043_v52 = vld [vmem:[#allocation5 + $0x1a4] ss:$48 sps:$4 sm:$0xff]   ;;  %v9046_v26 = vld [vmem:[#allocation5 + $0x1ac] ss:$48 sps:$4 sm:$0xff]  }
 0x2bf   :  { %7726 = vmatprep.subr.bf16.mxu1 %v8985_v55  ;;  %v9041_v55 = vld [vmem:[#allocation5 + $0x1a0] ss:$48 sps:$4 sm:$0xff]  }
 0x2c1   :  { %4266 = vmatpush1.bf16.msra.mxu0 %v8956_v30  ;;  %v9044_v30 = vld [vmem:[#allocation5 + $0x1a8] ss:$48 sps:$4 sm:$0xff]  }
 0x2c2   :  { %4267 = vmatprep.subr.bf16.mxu0 %v8961_v23  ;;  %7727 = vmatpush3.bf16.msra.mxu1 %v8986_v3  ;;  %v9049_v23 = vld [vmem:[#allocation5 + $0x204] ss:$48 sps:$4 sm:$0xff]   ;;  %v9047_v3 = vld [vmem:[#allocation5 + $0x200] ss:$48 sps:$4 sm:$0xff]  }
 0x2c3   :  { %4417 = vmatmul.mubr.bf16.gmra.mrb[132].mxu1 %v9755_v21  ;;  %7728 = vmatprep.subr.bf16.mxu1 %v8990_v22 }
 0x2c4   :  { %4193 = vmatmul.mubr.bf16.gmra.mrb[68].mxu0 %v9755_v21  ;;  %4424 = vmatprep.mubr.bf16.mxu1 %v9775_v45  ;;  %v9005_v21 = vld [vmem:[#allocation8 + $0x2c0] ss:$12 sps:$4 sm:$0xff]  }
 0x2c5   :  { %4202 = vmatprep.mubr.bf16.mxu0 %v9775_v45  ;;  %4268 = vmatpush1.bf16.msra.mxu0 %v8959_v6  ;;  %v8968_v45 = vld [vmem:[#allocation8 + $0x1f8] ss:$12 sps:$4 sm:$0xff]   ;;  %v9050_v6 = vld [vmem:[#allocation5 + $0x208] ss:$48 sps:$4 sm:$0xff]  }
 0x2c6   :  { %4269 = vmatprep.subr.bf16.mxu0 %v8964_v59  ;;  %7729 = vmatpush3.bf16.msra.mxu1 %v8991_v50  ;;  %v9055_v59 = vld [vmem:[#allocation5 + $0x264] ss:$48 sps:$4 sm:$0xff]  }
 0x2c7   :  { %7730 = vmatprep.subr.bf16.mxu1 %v8995_v28  ;;  %v9058_v28 = vld [vmem:[#allocation5 + $0x26c] ss:$48 sps:$4 sm:$0xff]  }
 0x2c9   :  { %4270 = vmatpush1.bf16.msra.mxu0 %v8962_v31 }
 0x2ca   :  { %4271 = vmatprep.subr.bf16.mxu0 %v8967_v9  ;;  %7731 = vmatpush3.bf16.msra.mxu1 %v8996_v42 }
 0x2cb   :  { %4425 = vmatmul.mubr.bf16.gmra.mrb[136].mxu1 %v9771_v38  ;;  %7732 = vmatprep.subr.bf16.mxu1 %v9000_v53 }
 0x2cc   :  { %4203 = vmatmul.mubr.bf16.gmra.mrb[72].mxu0 %v9771_v38  ;;  %4432 = vmatprep.mubr.bf16.mxu1 %v9791_v49  ;;  %v9015_v38 = vld [vmem:[#allocation8 + $0x2f0] ss:$12 sps:$4 sm:$0xff]  }
 0x2cd   :  { %4212 = vmatprep.mubr.bf16.mxu0 %v9791_v49  ;;  %4272 = vmatpush1.bf16.msra.mxu0 %v8965_v39  ;;  %v8974_v49 = vld [vmem:[#allocation8 + $0x228] ss:$12 sps:$4 sm:$0xff]   ;;  %v9056_v39 = vld [vmem:[#allocation5 + $0x268] ss:$48 sps:$4 sm:$0xff]  }
 0x2ce   :  { %4273 = vmatprep.subr.bf16.mxu0 %v8970_v32  ;;  %7733 = vmatpush3.bf16.msra.mxu1 %v9001_v20  ;;  %v9061_v32 = vld [vmem:[#allocation5 + $0x2c4] ss:$48 sps:$4 sm:$0xff]  }
 0x2cf   :  { %7734 = vmatprep.subr.bf16.mxu1 %v9005_v21  ;;  %v10683_v20 = vld [vmem:[#allocation44_spill] sm:$0xff]  ;;  %v9064_v21 = vld [vmem:[#allocation5 + $0x2cc] ss:$48 sps:$4 sm:$0xff]  }
 0x2d1   :  { %4274 = vmatpush1.bf16.msra.mxu0 %v8968_v45  ;;  %v10684_v45 = vld [vmem:[#allocation47_spill] sm:$0xff] }
 0x2d2   :  { %4275 = vmatprep.subr.bf16.mxu0 %v8973_v18  ;;  %7735 = vmatpush3.bf16.msra.mxu1 %v9006_v43  ;;  %v9059_v18 = vld [vmem:[#allocation5 + $0x2c0] ss:$48 sps:$4 sm:$0xff]  }
 0x2d3   :  { %4433 = vmatmul.mubr.bf16.gmra.mrb[140].mxu1 %v9787_v5  ;;  %7736 = vmatprep.subr.bf16.mxu1 %v9010_v19  ;;  %v9062_v19 = vld [vmem:[#allocation5 + $0x2c8] ss:$48 sps:$4 sm:$0xff]  }
 0x2d4   :  { %4213 = vmatmul.mubr.bf16.gmra.mrb[76].mxu0 %v9787_v5  ;;  %4440 = vmatprep.mubr.bf16.mxu1 %v9807_v58  ;;  %v8982_v5 = vld [vmem:[#allocation8 + $0x258] ss:$12 sps:$4 sm:$0xff]  }
 0x2d5   :  { %4222 = vmatprep.mubr.bf16.mxu0 %v9807_v58  ;;  %4276 = vmatpush1.bf16.msra.mxu0 %v8971_v60  ;;  %v8989_v58 = vld [vmem:[#allocation8 + $0x274] ss:$12 sps:$4 sm:$0xff]   ;;  %v9067_v60 = vld [vmem:[#allocation5 + $0x324] ss:$48 sps:$4 sm:$0xff]  }
 0x2d6   :  { %4277 = vmatprep.subr.bf16.mxu0 %v8976_v2  ;;  %7737 = vmatpush3.bf16.msra.mxu1 %v9011_v16  ;;  %v9070_v16 = vld [vmem:[#allocation5 + $0x32c] ss:$48 sps:$4 sm:$0xff]  }
 0x2d7   :  { %7738 = vmatprep.subr.bf16.mxu1 %v9015_v38 }
 0x2d9   :  { %4278 = vmatpush1.bf16.msra.mxu0 %v8974_v49 }
 0x2da   :  { %4279 = vmatprep.subr.bf16.mxu0 %v8979_v57  ;;  %7739 = vmatpush3.bf16.msra.mxu1 %v9016_v48  ;;  %v9065_v48 = vld [vmem:[#allocation5 + $0x320] ss:$48 sps:$4 sm:$0xff]  }
 0x2db   :  { %4441 = vmatmul.mubr.bf16.gmra.mrb[144].mxu1 %v9803_v4  ;;  %5394 = vmatprep.subr.bf16.mxu1 %v9022_v40 }
 0x2dc   :  { %4223 = vmatmul.mubr.bf16.gmra.mrb[80].mxu0 %v9803_v4  ;;  %4448 = vmatprep.mubr.bf16.mxu1 %v9823_v7  ;;  %v8992_v4 = vld [vmem:[#allocation8 + $0x288] ss:$12 sps:$4 sm:$0xff]  }
 0x2dd   :  { %4232 = vmatprep.mubr.bf16.mxu0 %v9823_v7  ;;  %4280 = vmatpush1.bf16.msra.mxu0 %v8977_v62  ;;  %v8999_v7 = vld [vmem:[#allocation8 + $0x2a4] ss:$12 sps:$4 sm:$0xff]   ;;  %v9068_v62 = vld [vmem:[#allocation5 + $0x328] ss:$48 sps:$4 sm:$0xff]  }
 0x2de   :  { %4281 = vmatprep.subr.bf16.mxu0 %v8984_v15  ;;  %v9073_v15 = vld [vmem:[#allocation5 + $0x384] ss:$48 sps:$4 sm:$0xff]  }
 0x2e1   :  { %4282 = vmatpush1.bf16.msra.mxu0 %v8982_v5  ;;  %v10685_v5 = vld [vmem:[#allocation46_spill] sm:$0xff] }
 0x2e2   :  { %4283 = vmatprep.subr.bf16.mxu0 %v8989_v58  ;;  %v9076_v58 = vld [vmem:[#allocation5 + $0x38c] ss:$48 sps:$4 sm:$0xff]  }
 0x2e3   :  { %4449 = vmatmul.mubr.bf16.gmra.mrb[148].mxu1 %v9819_v17 }
 0x2e4   :  { %4233 = vmatmul.mubr.bf16.gmra.mrb[84].mxu0 %v9819_v17  ;;  %4456 = vmatprep.mubr.bf16.mxu1 %v9839_v46  ;;  %v9002_v17 = vld [vmem:[#allocation8 + $0x2b8] ss:$12 sps:$4 sm:$0xff]  }
 0x2e5   :  { %4242 = vmatprep.mubr.bf16.mxu0 %v9839_v46  ;;  %4284 = vmatpush1.bf16.msra.mxu0 %v8987_v1  ;;  %v9009_v46 = vld [vmem:[#allocation8 + $0x2d4] ss:$12 sps:$4 sm:$0xff]   ;;  %v10686_v1 = vld [vmem:[#allocation49_spill] sm:$0xff] }
 0x2e6   :  { %4285 = vmatprep.subr.bf16.mxu0 %v8994_v63  ;;  %v9071_v63 = vld [vmem:[#allocation5 + $0x380] ss:$48 sps:$4 sm:$0xff]  }
 0x2e9   :  { %4286 = vmatpush1.bf16.msra.mxu0 %v8992_v4 }
 0x2ea   :  { %4287 = vmatprep.subr.bf16.mxu0 %v8999_v7  ;;  %v9074_v7 = vld [vmem:[#allocation5 + $0x388] ss:$48 sps:$4 sm:$0xff]  }
 0x2eb   :  { %4457 = vmatmul.mubr.bf16.gmra.mrb[152].mxu1 %v9835_v8 }
 0x2ec   :  { %4243 = vmatmul.mubr.bf16.gmra.mrb[88].mxu0 %v9835_v8  ;;  %4464 = vmatprep.mubr.bf16.mxu1 %v9855_v14  ;;  %v9012_v8 = vld [vmem:[#allocation8 + $0x2e8] ss:$12 sps:$4 sm:$0xff]  }
 0x2ed   :  { %4252 = vmatprep.mubr.bf16.mxu0 %v9855_v14  ;;  %4288 = vmatpush1.bf16.msra.mxu0 %v8997_v13  ;;  %v9019_v14 = vld [vmem:[#allocation5 + $0x24] ss:$48 sps:$4 sm:$0xff]  }
 0x2ee   :  { %4289 = vmatprep.subr.bf16.mxu0 %v9004_v10  ;;  %v9079_v13 = vld [vmem:[#allocation5 + $0x3e4] ss:$48 sps:$4 sm:$0xff]  }
 0x2f1   :  { %4290 = vmatpush1.bf16.msra.mxu0 %v9002_v17  ;;  %v9082_v17 = vld [vmem:[#allocation5 + $0x3ec] ss:$48 sps:$4 sm:$0xff]  }
 0x2f2   :  { %4291 = vmatprep.subr.bf16.mxu0 %v9009_v46 }
 0x2f3   :  { %4465 = vmatmul.mubr.bf16.gmra.mrb[156].mxu1 %v9851_v51 }
 0x2f4   :  { %4253 = vmatmul.mubr.bf16.gmra.mrb[92].mxu0 %v9851_v51  ;;  %4505 = vmatprep.mubr.bf16.mxu1 %v9745_v33  ;;  %v9023_v51 = vld [vmem:[#allocation5 + $0x80] ss:$48 sps:$4 sm:$0xff]  }
 0x2f5   :  { %4292 = vmatpush1.bf16.msra.mxu0 %v9007_v12  ;;  %4295 = vmatprep.mubr.bf16.mxu0 %v9745_v33  ;;  %v9026_v33 = vld [vmem:[#allocation5 + $0x88] ss:$48 sps:$4 sm:$0xff]  }
 0x2f6   :  { %4293 = vmatprep.subr.bf16.mxu0 %v9014_v34 }
 0x2f9   :  { %4294 = vmatpush1.bf16.msra.mxu0 %v9012_v8  ;;  %v9077_v8 = vld [vmem:[#allocation5 + $0x3e0] ss:$48 sps:$4 sm:$0xff]  }
 0x2fa   :  { %5168 = vmatprep.subr.bf16.mxu0 %v9019_v14 }
 0x2fb   :  { %4506 = vmatmul.mubr.bf16.vlgmr.msra.gmra.mrb[160].mxu1 %v9741_v29 }
 0x2fc   :  { %4296 = vmatmul.mubr.bf16.vlgmr.msra.gmra.mrb[64].mxu0 %v9741_v29  ;;  %4513 = vmatprep.mubr.bf16.mxu1 %v9761_v41  ;;  %v9040_v29 = vld [vmem:[#allocation5 + $0x14c] ss:$48 sps:$4 sm:$0xff]  }
 0x2fd   :  { %4305 = vmatprep.mubr.bf16.mxu0 %v9761_v41  ;;  %5169 = vmatpush1.bf16.msra.mxu0 %v9017_v56  ;;  %v9035_v41 = vld [vmem:[#allocation5 + $0x140] ss:$48 sps:$4 sm:$0xff]   ;;  %v9080_v56 = vld [vmem:[#allocation5 + $0x3e8] ss:$48 sps:$4 sm:$0xff]  }
 0x2fe   :  { %5395 = vmatpush1.bf16.msra.mxu1 %v9020_v44  ;;  %5170 = vmatprep.subr.bf16.mxu0 %v9025_v61  ;;  %v9085_v44 = vld [vmem:[#allocation5 + $0x444] ss:$48 sps:$4 sm:$0xff]  }
 0x2ff   :  { %5396 = vmatprep.subr.bf16.mxu1 %v9028_v47  ;;  %v10687_v61 = vld [vmem:[#allocation48_spill] sm:$0xff]  ;;  %v9088_v47 = vld [vmem:[#allocation5 + $0x44c] ss:$48 sps:$4 sm:$0xff]  }
 0x301   :  { %5171 = vmatpush1.bf16.msra.mxu0 %v9023_v51  ;;  %v10688_v51 = vld [vmem:[#allocation51_spill] sm:$0xff] }
 0x302   :  { %5397 = vmatpush1.bf16.msra.mxu1 %v9026_v33  ;;  %5172 = vmatprep.subr.bf16.mxu0 %v9031_v25  ;;  %v9083_v33 = vld [vmem:[#allocation5 + $0x440] ss:$48 sps:$4 sm:$0xff]  }
 0x303   :  { %4514 = vmatmul.mubr.bf16.gmra.mrb[164].mxu1 %v9757_v27  ;;  %5398 = vmatprep.subr.bf16.mxu1 %v9034_v36  ;;  %v9086_v36 = vld [vmem:[#allocation5 + $0x448] ss:$48 sps:$4 sm:$0xff]  }
 0x304   :  { %4306 = vmatmul.mubr.bf16.gmra.mrb[68].mxu0 %v9757_v27  ;;  %4521 = vmatprep.mubr.bf16.mxu1 %v9777_v24  ;;  %v9052_v27 = vld [vmem:[#allocation5 + $0x20c] ss:$48 sps:$4 sm:$0xff]  }
 0x305   :  { %4315 = vmatprep.mubr.bf16.mxu0 %v9777_v24  ;;  %5173 = vmatpush1.bf16.msra.mxu0 %v9029_v0  ;;  %v10682_v24 = vld [vmem:[#allocation45_spill] sm:$0xff]  ;;  %v9091_v0 = vld [vmem:[#allocation5 + $0x4a4] ss:$48 sps:$4 sm:$0xff]  }
 0x306   :  { %5399 = vmatpush1.bf16.msra.mxu1 %v9032_v54  ;;  %5174 = vmatprep.subr.bf16.mxu0 %v9037_v37  ;;  %v9094_v37 = vld [vmem:[#allocation5 + $0x4ac] ss:$48 sps:$4 sm:$0xff]  }
 0x307   :  { %5400 = vmatprep.subr.bf16.mxu1 %v9040_v29 }
 0x309   :  { %5175 = vmatpush1.bf16.msra.mxu0 %v9035_v41 }
 0x30a   :  { %5401 = vmatpush1.bf16.msra.mxu1 %v9038_v11  ;;  %5176 = vmatprep.subr.bf16.mxu0 %v9043_v52  ;;  %v9089_v52 = vld [vmem:[#allocation5 + $0x4a0] ss:$48 sps:$4 sm:$0xff]  }
 0x30b   :  { %4522 = vmatmul.mubr.bf16.gmra.mrb[168].mxu1 %v9773_v35  ;;  %5402 = vmatprep.subr.bf16.mxu1 %v9046_v26 }
 0x30c   :  { %4316 = vmatmul.mubr.bf16.gmra.mrb[72].mxu0 %v9773_v35  ;;  %4529 = vmatprep.mubr.bf16.mxu1 %v10682_v24  ;;  %v9053_v35 = vld [vmem:[#allocation5 + $0x260] ss:$48 sps:$4 sm:$0xff]  }
 0x30d   :  { %4325 = vmatprep.mubr.bf16.mxu0 %v10682_v24  ;;  %5177 = vmatpush1.bf16.msra.mxu0 %v9041_v55  ;;  %v9092_v55 = vld [vmem:[#allocation5 + $0x4a8] ss:$48 sps:$4 sm:$0xff]  }
 0x30e   :  { %5403 = vmatpush1.bf16.msra.mxu1 %v9044_v30  ;;  %v7548_v22 = vpop.f32.mrb[64].mxu1  ;;  %5178 = vmatprep.subr.bf16.mxu0 %v9049_v23  ;;  %v9097_v30 = vld [vmem:[#allocation5 + $0x504] ss:$48 sps:$4 sm:$0xff]   ;;  %v10690_v24 = vld [vmem:[#allocation53_spill] sm:$0xff] }
 0x30f   :  { %v7549_v50 = vpop.f32.mrb[65].mxu1  ;;  %5404 = vmatprep.subr.bf16.mxu1 %v9052_v27  ;;  %v10689_v23 = vld [vmem:[#allocation50_spill] sm:$0xff]  ;;  %v9100_v27 = vld [vmem:[#allocation5 + $0x50c] ss:$48 sps:$4 sm:$0xff]  }
 0x310   :  { %v10045_v31 = vadd.f32 %v7549_v50, %v7548_v22  ;;  %v7551_v9 = vpop.f32.mrb[66].mxu1 }
 0x311   :  { %5179 = vmatpush1.bf16.msra.mxu0 %v9047_v3  ;;  %v7552_v42 = vpop.f32.mrb[67].mxu1  ;;  %v9095_v3 = vld [vmem:[#allocation5 + $0x500] ss:$48 sps:$4 sm:$0xff]  }
 0x312   :  { %5405 = vmatpush1.bf16.msra.mxu1 %v9050_v6  ;;  %v10047_v53 = vadd.f32 %v7552_v42, %v7551_v9  ;;  %5180 = vmatprep.subr.bf16.mxu0 %v9055_v59  ;;  %v9098_v6 = vld [vmem:[#allocation5 + $0x508] ss:$48 sps:$4 sm:$0xff]   ;;  %v9103_v59 = vld [vmem:[#allocation5 + $0x564] ss:$48 sps:$4 sm:$0xff]  }
 0x313   :  { %4530 = vmatmul.mubr.bf16.gmra.mrb[172].mxu1 %v10683_v20  ;;  %5406 = vmatprep.subr.bf16.mxu1 %v9058_v28  ;;  %v9106_v28 = vld [vmem:[#allocation5 + $0x56c] ss:$48 sps:$4 sm:$0xff]  }
 0x314   :  { %4326 = vmatmul.mubr.bf16.gmra.mrb[76].mxu0 %v10683_v20  ;;  %4537 = vmatprep.mubr.bf16.mxu1 %v10684_v45  ;;  %v9104_v20 = vld [vmem:[#allocation5 + $0x568] ss:$48 sps:$4 sm:$0xff]  }
 0x315   :  { %4335 = vmatprep.mubr.bf16.mxu0 %v10684_v45  ;;  %5181 = vmatpush1.bf16.msra.mxu0 %v9053_v35  ;;  %v10691_v45 = vld [vmem:[#allocation52_spill] sm:$0xff] }
 0x316   :  { %5407 = vmatpush1.bf16.msra.mxu1 %v9056_v39  ;;  %v7554_v43 = vpop.f32.mrb[68].mxu1  ;;  %5182 = vmatprep.subr.bf16.mxu0 %v9061_v32  ;;  %v9101_v39 = vld [vmem:[#allocation5 + $0x560] ss:$48 sps:$4 sm:$0xff]  }
 0x317   :  { %v7555_v2 = vpop.f32.mrb[69].mxu1  ;;  %5408 = vmatprep.subr.bf16.mxu1 %v9064_v21  ;;  %v9109_v21 = vld [vmem:[#allocation5 + $0x5c4] ss:$48 sps:$4 sm:$0xff]  }
 0x318   :  { %v10053_v38 = vadd.f32 %v7555_v2, %v7554_v43  ;;  %v7557_v49 = vpop.f32.mrb[70].mxu1  ;;  %v10692_v43 = vld [vmem:[#allocation16_spill] sm:$0xff]  ;;  %v9110_v2 = vld [vmem:[#allocation5 + $0x5c8] ss:$48 sps:$4 sm:$0xff]  }
 0x319   :  { %5183 = vmatpush1.bf16.msra.mxu0 %v9059_v18  ;;  %v7558_v57 = vpop.f32.mrb[71].mxu1  ;;  %v9112_v18 = vld [vmem:[#allocation5 + $0x5cc] ss:$48 sps:$4 sm:$0xff]  }
 0x31a   :  { %5409 = vmatpush1.bf16.msra.mxu1 %v9062_v19  ;;  %v10055_v40 = vadd.f32 %v7558_v57, %v7557_v49  ;;  %5184 = vmatprep.subr.bf16.mxu0 %v9067_v60  ;;  %v9107_v19 = vld [vmem:[#allocation5 + $0x5c0] ss:$48 sps:$4 sm:$0xff]   ;;  %v9130_v57 = vld [vmem:[#allocation5 + $0x62c] ss:$48 sps:$4 sm:$0xff]  }
 0x31b   :  { %4538 = vmatmul.mubr.bf16.gmra.mrb[176].mxu1 %v10685_v5  ;;  %5410 = vmatprep.subr.bf16.mxu1 %v9070_v16  ;;  %v9115_v16 = vld [vmem:[#allocation5 + $0x624] ss:$48 sps:$4 sm:$0xff]  }
 0x31c   :  { %4336 = vmatmul.mubr.bf16.gmra.mrb[80].mxu0 %v10685_v5  ;;  %4545 = vmatprep.mubr.bf16.mxu1 %v10686_v1  ;;  %v9113_v5 = vld [vmem:[#allocation5 + $0x620] ss:$48 sps:$4 sm:$0xff]  }
 0x31d   :  { %4345 = vmatprep.mubr.bf16.mxu0 %v10686_v1  ;;  %5185 = vmatpush1.bf16.msra.mxu0 %v9065_v48  ;;  %v9118_v1 = vld [vmem:[#allocation5 + $0x684] ss:$48 sps:$4 sm:$0xff]  }
 0x31e   :  { %5411 = vmatpush1.bf16.msra.mxu1 %v9068_v62  ;;  %v7560_v4 = vpop.f32.mrb[72].mxu1  ;;  %5186 = vmatprep.subr.bf16.mxu0 %v9073_v15 }
 0x31f   :  { %v7561_v10 = vpop.f32.mrb[73].mxu1  ;;  %5412 = vmatprep.subr.bf16.mxu1 %v9076_v58 }
 0x320   :  { %v10061_v46 = vadd.f32 %v7561_v10, %v7560_v4  ;;  %v7563_v12 = vpop.f32.mrb[74].mxu1  ;;  %v10693_v4 = vld [vmem:[#allocation17_spill] sm:$0xff] }
 0x321   :  { %5187 = vmatpush1.bf16.msra.mxu0 %v9071_v63  ;;  %v7564_v34 = vpop.f32.mrb[75].mxu1  ;;  %v9128_v63 = vld [vmem:[#allocation5 + $0x628] ss:$48 sps:$4 sm:$0xff]  }
 0x322   :  { %5413 = vmatpush1.bf16.msra.mxu1 %v9074_v7  ;;  %v10063_v14 = vadd.f32 %v7564_v34, %v7563_v12  ;;  %5188 = vmatprep.subr.bf16.mxu0 %v9079_v13  ;;  %v9133_v7 = vld [vmem:[#allocation5 + $0x68c] ss:$48 sps:$4 sm:$0xff]   ;;  %v9116_v13 = vld [vmem:[#allocation5 + $0x680] ss:$48 sps:$4 sm:$0xff]   ;;  %v9121_v12 = vld [vmem:[#allocation5 + $0x6e4] ss:$48 sps:$4 sm:$0xff]  }
 0x323   :  { %4546 = vmatmul.mubr.bf16.gmra.mrb[180].mxu1 %v10687_v61  ;;  %5414 = vmatprep.subr.bf16.mxu1 %v9082_v17  ;;  %v10694_v17 = vld [vmem:[#allocation18_spill] sm:$0xff] }
 0x324   :  { %4346 = vmatmul.mubr.bf16.gmra.mrb[84].mxu0 %v10687_v61  ;;  %4553 = vmatprep.mubr.bf16.mxu1 %v10688_v51  ;;  %v9139_v61 = vld [vmem:[#allocation5 + $0x6ec] ss:$48 sps:$4 sm:$0xff]  }
 0x325   :  { %4355 = vmatprep.mubr.bf16.mxu0 %v10688_v51  ;;  %5189 = vmatpush1.bf16.msra.mxu0 %v9077_v8  ;;  %v9131_v8 = vld [vmem:[#allocation5 + $0x688] ss:$48 sps:$4 sm:$0xff]  }
 0x326   :  { %5415 = vmatpush1.bf16.msra.mxu1 %v9080_v56  ;;  %v7566_v25 = vpop.f32.mrb[76].mxu1  ;;  %5190 = vmatprep.subr.bf16.mxu0 %v9085_v44 }
 0x327   :  { %v7567_v54 = vpop.f32.mrb[77].mxu1  ;;  %5416 = vmatprep.subr.bf16.mxu1 %v9088_v47 }
 0x328   :  { %v10069_v29 = vadd.f32 %v7567_v54, %v7566_v25  ;;  %v7569_v41 = vpop.f32.mrb[78].mxu1  ;;  %v9124_v25 = vld [vmem:[#allocation5 + $0x744] ss:$48 sps:$4 sm:$0xff]   ;;  %v9142_v54 = vld [vmem:[#allocation5 + $0x74c] ss:$48 sps:$4 sm:$0xff]  }
 0x329   :  { %5191 = vmatpush1.bf16.msra.mxu0 %v9083_v33  ;;  %v7570_v11 = vpop.f32.mrb[79].mxu1  ;;  %v9119_v33 = vld [vmem:[#allocation5 + $0x6e0] ss:$48 sps:$4 sm:$0xff]  }
 0x32a   :  { %5417 = vmatpush1.bf16.msra.mxu1 %v9086_v36  ;;  %v10071_v26 = vadd.f32 %v7570_v11, %v7569_v41  ;;  %5192 = vmatprep.subr.bf16.mxu0 %v9091_v0  ;;  %v9137_v36 = vld [vmem:[#allocation5 + $0x6e8] ss:$48 sps:$4 sm:$0xff]   ;;  %v9122_v11 = vld [vmem:[#allocation5 + $0x740] ss:$48 sps:$4 sm:$0xff]  }
 0x32b   :  { %4554 = vmatmul.mubr.bf16.gmra.mrb[184].mxu1 %v10689_v23  ;;  %5418 = vmatprep.subr.bf16.mxu1 %v9094_v37  ;;  %v10695_v0 = vld [vmem:[#allocation19_spill] sm:$0xff]  ;;  %v10696_v37 = vld [vmem:[#allocation20_spill] sm:$0xff] }
 0x32c   :  { %4356 = vmatmul.mubr.bf16.gmra.mrb[88].mxu0 %v10689_v23  ;;  %4561 = vmatprep.mubr.bf16.mxu1 %v10690_v24 }
 0x32d   :  { %4365 = vmatprep.mubr.bf16.mxu0 %v10690_v24  ;;  %5193 = vmatpush1.bf16.msra.mxu0 %v9089_v52  ;;  %v9148_v24 = vld [vmem:[#allocation5 + $0x7ac] ss:$48 sps:$4 sm:$0xff]  }
 0x32e   :  { %5419 = vmatpush1.bf16.msra.mxu1 %v9092_v55  ;;  %v7572_v22 = vpop.f32.mrb[80].mxu1  ;;  %5194 = vmatprep.subr.bf16.mxu0 %v9097_v30  ;;  %v9127_v55 = vld [vmem:[#allocation5 + $0x7a4] ss:$48 sps:$4 sm:$0xff]   ;;  %v9140_v30 = vld [vmem:[#allocation5 + $0x748] ss:$48 sps:$4 sm:$0xff]  }
 0x32f   :  { %v7573_v50 = vpop.f32.mrb[81].mxu1  ;;  %5420 = vmatprep.subr.bf16.mxu1 %v9100_v27 }
 0x330   :  { %v10077_v9 = vadd.f32 %v7573_v50, %v7572_v22  ;;  %v7575_v42 = vpop.f32.mrb[82].mxu1  ;;  %v9146_v50 = vld [vmem:[#allocation5 + $0x7a8] ss:$48 sps:$4 sm:$0xff]  }
 0x331   :  { %5195 = vmatpush1.bf16.msra.mxu0 %v9095_v3  ;;  %v7576_v35 = vpop.f32.mrb[83].mxu1 }
 0x332   :  { %5421 = vmatpush1.bf16.msra.mxu1 %v9098_v6  ;;  %v10079_v32 = vadd.f32 %v7576_v35, %v7575_v42  ;;  %5196 = vmatprep.subr.bf16.mxu0 %v9103_v59  ;;  %v9125_v6 = vld [vmem:[#allocation5 + $0x7a0] ss:$48 sps:$4 sm:$0xff]   ;;  %v9136_v59 = vld [vmem:[#allocation5 + $0x804] ss:$48 sps:$4 sm:$0xff]   ;;  %v9151_v42 = vld [vmem:[#allocation5 + $0x80c] ss:$48 sps:$4 sm:$0xff]  }
 0x333   :  { %4562 = vmatmul.mubr.bf16.gmra.mrb[188].mxu1 %v10691_v45  ;;  %5422 = vmatprep.subr.bf16.mxu1 %v9106_v28  ;;  %v10697_v28 = vld [vmem:[#allocation21_spill] sm:$0xff]  ;;  %v10698_v35 = vld [vmem:[#allocation22_spill] sm:$0xff] }
 0x334   :  { %4366 = vmatmul.mubr.bf16.gmra.mrb[92].mxu0 %v10691_v45  ;;  %5426 = vmatprep.mubr.bf16.mxu1 %v10692_v43  ;;  %v9145_v45 = vld [vmem:[#allocation5 + $0x864] ss:$48 sps:$4 sm:$0xff]  }
 0x335   :  { %5197 = vmatpush1.bf16.msra.mxu0 %v9101_v39  ;;  %5200 = vmatprep.mubr.bf16.mxu0 %v10692_v43 }
 0x336   :  { %5423 = vmatpush1.bf16.msra.mxu1 %v9104_v20  ;;  %v7578_v60 = vpop.f32.mrb[84].mxu1  ;;  %5198 = vmatprep.subr.bf16.mxu0 %v9109_v21  ;;  %v9134_v20 = vld [vmem:[#allocation5 + $0x800] ss:$48 sps:$4 sm:$0xff]  }
 0x337   :  { %v7579_v49 = vpop.f32.mrb[85].mxu1  ;;  %5424 = vmatprep.subr.bf16.mxu1 %v9112_v18  ;;  %v9149_v18 = vld [vmem:[#allocation5 + $0x808] ss:$48 sps:$4 sm:$0xff]  }
 0x338   :  { %v10085_v48 = vadd.f32 %v7579_v49, %v7578_v60  ;;  %v7581_v62 = vpop.f32.mrb[86].mxu1  ;;  %v9157_v60 = vld [vmem:[#allocation5 + $0x86c] ss:$48 sps:$4 sm:$0xff]  }
 0x339   :  { %5199 = vmatpush1.bf16.msra.mxu0 %v9107_v19  ;;  %v7582_v15 = vpop.f32.mrb[87].mxu1 }
 0x33a   :  { %5425 = vmatpush1.bf16.msra.mxu1 %v9110_v2  ;;  %v10087_v58 = vadd.f32 %v7582_v15, %v7581_v62  ;;  %5281 = vmatprep.subr.bf16.mxu0 %v9115_v16  ;;  %v9154_v62 = vld [vmem:[#allocation5 + $0x8c4] ss:$48 sps:$4 sm:$0xff]   ;;  %v9155_v15 = vld [vmem:[#allocation5 + $0x868] ss:$48 sps:$4 sm:$0xff]  }
 0x33b   :  { %5507 = vmatprep.subr.bf16.mxu1 %v9130_v57  ;;  %v9143_v57 = vld [vmem:[#allocation5 + $0x860] ss:$48 sps:$4 sm:$0xff]  }
 0x33c   :  { %5201 = vmatmul.mubr.bf16.vlgmr.msra.gmra.mrb[96].mxu0 %v10693_v4 }
 0x33d   :  { %5427 = vmatmul.mubr.bf16.vlgmr.msra.gmra.mrb[192].mxu1 %v10693_v4  ;;  %5282 = vmatpush1.bf16.msra.mxu0 %v9113_v5  ;;  %v10700_v4 = vld [vmem:[#allocation24_spill] sm:$0xff] }
 0x33e   :  { %v7584_v10 = vpop.f32.mrb[88].mxu1  ;;  %5210 = vmatprep.mubr.bf16.mxu0 %v10694_v17  ;;  %5436 = vmatprep.mubr.bf16.mxu1 %v10694_v17 }
 0x33f   :  { %v7585_v34 = vpop.f32.mrb[89].mxu1  ;;  %5283 = vmatprep.subr.bf16.mxu0 %v9118_v1  ;;  %5508 = vmatpush1.bf16.msra.mxu1 %v9128_v63  ;;  %v10699_v1 = vld [vmem:[#allocation23_spill] sm:$0xff] }
 0x340   :  { %v10093_v56 = vadd.f32 %v7585_v34, %v7584_v10  ;;  %v7587_v44 = vpop.f32.mrb[90].mxu1  ;;  %5509 = vmatprep.subr.bf16.mxu1 %v9133_v7  ;;  %v9160_v63 = vld [vmem:[#allocation5 + $0x8cc] ss:$48 sps:$4 sm:$0xff]   ;;  %v9152_v7 = vld [vmem:[#allocation5 + $0x8c0] ss:$48 sps:$4 sm:$0xff]  }
 0x341   :  { %v7588_v47 = vpop.f32.mrb[91].mxu1  ;;  %5284 = vmatpush1.bf16.msra.mxu0 %v9116_v13  ;;  %v9158_v10 = vld [vmem:[#allocation5 + $0x8c8] ss:$48 sps:$4 sm:$0xff]  }
 0x342   :  { %v10095_v51 = vadd.f32 %v7588_v47, %v7587_v44  ;;  %5285 = vmatprep.subr.bf16.mxu0 %v9121_v12  ;;  %v10702_v47 = vld [vmem:[#allocation26_spill] sm:$0xff] }
 0x343   :  { %5510 = vmatpush1.bf16.msra.mxu1 %v9131_v8 }
 0x344   :  { %5211 = vmatmul.mubr.bf16.gmra.mrb[100].mxu0 %v10695_v0  ;;  %5511 = vmatprep.subr.bf16.mxu1 %v9139_v61  ;;  %v10701_v61 = vld [vmem:[#allocation25_spill] sm:$0xff] }
 0x345   :  { %5437 = vmatmul.mubr.bf16.gmra.mrb[196].mxu1 %v10695_v0  ;;  %5220 = vmatprep.mubr.bf16.mxu0 %v10696_v37 }
 0x346   :  { %v7590_v41 = vpop.f32.mrb[92].mxu1  ;;  %5446 = vmatprep.mubr.bf16.mxu1 %v10696_v37  ;;  %5286 = vmatpush1.bf16.msra.mxu0 %v9119_v33 }
 0x347   :  { %v7591_v52 = vpop.f32.mrb[93].mxu1  ;;  %5287 = vmatprep.subr.bf16.mxu0 %v9124_v25  ;;  %5512 = vmatpush1.bf16.msra.mxu1 %v9137_v36 }
 0x348   :  { %v10101_v23 = vadd.f32 %v7591_v52, %v7590_v41  ;;  %v7593_v27 = vpop.f32.mrb[94].mxu1  ;;  %5513 = vmatprep.subr.bf16.mxu1 %v9142_v54  ;;  %v10703_v41 = vld [vmem:[#allocation27_spill] sm:$0xff] }
 0x349   :  { %v7594_v3 = vpop.f32.mrb[95].mxu1 }
 0x34a   :  { %v10103_v22 = vadd.f32 %v7594_v3, %v7593_v27  ;;  %5288 = vmatpush1.bf16.msra.mxu0 %v9122_v11  ;;  %v10704_v11 = vld [vmem:[#allocation28_spill] sm:$0xff] }
 0x34b   :  { %5289 = vmatprep.subr.bf16.mxu0 %v9127_v55  ;;  %5514 = vmatpush1.bf16.msra.mxu1 %v9140_v30 }
 0x34c   :  { %5221 = vmatmul.mubr.bf16.gmra.mrb[104].mxu0 %v10697_v28  ;;  %5515 = vmatprep.subr.bf16.mxu1 %v9148_v24 }
 0x34d   :  { %5447 = vmatmul.mubr.bf16.gmra.mrb[200].mxu1 %v10697_v28  ;;  %5230 = vmatprep.mubr.bf16.mxu0 %v10698_v35 }
 0x34e   :  { %v7612_v39 = vpop.f32.mrb[96].mxu1  ;;  %5456 = vmatprep.mubr.bf16.mxu1 %v10698_v35  ;;  %5290 = vmatpush1.bf16.msra.mxu0 %v9125_v6  ;;  %v10705_v6 = vld [vmem:[#allocation29_spill] sm:$0xff] }
 0x34f   :  { %v7613_v21 = vpop.f32.mrb[97].mxu1  ;;  %5291 = vmatprep.subr.bf16.mxu0 %v9136_v59  ;;  %5516 = vmatpush1.bf16.msra.mxu1 %v9146_v50  ;;  %v10706_v59 = vld [vmem:[#allocation30_spill] sm:$0xff] }
 0x350   :  { %v7614_v43 = vadd.f32 %v7613_v21, %v7612_v39  ;;  %v7615_v19 = vpop.f32.mrb[98].mxu1  ;;  %5517 = vmatprep.subr.bf16.mxu1 %v9151_v42  ;;  %v10707_v21 = vld [vmem:[#allocation31_spill] sm:$0xff] }
 0x351   :  { %v7616_v2 = vpop.f32.mrb[99].mxu1 }
 0x352   :  { %v10110_v16 = vadd.f32 %v7614_v43, %v10045_v31  ;;  %v7617_v49 = vadd.f32 %v7616_v2, %v7615_v19  ;;  %5292 = vmatpush1.bf16.msra.mxu0 %v9134_v20 }
 0x353   :  { %5293 = vmatprep.subr.bf16.mxu0 %v9145_v45  ;;  %5518 = vmatpush1.bf16.msra.mxu1 %v9149_v18  ;;  %v10708_v45 = vmov 0  }
 0x354   :  { %v10113_v5 = vadd.f32 %v7617_v49, %v10047_v53  ;;  %5231 = vmatmul.mubr.bf16.gmra.mrb[108].mxu0 %v10699_v1  ;;  %5519 = vmatprep.subr.bf16.mxu1 %v9157_v60 }
 0x355   :  { %5457 = vmatmul.mubr.bf16.gmra.mrb[204].mxu1 %v10699_v1  ;;  %5240 = vmatprep.mubr.bf16.mxu0 %v10700_v4 }
 0x356   :  { %v7618_v31 = vpop.f32.mrb[100].mxu1  ;;  %5466 = vmatprep.mubr.bf16.mxu1 %v10700_v4  ;;  %5294 = vmatpush1.bf16.msra.mxu0 %v9143_v57  ;;  %v10709_v57 = vld [vmem:[#allocation32_spill] sm:$0xff] }
 0x357   :  { %v7619_v13 = vpop.f32.mrb[101].mxu1  ;;  %5295 = vmatprep.subr.bf16.mxu0 %v9154_v62  ;;  %5520 = vmatpush1.bf16.msra.mxu1 %v9155_v15 }
 0x358   :  { %v7620_v17 = vadd.f32 %v7619_v13, %v7618_v31  ;;  %v7621_v53 = vpop.f32.mrb[102].mxu1  ;;  %5521 = vmatprep.subr.bf16.mxu1 %v9160_v63 }
 0x359   :  { %v7622_v12 = vpop.f32.mrb[103].mxu1 }
 0x35a   :  { %v10120_v34 = vadd.f32 %v7620_v17, %v10053_v38  ;;  %v7623_v8 = vadd.f32 %v7622_v12, %v7621_v53  ;;  %5296 = vmatpush1.bf16.msra.mxu0 %v9152_v7  ;;  %v10710_v7 = vld [vmem:[#allocation33_spill] sm:$0xff] }
 0x35b   :  { %5522 = vmatpush1.bf16.msra.mxu1 %v9158_v10 }
 0x35c   :  { %v10123_v44 = vadd.f32 %v7623_v8, %v10055_v40  ;;  %5241 = vmatmul.mubr.bf16.gmra.mrb[112].mxu0 %v10701_v61 }
 0x35d   :  { %5467 = vmatmul.mubr.bf16.gmra.mrb[208].mxu1 %v10701_v61  ;;  %5250 = vmatprep.mubr.bf16.mxu0 %v10702_v47  ;;  %v10711_v61 = vld [vmem:[#allocation34_spill] sm:$0xff] }
 0x35e   :  { %v7624_v33 = vpop.f32.mrb[104].mxu1  ;;  %5476 = vmatprep.mubr.bf16.mxu1 %v10702_v47  ;;  %v9161_v47 = vld [vmem:[#allocation8 + $0x600] ss:$12 sps:$4 sm:$0xff]  }
 0x35f   :  { %v7625_v25 = vpop.f32.mrb[105].mxu1 }
 0x360   :  { %v7626_v36 = vadd.f32 %v7625_v25, %v7624_v33  ;;  %v7627_v0 = vpop.f32.mrb[106].mxu1  ;;  %v9163_v33 = vld [vmem:[#allocation8 + $0x604] ss:$12 sps:$4 sm:$0xff]   ;;  %v9164_v25 = vld [vmem:[#allocation8 + $0x6c8] ss:$12 sps:$4 sm:$0xff]  }
 0x361   :  { %v7628_v38 = vpop.f32.mrb[107].mxu1  ;;  %6356 = vmatprep.subr.bf16.mxu0 %v9163_v33  ;;  %7788 = vmatprep.subr.bf16.mxu1 %v9164_v25  ;;  %v10714_v25 = vld [vmem:[#allocation37_spill] sm:$0xff] }
 0x362   :  { %v10130_v54 = vadd.f32 %v7626_v36, %v10061_v46  ;;  %v7629_v37 = vadd.f32 %v7628_v38, %v7627_v0  ;;  %v9165_v36 = vld [vmem:[#allocation8 + $0x608] ss:$12 sps:$4 sm:$0xff]  }
 0x363   :  { %v9168_v0 = vld [vmem:[#allocation8 + $0x61c] ss:$12 sps:$4 sm:$0xff]  }
 0x364   :  { %v10133_v40 = vadd.f32 %v7629_v37, %v10063_v14  ;;  %5251 = vmatmul.mubr.bf16.gmra.mrb[116].mxu0 %v10703_v41  ;;  %v9172_v37 = vld [vmem:[#allocation8 + $0x6e0] ss:$12 sps:$4 sm:$0xff]  }
 0x365   :  { %5477 = vmatmul.mubr.bf16.gmra.mrb[212].mxu1 %v10703_v41  ;;  %5260 = vmatprep.mubr.bf16.mxu0 %v10704_v11 }
 0x366   :  { %v7630_v52 = vpop.f32.mrb[108].mxu1  ;;  %5486 = vmatprep.mubr.bf16.mxu1 %v10704_v11 }
 0x367   :  { %v7631_v55 = vpop.f32.mrb[109].mxu1 }
 0x368   :  { %v7632_v30 = vadd.f32 %v7631_v55, %v7630_v52  ;;  %v7633_v27 = vpop.f32.mrb[110].mxu1  ;;  %v9171_v52 = vld [vmem:[#allocation8 + $0x634] ss:$12 sps:$4 sm:$0xff]  }
 0x369   :  { %v7634_v24 = vpop.f32.mrb[111].mxu1 }
 0x36a   :  { %v10140_v46 = vadd.f32 %v7632_v30, %v10069_v29  ;;  %v7635_v3 = vadd.f32 %v7634_v24, %v7633_v27  ;;  %v9173_v24 = vld [vmem:[#allocation8 + $0x620] ss:$12 sps:$4 sm:$0xff]  }
 0x36c   :  { %v10143_v14 = vadd.f32 %v7635_v3, %v10071_v26  ;;  %5261 = vmatmul.mubr.bf16.gmra.mrb[120].mxu0 %v10705_v6  ;;  %v9169_v3 = vld [vmem:[#allocation8 + $0x630] ss:$12 sps:$4 sm:$0xff]  }
 0x36d   :  { %5487 = vmatmul.mubr.bf16.gmra.mrb[216].mxu1 %v10705_v6  ;;  %5270 = vmatprep.mubr.bf16.mxu0 %v10706_v59  ;;  %v9180_v6 = vld [vmem:[#allocation8 + $0x6f8] ss:$12 sps:$4 sm:$0xff]  }
 0x36e   :  { %v7636_v50 = vpop.f32.mrb[112].mxu1  ;;  %5496 = vmatprep.mubr.bf16.mxu1 %v10706_v59 }
 0x36f   :  { %v7637_v28 = vpop.f32.mrb[113].mxu1 }
 0x370   :  { %v7638_v42 = vadd.f32 %v7637_v28, %v7636_v50  ;;  %v7639_v35 = vpop.f32.mrb[114].mxu1  ;;  %v10712_v50 = vld [vmem:[#allocation35_spill] sm:$0xff]  ;;  %v9176_v28 = vld [vmem:[#allocation8 + $0x64c] ss:$12 sps:$4 sm:$0xff]  }
 0x371   :  { %v7640_v39 = vpop.f32.mrb[115].mxu1 }
 0x372   :  { %v10150_v29 = vadd.f32 %v7638_v42, %v10077_v9  ;;  %v7641_v20 = vadd.f32 %v7640_v39, %v7639_v35  ;;  %v9174_v39 = vld [vmem:[#allocation8 + $0x648] ss:$12 sps:$4 sm:$0xff]  }
 0x374   :  { %v10153_v26 = vadd.f32 %v7641_v20, %v10079_v32  ;;  %5271 = vmatmul.mubr.bf16.gmra.mrb[124].mxu0 %v10707_v21  ;;  %v9188_v20 = vld [vmem:[#allocation8 + $0x710] ss:$12 sps:$4 sm:$0xff]  }
 0x375   :  { %5497 = vmatmul.mubr.bf16.gmra.mrb[220].mxu1 %v10707_v21  ;;  %5313 = vmatprep.mubr.bf16.mxu0 %v10708_v45 }
 0x376   :  { %v7642_v18 = vpop.f32.mrb[116].mxu1  ;;  %5539 = vmatprep.mubr.bf16.mxu1 %v10708_v45 }
 0x377   :  { %v7643_v43 = vpop.f32.mrb[117].mxu1 }
 0x378   :  { %v7644_v19 = vadd.f32 %v7643_v43, %v7642_v18  ;;  %v7645_v60 = vpop.f32.mrb[118].mxu1  ;;  %v9179_v18 = vld [vmem:[#allocation8 + $0x664] ss:$12 sps:$4 sm:$0xff]  }
 0x379   :  { %v7646_v2 = vpop.f32.mrb[119].mxu1 }
 0x37a   :  { %v10160_v9 = vadd.f32 %v7644_v19, %v10085_v48  ;;  %v7647_v49 = vadd.f32 %v7646_v2, %v7645_v60  ;;  %v9189_v2 = vld [vmem:[#allocation8 + $0x650] ss:$12 sps:$4 sm:$0xff]  }
 0x37c   :  { %v10163_v32 = vadd.f32 %v7647_v49, %v10087_v58  ;;  %5314 = vmatmul.mubr.bf16.vlgmr.msra.gmra.mrb[96].mxu0 %v10709_v57  ;;  %v9177_v49 = vld [vmem:[#allocation8 + $0x660] ss:$12 sps:$4 sm:$0xff]  }
 0x37d   :  { %5540 = vmatmul.mubr.bf16.vlgmr.msra.gmra.mrb[192].mxu1 %v10709_v57  ;;  %5323 = vmatprep.mubr.bf16.mxu0 %v10708_v45  ;;  %v9196_v57 = vld [vmem:[#allocation8 + $0x728] ss:$12 sps:$4 sm:$0xff]  }
 0x37e   :  { %v7648_v62 = vpop.f32.mrb[120].mxu1  ;;  %5549 = vmatprep.mubr.bf16.mxu1 %v10708_v45  ;;  %6357 = vmatpush1.bf16.msra.mxu0 %v9161_v47  ;;  %v9212_v47 = vld [vmem:[#allocation8 + $0x758] ss:$12 sps:$4 sm:$0xff]  }
 0x37f   :  { %v7649_v15 = vpop.f32.mrb[121].mxu1  ;;  %7789 = vmatpush3.bf16.msra.mxu1 %v9165_v36  ;;  %6358 = vmatprep.subr.bf16.mxu0 %v9168_v0  ;;  %v9192_v36 = vld [vmem:[#allocation8 + $0x6ac] ss:$12 sps:$4 sm:$0xff]  }
 0x380   :  { %v7650_v1 = vadd.f32 %v7649_v15, %v7648_v62  ;;  %v7651_v63 = vpop.f32.mrb[122].mxu1  ;;  %7790 = vmatprep.subr.bf16.mxu1 %v9172_v37  ;;  %v10713_v15 = vld [vmem:[#allocation36_spill] sm:$0xff] }
 0x381   :  { %v7652_v4 = vpop.f32.mrb[123].mxu1  ;;  %v9213_v0 = vld [vmem:[#allocation8 + $0x698] ss:$12 sps:$4 sm:$0xff]  }
 0x382   :  { %v10170_v48 = vadd.f32 %v7650_v1, %v10093_v56  ;;  %v7653_v31 = vadd.f32 %v7652_v4, %v7651_v63  ;;  %v9184_v1 = vld [vmem:[#allocation8 + $0x67c] ss:$12 sps:$4 sm:$0xff]   ;;  %v9195_v37 = vld [vmem:[#allocation8 + $0x6c4] ss:$12 sps:$4 sm:$0xff]  }
 0x383   :  { %7791 = vmatpush3.bf16.msra.mxu1 %v9173_v24  ;;  %v9197_v63 = vld [vmem:[#allocation8 + $0x668] ss:$12 sps:$4 sm:$0xff]  }
 0x384   :  { %v10173_v58 = vadd.f32 %v7653_v31, %v10095_v51  ;;  %5324 = vmatmul.mubr.bf16.gmra.mrb[100].mxu0 %v10710_v7  ;;  %7792 = vmatprep.subr.bf16.mxu1 %v9180_v6  ;;  %v9182_v31 = vld [vmem:[#allocation8 + $0x678] ss:$12 sps:$4 sm:$0xff]  }
 0x385   :  { %5550 = vmatmul.mubr.bf16.gmra.mrb[196].mxu1 %v10710_v7  ;;  %5333 = vmatprep.mubr.bf16.mxu0 %v10708_v45  ;;  %v9204_v7 = vld [vmem:[#allocation8 + $0x740] ss:$12 sps:$4 sm:$0xff]   ;;  %v10715_v24 = vld [vmem:[#allocation38_spill] sm:$0xff] }
 0x386   :  { %v7654_v13 = vpop.f32.mrb[124].mxu1  ;;  %5559 = vmatprep.mubr.bf16.mxu1 %v10708_v45 }
 0x387   :  { %v7655_v10 = vpop.f32.mrb[125].mxu1 }
 0x388   :  { %v7656_v17 = vadd.f32 %v7655_v10, %v7654_v13  ;;  %v7657_v53 = vpop.f32.mrb[126].mxu1  ;;  %v9187_v10 = vld [vmem:[#allocation8 + $0x694] ss:$12 sps:$4 sm:$0xff]  }
 0x389   :  { %v7658_v12 = vpop.f32.mrb[127].mxu1 }
 0x38a   :  { %v10180_v56 = vadd.f32 %v7656_v17, %v10101_v23  ;;  %v7659_v8 = vadd.f32 %v7658_v12, %v7657_v53 }
 0x38c   :  { %v10183_v51 = vadd.f32 %v7659_v8, %v10103_v22  ;;  %5334 = vmatmul.mubr.bf16.gmra.mrb[104].mxu0 %v10711_v61  ;;  %v9166_v22 = vld [vmem:[#allocation8 + $0x618] ss:$12 sps:$4 sm:$0xff]   ;;  %v9205_v8 = vld [vmem:[#allocation8 + $0x680] ss:$12 sps:$4 sm:$0xff]  }
 0x38d   :  { %5560 = vmatmul.mubr.bf16.gmra.mrb[200].mxu1 %v10711_v61  ;;  %5343 = vmatprep.mubr.bf16.mxu0 %v10708_v45  ;;  %v9185_v61 = vld [vmem:[#allocation8 + $0x690] ss:$12 sps:$4 sm:$0xff]  }
 0x38e   :  { %v7676_v38 = vpop.f32.mrb[128].mxu1  ;;  %5569 = vmatprep.mubr.bf16.mxu1 %v10708_v45  ;;  %6359 = vmatpush1.bf16.msra.mxu0 %v9166_v22 }
 0x38f   :  { %v7677_v23 = vpop.f32.mrb[129].mxu1  ;;  %6360 = vmatprep.subr.bf16.mxu0 %v9171_v52 }
 0x390   :  { %v7678_v41 = vadd.f32 %v7677_v23, %v7676_v38  ;;  %v7679_v11 = vpop.f32.mrb[130].mxu1  ;;  %v9190_v23 = vld [vmem:[#allocation8 + $0x6a8] ss:$12 sps:$4 sm:$0xff]  }
 0x391   :  { %v7680_v55 = vpop.f32.mrb[131].mxu1 }
 0x392   :  { %v10190_v30 = vadd.f32 %v7678_v41, %v10110_v16  ;;  %v7681_v27 = vadd.f32 %v7680_v55, %v7679_v11  ;;  %v9181_v16 = vld [vmem:[#allocation8 + $0x638] ss:$12 sps:$4 sm:$0xff]   ;;  %6361 = vmatpush1.bf16.msra.mxu0 %v9169_v3  ;;  %v9193_v55 = vld [vmem:[#allocation8 + $0x6c0] ss:$12 sps:$4 sm:$0xff]   ;;  %v9200_v3 = vld [vmem:[#allocation8 + $0x6dc] ss:$12 sps:$4 sm:$0xff]  }
 0x393   :  { %6362 = vmatprep.subr.bf16.mxu0 %v9176_v28  ;;  %7793 = vmatpush3.bf16.msra.mxu1 %v9181_v16  ;;  %v9203_v16 = vld [vmem:[#allocation8 + $0x6f4] ss:$12 sps:$4 sm:$0xff]  }
 0x394   :  { %v10193_v59 = vadd.f32 %v7681_v27, %v10113_v5  ;;  %5344 = vmatmul.mubr.bf16.gmra.mrb[108].mxu0 %v10712_v50  ;;  %7794 = vmatprep.subr.bf16.mxu1 %v9188_v20  ;;  %v9201_v20 = vld [vmem:[#allocation8 + $0x6f0] ss:$12 sps:$4 sm:$0xff]  }
 0x395   :  { %5570 = vmatmul.mubr.bf16.gmra.mrb[204].mxu1 %v10712_v50  ;;  %5353 = vmatprep.mubr.bf16.mxu0 %v10708_v45  ;;  %v9198_v50 = vld [vmem:[#allocation8 + $0x6d8] ss:$12 sps:$4 sm:$0xff]  }
 0x396   :  { %v7682_v42 = vpop.f32.mrb[132].mxu1  ;;  %5579 = vmatprep.mubr.bf16.mxu1 %v10708_v45  ;;  %6363 = vmatpush1.bf16.msra.mxu0 %v9174_v39 }
 0x397   :  { %v7683_v35 = vpop.f32.mrb[133].mxu1  ;;  %6364 = vmatprep.subr.bf16.mxu0 %v9179_v18  ;;  %7795 = vmatpush3.bf16.msra.mxu1 %v9189_v2 }
 0x398   :  { %v7684_v5 = vadd.f32 %v7683_v35, %v7682_v42  ;;  %v7685_v21 = vpop.f32.mrb[134].mxu1  ;;  %7796 = vmatprep.subr.bf16.mxu1 %v9196_v57 }
 0x399   :  { %v7686_v43 = vpop.f32.mrb[135].mxu1 }
 0x39a   :  { %v10200_v19 = vadd.f32 %v7684_v5, %v10120_v34  ;;  %v7687_v60 = vadd.f32 %v7686_v43, %v7685_v21  ;;  %6365 = vmatpush1.bf16.msra.mxu0 %v9177_v49  ;;  %v10716_v21 = vld [vmem:[#allocation39_spill] sm:$0xff] }
 0x39b   :  { %6366 = vmatprep.subr.bf16.mxu0 %v9184_v1  ;;  %7797 = vmatpush3.bf16.msra.mxu1 %v9197_v63  ;;  %v9209_v1 = vld [vmem:[#allocation8 + $0x720] ss:$12 sps:$4 sm:$0xff]   ;;  %v9216_v63 = vld [vmem:[#allocation8 + $0x73c] ss:$12 sps:$4 sm:$0xff]  }
 0x39c   :  { %v10203_v62 = vadd.f32 %v7687_v60, %v10123_v44  ;;  %5354 = vmatmul.mubr.bf16.gmra.mrb[112].mxu0 %v10713_v15  ;;  %7798 = vmatprep.subr.bf16.mxu1 %v9204_v7  ;;  %v9206_v60 = vld [vmem:[#allocation8 + $0x708] ss:$12 sps:$4 sm:$0xff]   ;;  %v9214_v7 = vld [vmem:[#allocation8 + $0x738] ss:$12 sps:$4 sm:$0xff]  }
 0x39d   :  { %5580 = vmatmul.mubr.bf16.gmra.mrb[208].mxu1 %v10713_v15  ;;  %5363 = vmatprep.mubr.bf16.mxu0 %v10708_v45 }
 0x39e   :  { %v7688_v34 = vpop.f32.mrb[136].mxu1  ;;  %5589 = vmatprep.mubr.bf16.mxu1 %v10708_v45  ;;  %6367 = vmatpush1.bf16.msra.mxu0 %v9182_v31 }
 0x39f   :  { %v7689_v4 = vpop.f32.mrb[137].mxu1  ;;  %6368 = vmatprep.subr.bf16.mxu0 %v9187_v10  ;;  %7799 = vmatpush3.bf16.msra.mxu1 %v9205_v8 }
 0x3a0   :  { %v7690_v44 = vadd.f32 %v7689_v4, %v7688_v34  ;;  %v7691_v13 = vpop.f32.mrb[138].mxu1  ;;  %7800 = vmatprep.subr.bf16.mxu1 %v9212_v47 }
 0x3a1   :  { %v7692_v17 = vpop.f32.mrb[139].mxu1 }
 0x3a2   :  { %v10210_v53 = vadd.f32 %v7690_v44, %v10130_v54  ;;  %v7693_v12 = vadd.f32 %v7692_v17, %v7691_v13  ;;  %6369 = vmatpush1.bf16.msra.mxu0 %v9185_v61 }
 0x3a3   :  { %6370 = vmatprep.subr.bf16.mxu0 %v9192_v36  ;;  %7801 = vmatpush3.bf16.msra.mxu1 %v9213_v0 }
 0x3a4   :  { %v10213_v33 = vadd.f32 %v7693_v12, %v10133_v40  ;;  %5364 = vmatmul.mubr.bf16.gmra.mrb[116].mxu0 %v10714_v25 }
 0x3a5   :  { %5590 = vmatmul.mubr.bf16.gmra.mrb[212].mxu1 %v10714_v25  ;;  %5373 = vmatprep.mubr.bf16.mxu0 %v10708_v45 }
 0x3a6   :  { %v7694_v54 = vpop.f32.mrb[140].mxu1  ;;  %5599 = vmatprep.mubr.bf16.mxu1 %v10708_v45  ;;  %6371 = vmatpush1.bf16.msra.mxu0 %v9190_v23 }
 0x3a7   :  { %v7695_v38 = vpop.f32.mrb[141].mxu1  ;;  %6372 = vmatprep.subr.bf16.mxu0 %v9195_v37  ;;  %v9219_v37 = vld [vmem:[#allocation8 + $0x754] ss:$12 sps:$4 sm:$0xff]  }
 0x3a8   :  { %v7696_v22 = vadd.f32 %v7695_v38, %v7694_v54  ;;  %v7697_v40 = vpop.f32.mrb[142].mxu1 }
 0x3a9   :  { %v7698_v41 = vpop.f32.mrb[143].mxu1 }
 0x3aa   :  { %v10220_v11 = vadd.f32 %v7696_v22, %v10140_v46  ;;  %v7699_v52 = vadd.f32 %v7698_v41, %v7697_v40  ;;  %6373 = vmatpush1.bf16.msra.mxu0 %v9193_v55 }
 0x3ab   :  { %6374 = vmatprep.subr.bf16.mxu0 %v9200_v3  ;;  %v9221_v3 = vld [vmem:[#allocation8 + $0x6b0] ss:$12 sps:$4 sm:$0xff]  }
 0x3ac   :  { %v10223_v27 = vadd.f32 %v7699_v52, %v10143_v14  ;;  %5374 = vmatmul.mubr.bf16.gmra.mrb[120].mxu0 %v10715_v24  ;;  %v9217_v52 = vld [vmem:[#allocation8 + $0x750] ss:$12 sps:$4 sm:$0xff]  }
 0x3ad   :  { %5600 = vmatmul.mubr.bf16.gmra.mrb[216].mxu1 %v10715_v24  ;;  %5383 = vmatprep.mubr.bf16.mxu0 %v10708_v45  ;;  %v9224_v24 = vld [vmem:[#allocation8 + $0x76c] ss:$12 sps:$4 sm:$0xff]  }
 0x3ae   :  { %v7700_v6 = vpop.f32.mrb[144].mxu1  ;;  %5609 = vmatprep.mubr.bf16.mxu1 %v10708_v45  ;;  %6375 = vmatpush1.bf16.msra.mxu0 %v9198_v50  ;;  %v9208_v45 = vld [vmem:[#allocation8 + $0x70c] ss:$12 sps:$4 sm:$0xff]  }
 0x3af   :  { %v7701_v46 = vpop.f32.mrb[145].mxu1  ;;  %6376 = vmatprep.subr.bf16.mxu0 %v9203_v16 }
 0x3b0   :  { %v7702_v28 = vadd.f32 %v7701_v46, %v7700_v6  ;;  %v7703_v42 = vpop.f32.mrb[146].mxu1  ;;  %v9222_v6 = vld [vmem:[#allocation8 + $0x768] ss:$12 sps:$4 sm:$0xff]  }
 0x3b1   :  { %v7704_v14 = vpop.f32.mrb[147].mxu1 }
 0x3b2   :  { %v10230_v35 = vadd.f32 %v7702_v28, %v10150_v29  ;;  %v7705_v39 = vadd.f32 %v7704_v14, %v7703_v42  ;;  %6377 = vmatpush1.bf16.msra.mxu0 %v9201_v20  ;;  %v9211_v29 = vld [vmem:[#allocation8 + $0x724] ss:$12 sps:$4 sm:$0xff]  }
 0x3b3   :  { %6378 = vmatprep.subr.bf16.mxu0 %v9208_v45  ;;  %v9227_v42 = vld [vmem:[#allocation8 + $0x784] ss:$12 sps:$4 sm:$0xff]  }
 0x3b4   :  { %v10233_v5 = vadd.f32 %v7705_v39, %v10153_v26  ;;  %5384 = vmatmul.mubr.bf16.gmra.mrb[124].mxu0 %v10716_v21 }
 0x3b5   :  { %5610 = vmatmul.mubr.bf16.gmra.mrb[220].mxu1 %v10716_v21 }
 0x3b6   :  { %v7706_v18 = vpop.f32.mrb[148].mxu1  ;;  %6379 = vmatpush1.bf16.msra.mxu0 %v9206_v60 }
 0x3b7   :  { %v7707_v43 = vpop.f32.mrb[149].mxu1  ;;  %6380 = vmatprep.subr.bf16.mxu0 %v9211_v29 }
 0x3b8   :  { %v7708_v2 = vadd.f32 %v7707_v43, %v7706_v18  ;;  %v7709_v49 = vpop.f32.mrb[150].mxu1  ;;  %v9228_v18 = vld [vmem:[#allocation8 + $0x848] ss:$12 sps:$4 sm:$0xff]  }
 0x3b9   :  { %v7710_v57 = vpop.f32.mrb[151].mxu1 }
 0x3ba   :  { %v10238_v15 = vadd.f32 %v7708_v2, %v10160_v9  ;;  %v7711_v26 = vadd.f32 %v7710_v57, %v7709_v49  ;;  %6381 = vmatpush1.bf16.msra.mxu0 %v9209_v1 }
 0x3bb   :  { %6382 = vmatprep.subr.bf16.mxu0 %v9216_v63 }
 0x3bc   :  { %v10241_v34 = vadd.f32 %v7711_v26, %v10163_v32 }
 0x3be   :  { %v7712_v4 = vpop.f32.mrb[152].mxu1  ;;  %6383 = vmatpush1.bf16.msra.mxu0 %v9214_v7 }
 0x3bf   :  { %v7713_v31 = vpop.f32.mrb[153].mxu1  ;;  %6384 = vmatprep.subr.bf16.mxu0 %v9219_v37 }
 0x3c0   :  { %v7714_v44 = vadd.f32 %v7713_v31, %v7712_v4  ;;  %v7715_v13 = vpop.f32.mrb[154].mxu1 }
 0x3c1   :  { %v7716_v10 = vpop.f32.mrb[155].mxu1 }
 0x3c2   :  { %v10244_v17 = vadd.f32 %v7714_v44, %v10170_v48  ;;  %v7717_v9 = vadd.f32 %v7716_v10, %v7715_v13  ;;  %6385 = vmatpush1.bf16.msra.mxu0 %v9217_v52 }
 0x3c3   :  { %6386 = vmatprep.subr.bf16.mxu0 %v9224_v24 }
 0x3c4   :  { %v10247_v12 = vadd.f32 %v7717_v9, %v10173_v58 }
 0x3c6   :  { %v7718_v32 = vpop.f32.mrb[156].mxu1  ;;  %6387 = vmatpush1.bf16.msra.mxu0 %v9222_v6  ;;  %v4666_v6 = vld [vmem:[#allocation7 + $0x8] sm:$0xf] }
 0x3c7   :  { %v7719_v8 = vpop.f32.mrb[157].mxu1  ;;  %6469 = vmatprep.subr.bf16.mxu0 %v9227_v42  ;;  %v10720_v42 = vld [vmem:[#allocation43_spill] sm:$0xff] }
 0x3c8   :  { %v7720_v61 = vadd.f32 %v7719_v8, %v7718_v32  ;;  %v7721_v47 = vpop.f32.mrb[158].mxu1 }
 0x3c9   :  { %v7722_v25 = vpop.f32.mrb[159].mxu1 }
 0x3ca   :  { %v10250_v36 = vadd.f32 %v7720_v61, %v10180_v56  ;;  %v7723_v54 = vadd.f32 %v7722_v25, %v7721_v47  ;;  %v9220_v56 = vld [vmem:[#allocation8 + $0x770] ss:$12 sps:$4 sm:$0xff]  }
 0x3cb   :  { %7802 = vmatprep.subr.bf16.mxu1 %v9220_v56 }
 0x3cc   :  { %v10253_v0 = vadd.f32 %v7723_v54, %v10183_v51  ;;  %7803 = vmatpush3.bf16.msra.mxu1 %v9221_v3 }
 0x3cd   :  { %7852 = vmatprep.subr.bf16.mxu1 %v9228_v18 }
 0x3ce   :  { %v7740_v38 = vpop.f32.mrb[160].mxu1 }
 0x3cf   :  { %v7741_v48 = vpop.f32.mrb[161].mxu1 }
 0x3d0   :  { %v7742_v23 = vadd.f32 %v7741_v48, %v7740_v38  ;;  %v7743_v22 = vpop.f32.mrb[162].mxu1 }
 0x3d1   :  { %v7744_v40 = vpop.f32.mrb[163].mxu1 }
 0x3d2   :  { %v10256_v58 = vadd.f32 %v7742_v23, %v10190_v30  ;;  %v7745_v41 = vadd.f32 %v7744_v40, %v7743_v22 }
 0x3d4   :  { %v10259_v55 = vadd.f32 %v7745_v41, %v10193_v59 }
 0x3d6   :  { %v7746_v51 = vpop.f32.mrb[164].mxu1 }
 0x3d7   :  { %v7747_v46 = vpop.f32.mrb[165].mxu1 }
 0x3d8   :  { %v7748_v50 = vadd.f32 %v7747_v46, %v7746_v51  ;;  %v7749_v28 = vpop.f32.mrb[166].mxu1  ;;  %v10717_v46 = vld [vmem:[#allocation40_spill] sm:$0xff] }
 0x3d9   :  { %v7750_v30 = vpop.f32.mrb[167].mxu1 }
 0x3da   :  { %v10262_v16 = vadd.f32 %v7748_v50, %v10200_v19  ;;  %v7751_v59 = vadd.f32 %v7750_v30, %v7749_v28  ;;  %v10718_v50 = vld [vmem:[#allocation41_spill] sm:$0xff] }
 0x3db   :  { %v10307_v28 = vrot.slane %v4666_v6, %v10718_v50 }
 0x3dc   :  { %v10265_v14 = vadd.f32 %v7751_v59, %v10203_v62  ;;  %v10313_v59 = vrot.slane %v4666_v6, %v10720_v42 }
 0x3de   :  { %v7752_v39 = vpop.f32.mrb[168].mxu1 }
 0x3df   :  { %v7753_v20 = vpop.f32.mrb[169].mxu1 }
 0x3e0   :  { %v7754_v21 = vadd.f32 %v7753_v20, %v7752_v39  ;;  %v7755_v45 = vpop.f32.mrb[170].mxu1 }
 0x3e1   :  { %v7756_v43 = vpop.f32.mrb[171].mxu1 }
 0x3e2   :  { %v10268_v60 = vadd.f32 %v7754_v21, %v10210_v53  ;;  %v7757_v2 = vadd.f32 %v7756_v43, %v7755_v45 }
 0x3e4   :  { %v10271_v49 = vadd.f32 %v7757_v2, %v10213_v33 }
 0x3e6   :  { %v7758_v19 = vpop.f32.mrb[172].mxu1 }
 0x3e7   :  { %v7759_v29 = vpop.f32.mrb[173].mxu1 }
 0x3e8   :  { %v7760_v57 = vadd.f32 %v7759_v29, %v7758_v19  ;;  %v7761_v26 = vpop.f32.mrb[174].mxu1 }
 0x3e9   :  { %v7762_v62 = vpop.f32.mrb[175].mxu1 }
 0x3ea   :  { %v10274_v1 = vadd.f32 %v7760_v57, %v10220_v11  ;;  %v7763_v63 = vadd.f32 %v7762_v62, %v7761_v26 }
 0x3ec   :  { %v10277_v4 = vadd.f32 %v7763_v63, %v10223_v27 }
 0x3ee   :  { %v7764_v31 = vpop.f32.mrb[176].mxu1 }
 0x3ef   :  { %v7765_v53 = vpop.f32.mrb[177].mxu1 }
 0x3f0   :  { %v7766_v7 = vadd.f32 %v7765_v53, %v7764_v31  ;;  %v7767_v44 = vpop.f32.mrb[178].mxu1 }
 0x3f1   :  { %v7768_v13 = vpop.f32.mrb[179].mxu1 }
 0x3f2   :  { %v10280_v33 = vadd.f32 %v7766_v7, %v10230_v35  ;;  %v7769_v10 = vadd.f32 %v7768_v13, %v7767_v44 }
 0x3f4   :  { %v10283_v9 = vadd.f32 %v7769_v10, %v10233_v5 }
 0x3f6   :  { %v7770_v32 = vpop.f32.mrb[180].mxu1 }
 0x3f7   :  { %v7771_v8 = vpop.f32.mrb[181].mxu1 }
 0x3f8   :  { %v7772_v11 = vadd.f32 %v7771_v8, %v7770_v32  ;;  %v7773_v61 = vpop.f32.mrb[182].mxu1 }
 0x3f9   :  { %v7774_v47 = vpop.f32.mrb[183].mxu1 }
 0x3fa   :  { %v10286_v27 = vadd.f32 %v7772_v11, %v10238_v15  ;;  %v7775_v25 = vadd.f32 %v7774_v47, %v7773_v61 }
 0x3fc   :  { %v10289_v54 = vadd.f32 %v7775_v25, %v10241_v34 }
 0x3fe   :  { %v7776_v38 = vpop.f32.mrb[184].mxu1 }
 0x3ff   :  { %v7777_v48 = vpop.f32.mrb[185].mxu1 }
 0x400   :  { %v7778_v35 = vadd.f32 %v7777_v48, %v7776_v38  ;;  %v7779_v23 = vpop.f32.mrb[186].mxu1  ;;  %v9225_v48 = vld [vmem:[#allocation8 + $0x780] ss:$12 sps:$4 sm:$0xff]  }
 0x401   :  { %v7780_v22 = vpop.f32.mrb[187].mxu1 }
 0x402   :  { %v10292_v5 = vadd.f32 %v7778_v35, %v10244_v17  ;;  %v7781_v40 = vadd.f32 %v7780_v22, %v7779_v23  ;;  %v10304_v17 = vrot.slane %v4666_v6, %v10717_v46  ;;  %v9229_v35 = vld [vmem:[#allocation8 + $0x788] ss:$12 sps:$4 sm:$0xff]  }
 0x404   :  { %v10295_v37 = vadd.f32 %v7781_v40, %v10247_v12  ;;  %v10719_v12 = vld [vmem:[#allocation42_spill] sm:$0xff] }
 0x405   :  { %v10310_v30 = vrot.slane %v4666_v6, %v10719_v12 }
 0x406   :  { %v7782_v41 = vpop.f32.mrb[188].mxu1 }
 0x407   :  { %v7783_v52 = vpop.f32.mrb[189].mxu1 }
 0x408   :  { %v7784_v15 = vadd.f32 %v7783_v52, %v7782_v41  ;;  %v7785_v56 = vpop.f32.mrb[190].mxu1  ;;  %v9232_v52 = vld [vmem:[#allocation8 + $0x79c] ss:$12 sps:$4 sm:$0xff]  }
 0x409   :  { %v7786_v24 = vpop.f32.mrb[191].mxu1 }
 0x40a   :  { %v10298_v34 = vadd.f32 %v7784_v15, %v10250_v36  ;;  %v7787_v51 = vadd.f32 %v7786_v24, %v7785_v56  ;;  %v9236_v15 = vld [vmem:[#allocation8 + $0x860] ss:$12 sps:$4 sm:$0xff]  }
 0x40c   :  { %v10301_v3 = vadd.f32 %v7787_v51, %v10253_v0 }
 0x44f   :  { %v5315_v39 = vpop.f32.mrb[96].mxu0 }
 0x450   :  { %v8044_v36 = vadd.f32 %v5315_v39, %v10304_v17  ;;  %v5541_v20 = vpop.f32.mrb[192].mxu1  ;;  %v5317_v21 = vpop.f32.mrb[97].mxu0 }
 0x451   :  { %v8076_v0 = vadd.f32 %v5541_v20, %v10307_v28  ;;  %v8045_v45 = vadd.f32 %v5317_v21, %v10310_v30  ;;  %v5543_v18 = vpop.f32.mrb[193].mxu1  ;;  %v5319_v43 = vpop.f32.mrb[98].mxu0 }
 0x452   :  { %v8077_v2 = vadd.f32 %v5543_v18, %v10313_v59  ;;  %v8046_v19 = vadd.f32 %v5319_v43, %v10304_v17  ;;  %v5545_v29 = vpop.f32.mrb[194].mxu1  ;;  %v5321_v57 = vpop.f32.mrb[99].mxu0  ;;  %v5620_v31 = vmax.f32 %v8044_v36, 0.0  ;;  %v9230_v18 = vld [vmem:[#allocation8 + $0x798] ss:$12 sps:$4 sm:$0xff]  }
 0x453   :  { %v8078_v26 = vadd.f32 %v5545_v29, %v10307_v28  ;;  %v8047_v62 = vadd.f32 %v5321_v57, %v10310_v30  ;;  %v5547_v63 = vpop.f32.mrb[195].mxu1  ;;  %v5622_v44 = vmax.f32 %v8076_v0, 0.0  ;;  %v5621_v13 = vmax.f32 %v8045_v45, 0.0  ;;  %v9237_v43 = vld [vmem:[#allocation8 + $0x7a0] ss:$12 sps:$4 sm:$0xff]  }
 0x454   :  { %v5624_v53 = vmax.f32 %v8046_v19, 0.0  ;;  %v8079_v7 = vadd.f32 %v5547_v63, %v10313_v59  ;;  %v5623_v8 = vmax.f32 %v8077_v2, 0.0  ;;  %v9235_v57 = vld [vmem:[#allocation8 + $0x7b4] ss:$12 sps:$4 sm:$0xff]  }
 0x455   :  { %v5626_v10 = vmax.f32 %v8078_v26, 0.0  ;;  %v5625_v32 = vmax.f32 %v8047_v62, 0.0  ;;  %v9244_v26 = vld [vmem:[#allocation8 + $0x878] ss:$12 sps:$4 sm:$0xff]  }
 0x456   :  { %v5684_v11 = vpack.c.bf16 %v5624_v53, %v5620_v31  ;;  %v5627_v61 = vmax.f32 %v8079_v7, 0.0 }
 0x457   :  { %v10323_v47 = vpack.c.bf16 %v5626_v10, %v5622_v44  ;;  %v5685_v25 = vpack.c.bf16 %v5625_v32, %v5621_v13  ;;  %v5325_v38 = vpop.f32.mrb[100].mxu0 }
 0x458   :  { %v10325_v23 = vpack.c.bf16 %v5627_v61, %v5623_v8  ;;  %v8048_v22 = vadd.f32 %v5325_v38, %v10304_v17  ;;  %v5551_v40 = vpop.f32.mrb[196].mxu1  ;;  %v5327_v41 = vpop.f32.mrb[101].mxu0  ;;  %v9245_v61 = vld [vmem:[#allocation8 + $0x7b8] ss:$12 sps:$4 sm:$0xff]  }
 0x459   :  { %v8080_v56 = vadd.f32 %v5551_v40, %v10307_v28  ;;  %v8049_v24 = vadd.f32 %v5327_v41, %v10310_v30  ;;  %v5553_v51 = vpop.f32.mrb[197].mxu1  ;;  %v5329_v6 = vpop.f32.mrb[102].mxu0  ;;  %6388 = vmatprep.mubr.bf16.mxu0 %v5685_v25  ;;  %6614 = vmatprep.mubr.bf16.mxu1 %v5685_v25  ;;  %v9252_v40 = vld [vmem:[#allocation8 + $0x890] ss:$12 sps:$4 sm:$0xff]  }
 0x45a   :  { %v8081_v42 = vadd.f32 %v5553_v51, %v10313_v59  ;;  %v8050_v39 = vadd.f32 %v5329_v6, %v10304_v17  ;;  %v5555_v36 = vpop.f32.mrb[198].mxu1  ;;  %v5331_v20 = vpop.f32.mrb[103].mxu0  ;;  %6389 = vmatmul.mubr.bf16.vlgmr.msra.gmra.mrb[64].mxu0 %v5684_v11  ;;  %6615 = vmatmul.mubr.bf16.vlgmr.msra.gmra.mrb[224].mxu1 %v5684_v11  ;;  %v5628_v2 = vmax.f32 %v8048_v22, 0.0  ;;  %v9233_v11 = vld [vmem:[#allocation8 + $0x7b0] ss:$12 sps:$4 sm:$0xff]  }
 0x45b   :  { %v8082_v21 = vadd.f32 %v5555_v36, %v10307_v28  ;;  %v8051_v0 = vadd.f32 %v5331_v20, %v10310_v30  ;;  %v5557_v45 = vpop.f32.mrb[199].mxu1  ;;  %6470 = vmatpush1.bf16.msra.mxu0 %v9225_v48  ;;  %7853 = vmatpush3.bf16.msra.mxu1 %v9229_v35  ;;  %v5630_v62 = vmax.f32 %v8080_v56, 0.0  ;;  %v5629_v63 = vmax.f32 %v8049_v24, 0.0  ;;  %v9240_v22 = vld [vmem:[#allocation8 + $0x7cc] ss:$12 sps:$4 sm:$0xff]  }
 0x45c   :  { %v5632_v19 = vmax.f32 %v8050_v39, 0.0  ;;  %v8083_v29 = vadd.f32 %v5557_v45, %v10313_v59  ;;  %6471 = vmatprep.subr.bf16.mxu0 %v9232_v52  ;;  %7854 = vmatprep.subr.bf16.mxu1 %v9236_v15  ;;  %v5631_v7 = vmax.f32 %v8081_v42, 0.0 }
 0x45d   :  { %v5634_v31 = vmax.f32 %v8082_v21, 0.0  ;;  %v5633_v53 = vmax.f32 %v8051_v0, 0.0  ;;  %v9238_v21 = vld [vmem:[#allocation8 + $0x7c8] ss:$12 sps:$4 sm:$0xff]   ;;  %v9253_v0 = vld [vmem:[#allocation8 + $0x7d0] ss:$12 sps:$4 sm:$0xff]  }
 0x45e   :  { %v5688_v44 = vpack.c.bf16 %v5632_v19, %v5628_v2  ;;  %v5635_v13 = vmax.f32 %v8083_v29, 0.0  ;;  %v9243_v2 = vld [vmem:[#allocation8 + $0x7e4] ss:$12 sps:$4 sm:$0xff]   ;;  %v9260_v19 = vld [vmem:[#allocation8 + $0x8a8] ss:$12 sps:$4 sm:$0xff]  }
 0x45f   :  { %v10335_v10 = vpack.c.bf16 %v5634_v31, %v5630_v62  ;;  %v5689_v32 = vpack.c.bf16 %v5633_v53, %v5629_v63  ;;  %v5335_v8 = vpop.f32.mrb[104].mxu0  ;;  %6472 = vmatpush1.bf16.msra.mxu0 %v9230_v18  ;;  %7855 = vmatpush3.bf16.msra.mxu1 %v9237_v43 }
 0x460   :  { %v10337_v25 = vpack.c.bf16 %v5635_v13, %v5631_v7  ;;  %v8052_v38 = vadd.f32 %v5335_v8, %v10304_v17  ;;  %v5561_v48 = vpop.f32.mrb[200].mxu1  ;;  %v5337_v35 = vpop.f32.mrb[105].mxu0  ;;  %6473 = vmatprep.subr.bf16.mxu0 %v9235_v57  ;;  %7856 = vmatprep.subr.bf16.mxu1 %v9244_v26  ;;  %v9261_v8 = vld [vmem:[#allocation8 + $0x7e8] ss:$12 sps:$4 sm:$0xff]  }
 0x461   :  { %v8084_v41 = vadd.f32 %v5561_v48, %v10307_v28  ;;  %v8053_v52 = vadd.f32 %v5337_v35, %v10310_v30  ;;  %v5563_v15 = vpop.f32.mrb[201].mxu1  ;;  %v5339_v56 = vpop.f32.mrb[106].mxu0  ;;  %6398 = vmatprep.mubr.bf16.mxu0 %v5689_v32  ;;  %6622 = vmatprep.mubr.bf16.mxu1 %v5689_v32  ;;  %v9241_v32 = vld [vmem:[#allocation8 + $0x7e0] ss:$12 sps:$4 sm:$0xff]   ;;  %v9248_v35 = vld [vmem:[#allocation8 + $0x7fc] ss:$12 sps:$4 sm:$0xff]  }
 0x462   :  { %v8085_v24 = vadd.f32 %v5563_v15, %v10313_v59  ;;  %v8054_v51 = vadd.f32 %v5339_v56, %v10304_v17  ;;  %v5565_v6 = vpop.f32.mrb[202].mxu1  ;;  %v5341_v42 = vpop.f32.mrb[107].mxu0  ;;  %6399 = vmatmul.mubr.bf16.gmra.mrb[68].mxu0 %v5688_v44  ;;  %6623 = vmatmul.mubr.bf16.gmra.mrb[228].mxu1 %v5688_v44  ;;  %v5636_v45 = vmax.f32 %v8052_v38, 0.0 }
 0x463   :  { %v8086_v39 = vadd.f32 %v5565_v6, %v10307_v28  ;;  %v8055_v36 = vadd.f32 %v5341_v42, %v10310_v30  ;;  %v5567_v20 = vpop.f32.mrb[203].mxu1  ;;  %6474 = vmatpush1.bf16.msra.mxu0 %v9233_v11  ;;  %7857 = vmatpush3.bf16.msra.mxu1 %v9245_v61  ;;  %v5638_v29 = vmax.f32 %v8084_v41, 0.0  ;;  %v5637_v57 = vmax.f32 %v8053_v52, 0.0 }
 0x464   :  { %v5640_v18 = vmax.f32 %v8054_v51, 0.0  ;;  %v8087_v43 = vadd.f32 %v5567_v20, %v10313_v59  ;;  %6475 = vmatprep.subr.bf16.mxu0 %v9240_v22  ;;  %7858 = vmatprep.subr.bf16.mxu1 %v9252_v40  ;;  %v5639_v63 = vmax.f32 %v8085_v24, 0.0  ;;  %v9268_v22 = vld [vmem:[#allocation8 + $0x8c0] ss:$12 sps:$4 sm:$0xff]   ;;  %v9246_v20 = vld [vmem:[#allocation8 + $0x7f8] ss:$12 sps:$4 sm:$0xff]  }
 0x465   :  { %v5642_v26 = vmax.f32 %v8086_v39, 0.0  ;;  %v5641_v62 = vmax.f32 %v8055_v36, 0.0 }
 0x466   :  { %v5692_v31 = vpack.c.bf16 %v5640_v18, %v5636_v45  ;;  %v5643_v53 = vmax.f32 %v8087_v43, 0.0  ;;  %v9251_v43 = vld [vmem:[#allocation8 + $0x814] ss:$12 sps:$4 sm:$0xff]  }
 0x467   :  { %v10347_v7 = vpack.c.bf16 %v5642_v26, %v5638_v29  ;;  %v5693_v44 = vpack.c.bf16 %v5641_v62, %v5637_v57  ;;  %v5345_v13 = vpop.f32.mrb[108].mxu0  ;;  %6476 = vmatpush1.bf16.msra.mxu0 %v9238_v21  ;;  %7859 = vmatpush3.bf16.msra.mxu1 %v9253_v0  ;;  %v9269_v21 = vld [vmem:[#allocation8 + $0x800] ss:$12 sps:$4 sm:$0xff]  }
 0x468   :  { %v10349_v11 = vpack.c.bf16 %v5643_v53, %v5639_v63  ;;  %v8056_v61 = vadd.f32 %v5345_v13, %v10304_v17  ;;  %v5571_v38 = vpop.f32.mrb[204].mxu1  ;;  %v5347_v48 = vpop.f32.mrb[109].mxu0  ;;  %6477 = vmatprep.subr.bf16.mxu0 %v9243_v2  ;;  %7860 = vmatprep.subr.bf16.mxu1 %v9260_v19  ;;  %v9276_v2 = vld [vmem:[#allocation8 + $0x8d8] ss:$12 sps:$4 sm:$0xff]  }
 0x469   :  { %v8088_v40 = vadd.f32 %v5571_v38, %v10307_v28  ;;  %v8057_v41 = vadd.f32 %v5347_v48, %v10310_v30  ;;  %v5573_v52 = vpop.f32.mrb[205].mxu1  ;;  %v5349_v15 = vpop.f32.mrb[110].mxu0  ;;  %6408 = vmatprep.mubr.bf16.mxu0 %v5693_v44  ;;  %6630 = vmatprep.mubr.bf16.mxu1 %v5693_v44 }
 0x46a   :  { %v8089_v56 = vadd.f32 %v5573_v52, %v10313_v59  ;;  %v8058_v24 = vadd.f32 %v5349_v15, %v10304_v17  ;;  %v5575_v51 = vpop.f32.mrb[206].mxu1  ;;  %v5351_v6 = vpop.f32.mrb[111].mxu0  ;;  %6409 = vmatmul.mubr.bf16.gmra.mrb[72].mxu0 %v5692_v31  ;;  %6631 = vmatmul.mubr.bf16.gmra.mrb[232].mxu1 %v5692_v31  ;;  %v5644_v0 = vmax.f32 %v8056_v61, 0.0 }
 0x46b   :  { %v8090_v42 = vadd.f32 %v5575_v51, %v10307_v28  ;;  %v8059_v39 = vadd.f32 %v5351_v6, %v10310_v30  ;;  %v5577_v36 = vpop.f32.mrb[207].mxu1  ;;  %6478 = vmatpush1.bf16.msra.mxu0 %v9241_v32  ;;  %7861 = vmatpush3.bf16.msra.mxu1 %v9261_v8  ;;  %v5646_v19 = vmax.f32 %v8088_v40, 0.0  ;;  %v5645_v29 = vmax.f32 %v8057_v41, 0.0  ;;  %v9249_v32 = vld [vmem:[#allocation8 + $0x810] ss:$12 sps:$4 sm:$0xff]  }
 0x46c   :  { %v5648_v45 = vmax.f32 %v8058_v24, 0.0  ;;  %v8091_v18 = vadd.f32 %v5577_v36, %v10313_v59  ;;  %6479 = vmatprep.subr.bf16.mxu0 %v9248_v35  ;;  %7862 = vmatprep.subr.bf16.mxu1 %v9268_v22  ;;  %v5647_v62 = vmax.f32 %v8089_v56, 0.0  ;;  %v9277_v8 = vld [vmem:[#allocation8 + $0x818] ss:$12 sps:$4 sm:$0xff]   ;;  %v9284_v40 = vld [vmem:[#allocation8 + $0x8f0] ss:$12 sps:$4 sm:$0xff]  }
 0x46d   :  { %v5650_v57 = vmax.f32 %v8090_v42, 0.0  ;;  %v5649_v26 = vmax.f32 %v8059_v39, 0.0  ;;  %v9256_v22 = vld [vmem:[#allocation8 + $0x82c] ss:$12 sps:$4 sm:$0xff]  }
 0x46e   :  { %v5696_v63 = vpack.c.bf16 %v5648_v45, %v5644_v0  ;;  %v5651_v31 = vmax.f32 %v8091_v18, 0.0  ;;  %v9285_v0 = vld [vmem:[#allocation8 + $0x830] ss:$12 sps:$4 sm:$0xff]  }
 0x46f   :  { %v10359_v53 = vpack.c.bf16 %v5650_v57, %v5646_v19  ;;  %v5697_v44 = vpack.c.bf16 %v5649_v26, %v5645_v29  ;;  %v5355_v13 = vpop.f32.mrb[112].mxu0  ;;  %6480 = vmatpush1.bf16.msra.mxu0 %v9246_v20  ;;  %7863 = vmatpush3.bf16.msra.mxu1 %v9269_v21  ;;  %v9254_v21 = vld [vmem:[#allocation8 + $0x828] ss:$12 sps:$4 sm:$0xff]  }
 0x470   :  { %v10361_v61 = vpack.c.bf16 %v5651_v31, %v5647_v62  ;;  %v8060_v38 = vadd.f32 %v5355_v13, %v10304_v17  ;;  %v5581_v48 = vpop.f32.mrb[208].mxu1  ;;  %v5357_v35 = vpop.f32.mrb[113].mxu0  ;;  %6481 = vmatprep.subr.bf16.mxu0 %v9251_v43  ;;  %7864 = vmatprep.subr.bf16.mxu1 %v9276_v2  ;;  %v9259_v2 = vld [vmem:[#allocation8 + $0x844] ss:$12 sps:$4 sm:$0xff]  }
 0x471   :  { %v8092_v41 = vadd.f32 %v5581_v48, %v10307_v28  ;;  %v8061_v52 = vadd.f32 %v5357_v35, %v10310_v30  ;;  %v5583_v15 = vpop.f32.mrb[209].mxu1  ;;  %v5359_v56 = vpop.f32.mrb[114].mxu0  ;;  %6418 = vmatprep.mubr.bf16.mxu0 %v5697_v44  ;;  %6638 = vmatprep.mubr.bf16.mxu1 %v5697_v44 }
 0x472   :  { %v8093_v24 = vadd.f32 %v5583_v15, %v10313_v59  ;;  %v8062_v51 = vadd.f32 %v5359_v56, %v10304_v17  ;;  %v5585_v6 = vpop.f32.mrb[210].mxu1  ;;  %v5361_v42 = vpop.f32.mrb[115].mxu0  ;;  %6419 = vmatmul.mubr.bf16.gmra.mrb[76].mxu0 %v5696_v63  ;;  %6639 = vmatmul.mubr.bf16.gmra.mrb[236].mxu1 %v5696_v63  ;;  %v5652_v45 = vmax.f32 %v8060_v38, 0.0 }
 0x473   :  { %v8094_v39 = vadd.f32 %v5585_v6, %v10307_v28  ;;  %v8063_v36 = vadd.f32 %v5361_v42, %v10310_v30  ;;  %v5587_v20 = vpop.f32.mrb[211].mxu1  ;;  %6482 = vmatpush1.bf16.msra.mxu0 %v9249_v32  ;;  %7865 = vmatpush3.bf16.msra.mxu1 %v9277_v8  ;;  %v5654_v19 = vmax.f32 %v8092_v41, 0.0  ;;  %v5653_v29 = vmax.f32 %v8061_v52, 0.0  ;;  %v9257_v8 = vld [vmem:[#allocation8 + $0x840] ss:$12 sps:$4 sm:$0xff]  }
 0x474   :  { %v5656_v18 = vmax.f32 %v8062_v51, 0.0  ;;  %v8095_v43 = vadd.f32 %v5587_v20, %v10313_v59  ;;  %6483 = vmatprep.subr.bf16.mxu0 %v9256_v22  ;;  %7866 = vmatprep.subr.bf16.mxu1 %v9284_v40  ;;  %v5655_v62 = vmax.f32 %v8093_v24, 0.0  ;;  %v9264_v40 = vld [vmem:[#allocation8 + $0x85c] ss:$12 sps:$4 sm:$0xff]  }
 0x475   :  { %v5658_v57 = vmax.f32 %v8094_v39, 0.0  ;;  %v5657_v26 = vmax.f32 %v8063_v36, 0.0 }
 0x476   :  { %v5700_v63 = vpack.c.bf16 %v5656_v18, %v5652_v45  ;;  %v5659_v31 = vmax.f32 %v8095_v43, 0.0  ;;  %v9267_v43 = vld [vmem:[#allocation8 + $0x874] ss:$12 sps:$4 sm:$0xff]  }
 0x477   :  { %v10371_v44 = vpack.c.bf16 %v5658_v57, %v5654_v19  ;;  %v5701_v13 = vpack.c.bf16 %v5657_v26, %v5653_v29  ;;  %v5365_v32 = vpop.f32.mrb[116].mxu0  ;;  %6484 = vmatpush1.bf16.msra.mxu0 %v9254_v21  ;;  %7867 = vmatpush3.bf16.msra.mxu1 %v9285_v0  ;;  %v9262_v21 = vld [vmem:[#allocation8 + $0x858] ss:$12 sps:$4 sm:$0xff]  }
 0x478   :  { %v10373_v38 = vpack.c.bf16 %v5659_v31, %v5655_v62  ;;  %v8064_v48 = vadd.f32 %v5365_v32, %v10304_v17  ;;  %v5591_v35 = vpop.f32.mrb[212].mxu1  ;;  %v5367_v22 = vpop.f32.mrb[117].mxu0  ;;  %6485 = vmatprep.subr.bf16.mxu0 %v9259_v2 }
 0x479   :  { %v8096_v41 = vadd.f32 %v5591_v35, %v10307_v28  ;;  %v8065_v52 = vadd.f32 %v5367_v22, %v10310_v30  ;;  %v5593_v15 = vpop.f32.mrb[213].mxu1  ;;  %v5369_v56 = vpop.f32.mrb[118].mxu0  ;;  %6428 = vmatprep.mubr.bf16.mxu0 %v5701_v13  ;;  %6646 = vmatprep.mubr.bf16.mxu1 %v5701_v13 }
 0x47a   :  { %v8097_v24 = vadd.f32 %v5593_v15, %v10313_v59  ;;  %v8066_v51 = vadd.f32 %v5369_v56, %v10304_v17  ;;  %v5595_v6 = vpop.f32.mrb[214].mxu1  ;;  %v5371_v42 = vpop.f32.mrb[119].mxu0  ;;  %6429 = vmatmul.mubr.bf16.gmra.mrb[80].mxu0 %v5700_v63  ;;  %6647 = vmatmul.mubr.bf16.gmra.mrb[240].mxu1 %v5700_v63  ;;  %v5660_v0 = vmax.f32 %v8064_v48, 0.0 }
 0x47b   :  { %v8098_v39 = vadd.f32 %v5595_v6, %v10307_v28  ;;  %v8067_v36 = vadd.f32 %v5371_v42, %v10310_v30  ;;  %v5597_v20 = vpop.f32.mrb[215].mxu1  ;;  %6486 = vmatpush1.bf16.msra.mxu0 %v9257_v8  ;;  %v5662_v2 = vmax.f32 %v8096_v41, 0.0  ;;  %v5661_v19 = vmax.f32 %v8065_v52, 0.0  ;;  %v9265_v8 = vld [vmem:[#allocation8 + $0x870] ss:$12 sps:$4 sm:$0xff]  }
 0x47c   :  { %v5664_v45 = vmax.f32 %v8066_v51, 0.0  ;;  %v8099_v18 = vadd.f32 %v5597_v20, %v10313_v59  ;;  %6487 = vmatprep.subr.bf16.mxu0 %v9264_v40  ;;  %v5663_v26 = vmax.f32 %v8097_v24, 0.0  ;;  %v9272_v41 = vld [vmem:[#allocation8 + $0x88c] ss:$12 sps:$4 sm:$0xff]  }
 0x47d   :  { %v5666_v29 = vmax.f32 %v8098_v39, 0.0  ;;  %v5665_v57 = vmax.f32 %v8067_v36, 0.0 }
 0x47e   :  { %v5704_v62 = vpack.c.bf16 %v5664_v45, %v5660_v0  ;;  %v5667_v63 = vmax.f32 %v8099_v18, 0.0  ;;  %v9270_v0 = vld [vmem:[#allocation8 + $0x888] ss:$12 sps:$4 sm:$0xff]  }
 0x47f   :  { %v10383_v31 = vpack.c.bf16 %v5666_v29, %v5662_v2  ;;  %v5705_v13 = vpack.c.bf16 %v5665_v57, %v5661_v19  ;;  %v5375_v32 = vpop.f32.mrb[120].mxu0  ;;  %6488 = vmatpush1.bf16.msra.mxu0 %v9262_v21  ;;  %v9275_v2 = vld [vmem:[#allocation8 + $0x8a4] ss:$12 sps:$4 sm:$0xff]  }
 0x480   :  { %v10385_v35 = vpack.c.bf16 %v5667_v63, %v5663_v26  ;;  %v8068_v48 = vadd.f32 %v5375_v32, %v10304_v17  ;;  %v5601_v22 = vpop.f32.mrb[216].mxu1  ;;  %v5377_v40 = vpop.f32.mrb[121].mxu0  ;;  %6489 = vmatprep.subr.bf16.mxu0 %v9267_v43 }
 0x481   :  { %v8100_v52 = vadd.f32 %v5601_v22, %v10307_v28  ;;  %v8069_v15 = vadd.f32 %v5377_v40, %v10310_v30  ;;  %v5603_v56 = vpop.f32.mrb[217].mxu1  ;;  %v5379_v24 = vpop.f32.mrb[122].mxu0  ;;  %6438 = vmatprep.mubr.bf16.mxu0 %v5705_v13  ;;  %6654 = vmatprep.mubr.bf16.mxu1 %v5705_v13 }
 0x482   :  { %v8101_v51 = vadd.f32 %v5603_v56, %v10313_v59  ;;  %v8070_v6 = vadd.f32 %v5379_v24, %v10304_v17  ;;  %v5605_v42 = vpop.f32.mrb[218].mxu1  ;;  %v5381_v39 = vpop.f32.mrb[123].mxu0  ;;  %6439 = vmatmul.mubr.bf16.gmra.mrb[84].mxu0 %v5704_v62  ;;  %6655 = vmatmul.mubr.bf16.gmra.mrb[244].mxu1 %v5704_v62  ;;  %v5668_v45 = vmax.f32 %v8068_v48, 0.0 }
 0x483   :  { %v8102_v36 = vadd.f32 %v5605_v42, %v10307_v28  ;;  %v8071_v20 = vadd.f32 %v5381_v39, %v10310_v30  ;;  %v5607_v21 = vpop.f32.mrb[219].mxu1  ;;  %6490 = vmatpush1.bf16.msra.mxu0 %v9265_v8  ;;  %v5670_v19 = vmax.f32 %v8100_v52, 0.0  ;;  %v5669_v29 = vmax.f32 %v8069_v15, 0.0  ;;  %v9273_v8 = vld [vmem:[#allocation8 + $0x8a0] ss:$12 sps:$4 sm:$0xff]  }
 0x484   :  { %v5672_v18 = vmax.f32 %v8070_v6, 0.0  ;;  %v8103_v43 = vadd.f32 %v5607_v21, %v10313_v59  ;;  %6491 = vmatprep.subr.bf16.mxu0 %v9272_v41  ;;  %v5671_v63 = vmax.f32 %v8101_v51, 0.0  ;;  %v9280_v52 = vld [vmem:[#allocation8 + $0x8bc] ss:$12 sps:$4 sm:$0xff]  }
 0x485   :  { %v5674_v57 = vmax.f32 %v8102_v36, 0.0  ;;  %v5673_v26 = vmax.f32 %v8071_v20, 0.0 }
 0x486   :  { %v5708_v13 = vpack.c.bf16 %v5672_v18, %v5668_v45  ;;  %v5675_v62 = vmax.f32 %v8103_v43, 0.0  ;;  %v9278_v43 = vld [vmem:[#allocation8 + $0x8b8] ss:$12 sps:$4 sm:$0xff]  }
 0x487   :  { %v10395_v32 = vpack.c.bf16 %v5674_v57, %v5670_v19  ;;  %v5709_v22 = vpack.c.bf16 %v5673_v26, %v5669_v29  ;;  %v5385_v40 = vpop.f32.mrb[124].mxu0  ;;  %6492 = vmatpush1.bf16.msra.mxu0 %v9270_v0  ;;  %v9283_v57 = vld [vmem:[#allocation8 + $0x8d4] ss:$12 sps:$4 sm:$0xff]  }
 0x488   :  { %v10397_v56 = vpack.c.bf16 %v5675_v62, %v5671_v63  ;;  %v8072_v48 = vadd.f32 %v5385_v40, %v10304_v17  ;;  %v5611_v24 = vpop.f32.mrb[220].mxu1  ;;  %v5387_v41 = vpop.f32.mrb[125].mxu0  ;;  %6493 = vmatprep.subr.bf16.mxu0 %v9275_v2 }
 0x489   :  { %v8104_v15 = vadd.f32 %v5611_v24, %v10307_v28  ;;  %v8073_v51 = vadd.f32 %v5387_v41, %v10310_v30  ;;  %v5613_v6 = vpop.f32.mrb[221].mxu1  ;;  %v5389_v42 = vpop.f32.mrb[126].mxu0  ;;  %6448 = vmatprep.mubr.bf16.mxu0 %v5709_v22  ;;  %6662 = vmatprep.mubr.bf16.mxu1 %v5709_v22 }
 0x48a   :  { %v8105_v39 = vadd.f32 %v5613_v6, %v10313_v59  ;;  %v8074_v36 = vadd.f32 %v5389_v42, %v10304_v17  ;;  %v5615_v20 = vpop.f32.mrb[222].mxu1  ;;  %v5391_v21 = vpop.f32.mrb[127].mxu0  ;;  %6449 = vmatmul.mubr.bf16.gmra.mrb[88].mxu0 %v5708_v13  ;;  %6663 = vmatmul.mubr.bf16.gmra.mrb[248].mxu1 %v5708_v13  ;;  %v5676_v2 = vmax.f32 %v8072_v48, 0.0 }
 0x48b   :  { %v8106_v0 = vadd.f32 %v5615_v20, %v10307_v28  ;;  %v8075_v45 = vadd.f32 %v5391_v21, %v10310_v30  ;;  %v5617_v18 = vpop.f32.mrb[223].mxu1  ;;  %6494 = vmatpush1.bf16.msra.mxu0 %v9273_v8  ;;  %v5678_v26 = vmax.f32 %v8104_v15, 0.0  ;;  %v5677_v63 = vmax.f32 %v8073_v51, 0.0  ;;  %v9281_v30 = vld [vmem:[#allocation8 + $0x8d0] ss:$12 sps:$4 sm:$0xff]  }
 0x48c   :  { %v5680_v19 = vmax.f32 %v8074_v36, 0.0  ;;  %v8107_v29 = vadd.f32 %v5617_v18, %v10313_v59  ;;  %6495 = vmatprep.subr.bf16.mxu0 %v9280_v52  ;;  %v5679_v22 = vmax.f32 %v8105_v39, 0.0  ;;  %v9288_v8 = vld [vmem:[#allocation8 + $0x8ec] ss:$12 sps:$4 sm:$0xff]   ;;  %v9286_v59 = vld [vmem:[#allocation8 + $0x8e8] ss:$12 sps:$4 sm:$0xff]  }
 0x48d   :  { %v5682_v17 = vmax.f32 %v8106_v0, 0.0  ;;  %v5681_v62 = vmax.f32 %v8075_v45, 0.0 }
 0x48e   :  { %v5712_v40 = vpack.c.bf16 %v5680_v19, %v5676_v2  ;;  %v5683_v13 = vmax.f32 %v8107_v29, 0.0 }
 0x48f   :  { %v5714_v24 = vpack.c.bf16 %v5682_v17, %v5678_v26  ;;  %v5713_v28 = vpack.c.bf16 %v5681_v62, %v5677_v63  ;;  %6496 = vmatpush1.bf16.msra.mxu0 %v9278_v43 }
 0x490   :  { %v5715_v41 = vpack.c.bf16 %v5683_v13, %v5679_v22  ;;  %6497 = vmatprep.subr.bf16.mxu0 %v9283_v57 }
 0x491   :  { %6458 = vmatprep.mubr.bf16.mxu0 %v5713_v28  ;;  %6670 = vmatprep.mubr.bf16.mxu1 %v5713_v28 }
 0x492   :  { %6459 = vmatmul.mubr.bf16.gmra.mrb[92].mxu0 %v5712_v40  ;;  %6671 = vmatmul.mubr.bf16.gmra.mrb[252].mxu1 %v5712_v40 }
 0x493   :  { %6498 = vmatpush1.bf16.msra.mxu0 %v9281_v30  ;;  %6501 = vmatprep.mubr.bf16.mxu0 %v10325_v23 }
 0x494   :  { %6711 = vmatprep.mubr.bf16.mxu1 %v10325_v23  ;;  %6499 = vmatprep.subr.bf16.mxu0 %v9288_v8 }
 0x497   :  { %6500 = vmatpush1.bf16.msra.mxu0 %v9286_v59 }
 0x49a   :  { %6502 = vmatmul.mubr.bf16.vlgmr.msra.gmra.mrb[64].mxu0 %v10323_v47  ;;  %6712 = vmatmul.mubr.bf16.vlgmr.msra.gmra.mrb[0].mxu1 %v10323_v47 }
 0x49b   :  { %6511 = vmatprep.mubr.bf16.mxu0 %v10337_v25  ;;  %6719 = vmatprep.mubr.bf16.mxu1 %v10337_v25 }
 0x4a2   :  { %6512 = vmatmul.mubr.bf16.gmra.mrb[68].mxu0 %v10335_v10  ;;  %6720 = vmatmul.mubr.bf16.gmra.mrb[4].mxu1 %v10335_v10 }
 0x4a3   :  { %6521 = vmatprep.mubr.bf16.mxu0 %v10349_v11  ;;  %6727 = vmatprep.mubr.bf16.mxu1 %v10349_v11 }
 0x4aa   :  { %6522 = vmatmul.mubr.bf16.gmra.mrb[72].mxu0 %v10347_v7  ;;  %6728 = vmatmul.mubr.bf16.gmra.mrb[8].mxu1 %v10347_v7 }
 0x4ab   :  { %6531 = vmatprep.mubr.bf16.mxu0 %v10361_v61  ;;  %6735 = vmatprep.mubr.bf16.mxu1 %v10361_v61 }
 0x4b2   :  { %6532 = vmatmul.mubr.bf16.gmra.mrb[76].mxu0 %v10359_v53  ;;  %6736 = vmatmul.mubr.bf16.gmra.mrb[12].mxu1 %v10359_v53 }
 0x4b3   :  { %6541 = vmatprep.mubr.bf16.mxu0 %v10373_v38  ;;  %6743 = vmatprep.mubr.bf16.mxu1 %v10373_v38 }
 0x4ba   :  { %6542 = vmatmul.mubr.bf16.gmra.mrb[80].mxu0 %v10371_v44  ;;  %6744 = vmatmul.mubr.bf16.gmra.mrb[16].mxu1 %v10371_v44 }
 0x4bb   :  { %6551 = vmatprep.mubr.bf16.mxu0 %v10385_v35  ;;  %6751 = vmatprep.mubr.bf16.mxu1 %v10385_v35 }
 0x4c2   :  { %6552 = vmatmul.mubr.bf16.gmra.mrb[84].mxu0 %v10383_v31  ;;  %6752 = vmatmul.mubr.bf16.gmra.mrb[20].mxu1 %v10383_v31 }
 0x4c3   :  { %6561 = vmatprep.mubr.bf16.mxu0 %v10397_v56  ;;  %6759 = vmatprep.mubr.bf16.mxu1 %v10397_v56 }
 0x4ca   :  { %6562 = vmatmul.mubr.bf16.gmra.mrb[88].mxu0 %v10395_v32  ;;  %6760 = vmatmul.mubr.bf16.gmra.mrb[24].mxu1 %v10395_v32 }
 0x4cb   :  { %6571 = vmatprep.mubr.bf16.mxu0 %v5715_v41  ;;  %6767 = vmatprep.mubr.bf16.mxu1 %v5715_v41 }
 0x4d2   :  { %6572 = vmatmul.mubr.bf16.gmra.mrb[92].mxu0 %v5714_v24  ;;  %6768 = vmatmul.mubr.bf16.gmra.mrb[28].mxu1 %v5714_v24 }
 0x52d   :  { %v7804_v47 = vpop.f32.mrb[224].mxu1 }
 0x52e   :  { %v7805_v23 = vpop.f32.mrb[225].mxu1 }
 0x52f   :  { %v10435_v10 = vadd.f32 %v7805_v23, %v7804_v47  ;;  %v7807_v25 = vpop.f32.mrb[226].mxu1  ;;  %v6824_v23 = vld [vmem:[#allocation10] sm:$0x7] }
 0x530   :  { %v7808_v7 = vpop.f32.mrb[227].mxu1 }
 0x531   :  { %v10437_v11 = vadd.f32 %v7808_v7, %v7807_v25 }
 0x535   :  { %v7810_v53 = vpop.f32.mrb[228].mxu1 }
 0x536   :  { %v7811_v61 = vpop.f32.mrb[229].mxu1 }
 0x537   :  { %v10439_v44 = vadd.f32 %v7811_v61, %v7810_v53  ;;  %v7813_v38 = vpop.f32.mrb[230].mxu1  ;;  %v10468_v53 = vrot.slane %v6824_v23, %v10717_v46  ;;  %v10471_v61 = vrot.slane %v6824_v23, %v10719_v12 }
 0x538   :  { %v7814_v31 = vpop.f32.mrb[231].mxu1 }
 0x539   :  { %v10441_v35 = vadd.f32 %v7814_v31, %v7813_v38 }
 0x53d   :  { %v7816_v32 = vpop.f32.mrb[232].mxu1 }
 0x53e   :  { %v7817_v56 = vpop.f32.mrb[233].mxu1 }
 0x53f   :  { %v10443_v48 = vadd.f32 %v7817_v56, %v7816_v32  ;;  %v7819_v52 = vpop.f32.mrb[234].mxu1 }
 0x540   :  { %v7820_v15 = vpop.f32.mrb[235].mxu1 }
 0x541   :  { %v10445_v51 = vadd.f32 %v7820_v15, %v7819_v52 }
 0x545   :  { %v7822_v6 = vpop.f32.mrb[236].mxu1 }
 0x546   :  { %v7823_v42 = vpop.f32.mrb[237].mxu1 }
 0x547   :  { %v10447_v39 = vadd.f32 %v7823_v42, %v7822_v6  ;;  %v7825_v36 = vpop.f32.mrb[238].mxu1 }
 0x548   :  { %v7826_v20 = vpop.f32.mrb[239].mxu1 }
 0x549   :  { %v10449_v21 = vadd.f32 %v7826_v20, %v7825_v36 }
 0x54d   :  { %v7828_v0 = vpop.f32.mrb[240].mxu1 }
 0x54e   :  { %v7829_v45 = vpop.f32.mrb[241].mxu1 }
 0x54f   :  { %v10451_v18 = vadd.f32 %v7829_v45, %v7828_v0  ;;  %v7831_v43 = vpop.f32.mrb[242].mxu1  ;;  %v10478_v45 = vrot.slane %v6824_v23, %v10718_v50 }
 0x550   :  { %v7832_v2 = vpop.f32.mrb[243].mxu1 }
 0x551   :  { %v10453_v19 = vadd.f32 %v7832_v2, %v7831_v43 }
 0x555   :  { %v7834_v29 = vpop.f32.mrb[244].mxu1 }
 0x556   :  { %v7835_v57 = vpop.f32.mrb[245].mxu1 }
 0x557   :  { %v10455_v26 = vadd.f32 %v7835_v57, %v7834_v29  ;;  %v7837_v63 = vpop.f32.mrb[246].mxu1 }
 0x558   :  { %v7838_v17 = vpop.f32.mrb[247].mxu1 }
 0x559   :  { %v10457_v62 = vadd.f32 %v7838_v17, %v7837_v63 }
 0x55d   :  { %v7840_v22 = vpop.f32.mrb[248].mxu1 }
 0x55e   :  { %v7841_v40 = vpop.f32.mrb[249].mxu1 }
 0x55f   :  { %v10459_v13 = vadd.f32 %v7841_v40, %v7840_v22  ;;  %v7843_v24 = vpop.f32.mrb[250].mxu1 }
 0x560   :  { %v7844_v28 = vpop.f32.mrb[251].mxu1 }
 0x561   :  { %v10461_v30 = vadd.f32 %v7844_v28, %v7843_v24 }
 0x565   :  { %v7846_v41 = vpop.f32.mrb[252].mxu1 }
 0x566   :  { %v7847_v8 = vpop.f32.mrb[253].mxu1 }
 0x567   :  { %v10463_v59 = vadd.f32 %v7847_v8, %v7846_v41  ;;  %v7849_v47 = vpop.f32.mrb[254].mxu1 }
 0x568   :  { %v7850_v25 = vpop.f32.mrb[255].mxu1 }
 0x569   :  { %v10465_v7 = vadd.f32 %v7850_v25, %v7849_v47 }
 0x56d   :  { %v6503_v38 = vpop.f32.mrb[64].mxu0  ;;  %v7868_v31 = vpop.f32.mrb[0].mxu1 }
 0x56e   :  { %v6841_v32 = vadd.f32 %v10468_v53, %v6503_v38  ;;  %v6505_v56 = vpop.f32.mrb[65].mxu0  ;;  %v7869_v52 = vpop.f32.mrb[1].mxu1 }
 0x56f   :  { %v6842_v15 = vadd.f32 %v10471_v61, %v6505_v56  ;;  %v7870_v6 = vadd.f32 %v7869_v52, %v7868_v31  ;;  %v6507_v42 = vpop.f32.mrb[66].mxu0  ;;  %v7871_v36 = vpop.f32.mrb[2].mxu1 }
 0x570   :  { %6889 = vst [vmem:[#allocation11] sm:$0xff] %v6841_v32  ;;  %v6844_v20 = vadd.f32 %v10468_v53, %v6507_v42  ;;  %v6509_v0 = vpop.f32.mrb[67].mxu0  ;;  %v7872_v46 = vpop.f32.mrb[3].mxu1 }
 0x571   :  { %6890 = vst [vmem:[#allocation11 + $0x8] sm:$0xff] %v6842_v15  ;;  %v6714_v12 = vadd.f32 %v7870_v6, %v10435_v10  ;;  %v6845_v43 = vadd.f32 %v10471_v61, %v6509_v0  ;;  %v7873_v2 = vadd.f32 %v7872_v46, %v7871_v36 }
 0x572   :  { %6892 = vst [vmem:[#allocation11 + $0x18] sm:$0xff] %v6844_v20 }
 0x573   :  { %v6778_v29 = vadd.f32 %v6714_v12, %v10256_v58  ;;  %6893 = vst [vmem:[#allocation11 + $0x20] sm:$0xff] %v6845_v43  ;;  %v6717_v57 = vadd.f32 %v7873_v2, %v10437_v11 }
 0x575   :  { %v6843_v63 = vadd.f32 %v10478_v45, %v6778_v29  ;;  %v6781_v17 = vadd.f32 %v6717_v57, %v10259_v55  ;;  %v6513_v22 = vpop.f32.mrb[68].mxu0  ;;  %v7874_v40 = vpop.f32.mrb[4].mxu1 }
 0x576   :  { %v6847_v10 = vadd.f32 %v10468_v53, %v6513_v22  ;;  %v6515_v24 = vpop.f32.mrb[69].mxu0  ;;  %v7875_v50 = vpop.f32.mrb[5].mxu1 }
 0x577   :  { %6891 = vst [vmem:[#allocation11 + $0x10] sm:$0xff] %v6843_v63  ;;  %v6846_v28 = vadd.f32 %v10478_v45, %v6781_v17  ;;  %v6848_v41 = vadd.f32 %v10471_v61, %v6515_v24  ;;  %v7876_v8 = vadd.f32 %v7875_v50, %v7874_v40  ;;  %v6517_v58 = vpop.f32.mrb[70].mxu0  ;;  %v7877_v47 = vpop.f32.mrb[6].mxu1 }
 0x578   :  { %6895 = vst [vmem:[#allocation11 + $0x30] sm:$0xff] %v6847_v10  ;;  %v6850_v11 = vadd.f32 %v10468_v53, %v6517_v58  ;;  %v6519_v23 = vpop.f32.mrb[71].mxu0  ;;  %v7878_v25 = vpop.f32.mrb[7].mxu1 }
 0x579   :  { %6894 = vst [vmem:[#allocation11 + $0x28] sm:$0xff] %v6846_v28  ;;  %6896 = vst [vmem:[#allocation11 + $0x38] sm:$0xff] %v6848_v41  ;;  %v6722_v55 = vadd.f32 %v7876_v8, %v10439_v44  ;;  %v6851_v38 = vadd.f32 %v10471_v61, %v6519_v23  ;;  %v7879_v31 = vadd.f32 %v7878_v25, %v7877_v47 }
 0x57a   :  { %6898 = vst [vmem:[#allocation11 + $0x48] sm:$0xff] %v6850_v11 }
 0x57b   :  { %v6784_v32 = vadd.f32 %v6722_v55, %v10262_v16  ;;  %6899 = vst [vmem:[#allocation11 + $0x50] sm:$0xff] %v6851_v38  ;;  %v6725_v56 = vadd.f32 %v7879_v31, %v10441_v35 }
 0x57d   :  { %v6849_v52 = vadd.f32 %v10478_v45, %v6784_v32  ;;  %v6787_v15 = vadd.f32 %v6725_v56, %v10265_v14  ;;  %v6523_v6 = vpop.f32.mrb[72].mxu0  ;;  %v7880_v42 = vpop.f32.mrb[8].mxu1 }
 0x57e   :  { %v6853_v36 = vadd.f32 %v10468_v53, %v6523_v6  ;;  %v6525_v20 = vpop.f32.mrb[73].mxu0  ;;  %v7881_v0 = vpop.f32.mrb[9].mxu1 }
 0x57f   :  { %6897 = vst [vmem:[#allocation11 + $0x40] sm:$0xff] %v6849_v52  ;;  %v6852_v44 = vadd.f32 %v10478_v45, %v6787_v15  ;;  %v6854_v46 = vadd.f32 %v10471_v61, %v6525_v20  ;;  %v7882_v12 = vadd.f32 %v7881_v0, %v7880_v42  ;;  %v6527_v16 = vpop.f32.mrb[74].mxu0  ;;  %v7883_v43 = vpop.f32.mrb[10].mxu1 }
 0x580   :  { %6901 = vst [vmem:[#allocation11 + $0x60] sm:$0xff] %v6853_v36  ;;  %v6856_v35 = vadd.f32 %v10468_v53, %v6527_v16  ;;  %v6529_v2 = vpop.f32.mrb[75].mxu0  ;;  %v7884_v29 = vpop.f32.mrb[11].mxu1 }
 0x581   :  { %6900 = vst [vmem:[#allocation11 + $0x58] sm:$0xff] %v6852_v44  ;;  %6902 = vst [vmem:[#allocation11 + $0x68] sm:$0xff] %v6854_v46  ;;  %v6730_v14 = vadd.f32 %v7882_v12, %v10443_v48  ;;  %v6857_v57 = vadd.f32 %v10471_v61, %v6529_v2  ;;  %v7885_v63 = vadd.f32 %v7884_v29, %v7883_v43 }
 0x582   :  { %6904 = vst [vmem:[#allocation11 + $0x78] sm:$0xff] %v6856_v35 }
 0x583   :  { %v6790_v17 = vadd.f32 %v6730_v14, %v10268_v60  ;;  %6905 = vst [vmem:[#allocation11 + $0x80] sm:$0xff] %v6857_v57  ;;  %v6733_v22 = vadd.f32 %v7885_v63, %v10445_v51 }
 0x585   :  { %v6855_v40 = vadd.f32 %v10478_v45, %v6790_v17  ;;  %v6793_v10 = vadd.f32 %v6733_v22, %v10271_v49  ;;  %v6533_v24 = vpop.f32.mrb[76].mxu0  ;;  %v7886_v50 = vpop.f32.mrb[12].mxu1 }
 0x586   :  { %v6859_v28 = vadd.f32 %v10468_v53, %v6533_v24  ;;  %v6535_v41 = vpop.f32.mrb[77].mxu0  ;;  %v7887_v8 = vpop.f32.mrb[13].mxu1 }
 0x587   :  { %6903 = vst [vmem:[#allocation11 + $0x70] sm:$0xff] %v6855_v40  ;;  %v6858_v48 = vadd.f32 %v10478_v45, %v6793_v10  ;;  %v6860_v58 = vadd.f32 %v10471_v61, %v6535_v41  ;;  %v7888_v47 = vadd.f32 %v7887_v8, %v7886_v50  ;;  %v6537_v60 = vpop.f32.mrb[78].mxu0  ;;  %v7889_v11 = vpop.f32.mrb[14].mxu1 }
 0x588   :  { %6907 = vst [vmem:[#allocation11 + $0x90] sm:$0xff] %v6859_v28  ;;  %v6862_v51 = vadd.f32 %v10468_v53, %v6537_v60  ;;  %v6539_v23 = vpop.f32.mrb[79].mxu0  ;;  %v7890_v25 = vpop.f32.mrb[15].mxu1 }
 0x589   :  { %6906 = vst [vmem:[#allocation11 + $0x88] sm:$0xff] %v6858_v48  ;;  %6908 = vst [vmem:[#allocation11 + $0x98] sm:$0xff] %v6860_v58  ;;  %v6738_v49 = vadd.f32 %v7888_v47, %v10447_v39  ;;  %v6863_v55 = vadd.f32 %v10471_v61, %v6539_v23  ;;  %v7891_v38 = vadd.f32 %v7890_v25, %v7889_v11 }
 0x58a   :  { %6910 = vst [vmem:[#allocation11 + $0xa8] sm:$0xff] %v6862_v51 }
 0x58b   :  { %v6796_v31 = vadd.f32 %v6738_v49, %v10274_v1  ;;  %6911 = vst [vmem:[#allocation11 + $0xb0] sm:$0xff] %v6863_v55  ;;  %v6741_v32 = vadd.f32 %v7891_v38, %v10449_v21 }
 0x58d   :  { %v6861_v56 = vadd.f32 %v10478_v45, %v6796_v31  ;;  %v6799_v52 = vadd.f32 %v6741_v32, %v10277_v4  ;;  %v6543_v15 = vpop.f32.mrb[80].mxu0  ;;  %v7892_v6 = vpop.f32.mrb[16].mxu1 }
 0x58e   :  { %v6865_v42 = vadd.f32 %v10468_v53, %v6543_v15  ;;  %v6545_v36 = vpop.f32.mrb[81].mxu0  ;;  %v7893_v20 = vpop.f32.mrb[17].mxu1 }
 0x58f   :  { %6909 = vst [vmem:[#allocation11 + $0xa0] sm:$0xff] %v6861_v56  ;;  %v6864_v39 = vadd.f32 %v10478_v45, %v6799_v52  ;;  %v6866_v0 = vadd.f32 %v10471_v61, %v6545_v36  ;;  %v7894_v44 = vadd.f32 %v7893_v20, %v7892_v6  ;;  %v6547_v1 = vpop.f32.mrb[82].mxu0  ;;  %v7895_v46 = vpop.f32.mrb[18].mxu1 }
 0x590   :  { %6913 = vst [vmem:[#allocation11 + $0xc0] sm:$0xff] %v6865_v42  ;;  %v6868_v21 = vadd.f32 %v10468_v53, %v6547_v1  ;;  %v6549_v12 = vpop.f32.mrb[83].mxu0  ;;  %v7896_v16 = vpop.f32.mrb[19].mxu1 }
 0x591   :  { %6912 = vst [vmem:[#allocation11 + $0xb8] sm:$0xff] %v6864_v39  ;;  %6914 = vst [vmem:[#allocation11 + $0xc8] sm:$0xff] %v6866_v0  ;;  %v6746_v4 = vadd.f32 %v7894_v44, %v10451_v18  ;;  %v6869_v43 = vadd.f32 %v10471_v61, %v6549_v12  ;;  %v7897_v35 = vadd.f32 %v7896_v16, %v7895_v46 }
 0x592   :  { %6916 = vst [vmem:[#allocation11 + $0xd8] sm:$0xff] %v6868_v21 }
 0x593   :  { %v6802_v2 = vadd.f32 %v6746_v4, %v10280_v33  ;;  %6917 = vst [vmem:[#allocation11 + $0xe0] sm:$0xff] %v6869_v43  ;;  %v6749_v29 = vadd.f32 %v7897_v35, %v10453_v19 }
 0x595   :  { %v6867_v14 = vadd.f32 %v10478_v45, %v6802_v2  ;;  %v6805_v57 = vadd.f32 %v6749_v29, %v10283_v9  ;;  %v6553_v63 = vpop.f32.mrb[84].mxu0  ;;  %v7898_v17 = vpop.f32.mrb[20].mxu1 }
 0x596   :  { %v6871_v22 = vadd.f32 %v10468_v53, %v6553_v63  ;;  %v6555_v40 = vpop.f32.mrb[85].mxu0  ;;  %v7899_v10 = vpop.f32.mrb[21].mxu1 }
 0x597   :  { %6915 = vst [vmem:[#allocation11 + $0xd0] sm:$0xff] %v6867_v14  ;;  %v6870_v18 = vadd.f32 %v10478_v45, %v6805_v57  ;;  %v6872_v24 = vadd.f32 %v10471_v61, %v6555_v40  ;;  %v7900_v50 = vadd.f32 %v7899_v10, %v7898_v17  ;;  %v6557_v33 = vpop.f32.mrb[86].mxu0  ;;  %v7901_v28 = vpop.f32.mrb[22].mxu1 }
 0x598   :  { %6919 = vst [vmem:[#allocation11 + $0xf0] sm:$0xff] %v6871_v22  ;;  %v6874_v19 = vadd.f32 %v10468_v53, %v6557_v33  ;;  %v6559_v41 = vpop.f32.mrb[87].mxu0  ;;  %v7902_v8 = vpop.f32.mrb[23].mxu1 }
 0x599   :  { %6918 = vst [vmem:[#allocation11 + $0xe8] sm:$0xff] %v6870_v18  ;;  %6920 = vst [vmem:[#allocation11 + $0xf8] sm:$0xff] %v6872_v24  ;;  %v6754_v9 = vadd.f32 %v7900_v50, %v10455_v26  ;;  %v6875_v48 = vadd.f32 %v10471_v61, %v6559_v41  ;;  %v7903_v58 = vadd.f32 %v7902_v8, %v7901_v28 }
 0x59a   :  { %6922 = vst [vmem:[#allocation11 + $0x108] sm:$0xff] %v6874_v19 }
 0x59b   :  { %v6808_v47 = vadd.f32 %v6754_v9, %v10286_v27  ;;  %6923 = vst [vmem:[#allocation11 + $0x110] sm:$0xff] %v6875_v48  ;;  %v6757_v60 = vadd.f32 %v7903_v58, %v10457_v62 }
 0x59d   :  { %v6873_v11 = vadd.f32 %v10478_v45, %v6808_v47  ;;  %v6811_v51 = vadd.f32 %v6757_v60, %v10289_v54  ;;  %v6563_v23 = vpop.f32.mrb[88].mxu0  ;;  %v7904_v25 = vpop.f32.mrb[24].mxu1 }
 0x59e   :  { %v6877_v49 = vadd.f32 %v10468_v53, %v6563_v23  ;;  %v6565_v55 = vpop.f32.mrb[89].mxu0  ;;  %v7905_v38 = vpop.f32.mrb[25].mxu1 }
 0x59f   :  { %6921 = vst [vmem:[#allocation11 + $0x100] sm:$0xff] %v6873_v11  ;;  %v6876_v26 = vadd.f32 %v10478_v45, %v6811_v51  ;;  %v6878_v31 = vadd.f32 %v10471_v61, %v6565_v55  ;;  %v7906_v32 = vadd.f32 %v7905_v38, %v7904_v25  ;;  %v6567_v27 = vpop.f32.mrb[90].mxu0  ;;  %v7907_v56 = vpop.f32.mrb[26].mxu1 }
 0x5a0   :  { %6925 = vst [vmem:[#allocation11 + $0x120] sm:$0xff] %v6877_v49  ;;  %v6880_v62 = vadd.f32 %v10468_v53, %v6567_v27  ;;  %v6569_v52 = vpop.f32.mrb[91].mxu0  ;;  %v7908_v15 = vpop.f32.mrb[27].mxu1 }
 0x5a1   :  { %6924 = vst [vmem:[#allocation11 + $0x118] sm:$0xff] %v6876_v26  ;;  %6926 = vst [vmem:[#allocation11 + $0x128] sm:$0xff] %v6878_v31  ;;  %v6762_v54 = vadd.f32 %v7906_v32, %v10459_v13  ;;  %v6881_v6 = vadd.f32 %v10471_v61, %v6569_v52  ;;  %v7909_v42 = vadd.f32 %v7908_v15, %v7907_v56 }
 0x5a2   :  { %6928 = vst [vmem:[#allocation11 + $0x138] sm:$0xff] %v6880_v62 }
 0x5a3   :  { %v6814_v36 = vadd.f32 %v6762_v54, %v10292_v5  ;;  %6929 = vst [vmem:[#allocation11 + $0x140] sm:$0xff] %v6881_v6  ;;  %v6765_v20 = vadd.f32 %v7909_v42, %v10461_v30 }
 0x5a5   :  { %v6879_v39 = vadd.f32 %v10478_v45, %v6814_v36  ;;  %v6817_v0 = vadd.f32 %v6765_v20, %v10295_v37  ;;  %v6573_v44 = vpop.f32.mrb[92].mxu0  ;;  %v7910_v1 = vpop.f32.mrb[28].mxu1 }
 0x5a6   :  { %v6883_v46 = vadd.f32 %v10468_v53, %v6573_v44  ;;  %v6575_v21 = vpop.f32.mrb[93].mxu0  ;;  %v7911_v12 = vpop.f32.mrb[29].mxu1 }
 0x5a7   :  { %6927 = vst [vmem:[#allocation11 + $0x130] sm:$0xff] %v6879_v39  ;;  %v6882_v13 = vadd.f32 %v10478_v45, %v6817_v0  ;;  %v6884_v16 = vadd.f32 %v10471_v61, %v6575_v21  ;;  %v7912_v4 = vadd.f32 %v7911_v12, %v7910_v1  ;;  %v6577_v5 = vpop.f32.mrb[94].mxu0  ;;  %v7913_v43 = vpop.f32.mrb[30].mxu1 }
 0x5a8   :  { %6931 = vst [vmem:[#allocation11 + $0x150] sm:$0xff] %v6883_v46  ;;  %v6886_v30 = vadd.f32 %v10468_v53, %v6577_v5  ;;  %v6579_v35 = vpop.f32.mrb[95].mxu0  ;;  %v7914_v2 = vpop.f32.mrb[31].mxu1 }
 0x5a9   :  { %6930 = vst [vmem:[#allocation11 + $0x148] sm:$0xff] %v6882_v13  ;;  %6932 = vst [vmem:[#allocation11 + $0x158] sm:$0xff] %v6884_v16  ;;  %v6770_v37 = vadd.f32 %v7912_v4, %v10463_v59  ;;  %v6887_v29 = vadd.f32 %v10471_v61, %v6579_v35  ;;  %v7915_v14 = vadd.f32 %v7914_v2, %v7913_v43 }
 0x5aa   :  { %6934 = vst [vmem:[#allocation11 + $0x168] sm:$0xff] %v6886_v30 }
 0x5ab   :  { %v6820_v57 = vadd.f32 %v6770_v37, %v10298_v34  ;;  %6935 = vst [vmem:[#allocation11 + $0x170] sm:$0xff] %v6887_v29  ;;  %v6773_v63 = vadd.f32 %v7915_v14, %v10465_v7 }
 0x5ad   :  { %v6885_v17 = vadd.f32 %v10478_v45, %v6820_v57  ;;  %v6823_v53 = vadd.f32 %v6773_v63, %v10301_v3 }
 0x5af   :  { %6933 = vst [vmem:[#allocation11 + $0x160] sm:$0xff] %v6885_v17  ;;  %v6888_v22 = vadd.f32 %v10478_v45, %v6823_v53 }
 0x5b1   :  { %6936 = vst [vmem:[#allocation11 + $0x178] sm:$0xff] %v6888_v22 }
 0x5b2   :  { %9410 = shalt.err (!%p9407_p2)
}
 0x5b3   :  { %s9411_s10 = scalar_lea.hbm %s10576_s5, 6144 }
 0x5b4   :  { %p9412_p3 = scmp.ne.s32.totalorder %s10576_s5, %s9411_s10  ;;  %p9415_p4 = scmp.lt.u32.totalorder %s9411_s10, %s10576_s5 }
 0x5b6   :  { %p9417_p5 = pnand %p9415_p4, %p9412_p3 }
 0x5b8   :  { %9420 = shalt.err (!%p9417_p5)
}
 0x5b9   :  { %6948 = dma.vmem_to_hbm [thread:$0]  %s6943_s6, 6144, %s10576_s5, [#allocation4], %s9436_s3, %s9436_s3, %s9437_s30  }
 0x5ba   :  { %9427 = dma.done.wait [#allocation4], 6144  }
 0x5bb   :  { %9428 = vsyncadd [#allocation4], 4294961152 }
 0x5bc   :  { %6952 = vsyncpa [#allocation3], 1 }
 0x5bd   :  { %6953 = vsyncpa [#allocation6], 1 }
 0x5be   :  { %6954 = vsyncpa [#allocation9], 1 }
 0x5bf   :  { %6955 = vsyncpa [#allocation4], 1 }

</bundles_post_ra>
